<compile_context>
chip_gen: v7x
topology: tpu7x:2x2x1
jax: 0.10.0
libtpu: 0.0.40
codegen_flags: <defaults>
</compile_context>

<pallas_src>
import jax
import jax.numpy as jnp
from jax.experimental import pallas as pl
from jax.experimental.pallas import tpu as pltpu

NEG_SLOPE = 0.01   # F.leaky_relu default
BN_EPS = 1e-5      # nn.BatchNorm2d default


def _full_spec(shape):
    """BlockSpec covering the whole array (single-block grid)."""
    zeros = (0,) * len(shape)
    return pl.BlockSpec(shape, lambda i, _z=zeros: _z)


# ----------------------------------------------------------------------------
# Parameter construction (banded conv weights + pooling / BN helper matrices)
# ----------------------------------------------------------------------------
def init_params(key, depth, width, expansion=2, padding=1, noutput=2):
    chi = depth * expansion
    k1 = max(width // 2, 2)                         # half-width first kernel
    conv_defs = [
        (depth, chi, k1, False),                    # conv1 (no pool)
        (chi, chi * 2, 3, True),                    # conv2 + pool
        (chi * 2, chi * 4, 3, True),                # conv3 + pool
        (chi * 4, chi * 8, 3, True),                # conv4 + pool
    ]

    cfg = []
    w_sp = width
    for cin, cout, k, pool in conv_defs:
        ow = w_sp - k + 2 * padding + 1
        cfg.append(dict(cin=cin, cout=cout, k=k, hin=w_sp,
                        hp=w_sp + 2 * padding, oh=ow, ow=ow, pool=pool))
        w_sp = ow // 2 if pool else ow
    feat = conv_defs[-1][1] * w_sp * w_sp           # actual flatten size (64 here)

    keys = jax.random.split(key, 2 * len(conv_defs) + 2)
    layers = []
    for li, (cin, cout, k, pool) in enumerate(conv_defs):
        fan_in = cin * k * k
        w = jax.random.normal(keys[2 * li], (cout, cin, k, k), jnp.float32)
        w = w / jnp.sqrt(float(fan_in))
        b = 0.01 * jax.random.normal(keys[2 * li + 1], (cout,), jnp.float32)

        lc = cfg[li]
        ow, wp = lc["ow"], lc["hp"]                 # square images: Wp == Hp
        # Banded weight matrices: one (Wp*Cin, OW*Cout) matrix per kernel row kh.
        # Entry [(ow+kw)*Cin+ci, ow*Cout+co] = W[co, ci, kh, kw] so that
        #   out_row(oh) = sum_kh  xpad_row(oh+kh) @ band[kh]
        eye = jnp.eye(ow, dtype=jnp.float32)
        bands = []
        for kh in range(k):
            m = jnp.zeros((wp * cin, ow * cout), jnp.float32)
            for kw in range(k):
                blk = jnp.kron(eye, w[:, :, kh, kw].T)      # block-diag (OW*Cin, OW*Cout)
                m = m + jnp.pad(blk, ((kw * cin, (wp - ow - kw) * cin), (0, 0)))
            bands.append(m)

        eye_c = jnp.eye(cout, dtype=jnp.float32)
        tile_w = ow // 2 if pool else ow            # width of the BN-apply slab
        layer = dict(
            w_conv=w, b_conv=b,                                   # torch layout (reference)
            wband=jnp.stack(bands, axis=0),                       # (K, Wp*Cin, OW*Cout)
            bias_row=jnp.tile(b.reshape(1, cout), (1, ow)),       # (1, OW*Cout), pre-tiled
            fold=jnp.tile(eye_c, (ow, 1)),                        # (OW*Cout, Cout): stat fold
            rep=jnp.tile(eye_c, (1, tile_w)),                     # (Cout, tile_w*Cout): bcast
        )
        if pool:
            pw = ow // 2
            ee = jnp.zeros((ow, pw), jnp.float32).at[2 * jnp.arange(pw),
                                                     jnp.arange(pw)].set(1.0)
            eo = jnp.zeros((ow, pw), jnp.float32).at[2 * jnp.arange(pw) + 1,
                                                     jnp.arange(pw)].set(1.0)
            layer["sel_even"] = jnp.kron(ee, eye_c)               # (OW*Cout, PW*Cout)
            layer["sel_odd"] = jnp.kron(eo, eye_c)
        layers.append(layer)

    fw = jax.random.normal(keys[-2], (noutput, feat), jnp.float32) / jnp.sqrt(float(feat))
    fb = 0.01 * jax.random.normal(keys[-1], (noutput,), jnp.float32)
    return dict(cfg=cfg, padding=padding, noutput=noutput, layers=layers,
                fc0=dict(w=fw.T, b=fb.reshape(1, noutput)))


# ----------------------------------------------------------------------------
# Fused forward: one pallas_call for the whole network
# ----------------------------------------------------------------------------
def hkcnn_forward(x_nchw, params):
    cfg = params["cfg"]
    pad = params["padding"]
    noutput = params["noutput"]
    layers = params["layers"]
    fc_w, fc_b = params["fc0"]["w"], params["fc0"]["b"]
    N = x_nchw.shape[0]

    # One-time input layout prep: NCHW -> zero-padded NHWC -> (N*Hp, Wp*Cin) slab
    l0 = cfg[0]
    x = jnp.transpose(x_nchw, (0, 2, 3, 1)).astype(jnp.float32)
    x = jnp.pad(x, ((0, 0), (pad, pad), (pad, pad), (0, 0)))
    x2d = x.reshape(N * l0["hp"], l0["hp"] * l0["cin"])

    def fused_kernel(*args):
        f32 = jnp.float32
        # ---- parse the flat argument list -------------------------------------
        x_ref = args[0]
        pos = 1
        lrefs = []
        for lc in cfg:
            d = dict(wb=args[pos], br=args[pos + 1], fold=args[pos + 2],
                     rep=args[pos + 3])
            pos += 4
            if lc["pool"]:
                d["se"] = args[pos]
                d["so"] = args[pos + 1]
                pos += 2
            lrefs.append(d)
        wfc_ref, bfc_ref = args[pos], args[pos + 1]
        out_ref = args[pos + 2]
        pad_refs = args[pos + 3:pos + 6]            # pad2, pad3, pad4 scratch

        # Zero the padded activation scratch: the border IS the conv zero-padding
        # (the interior is fully overwritten by the single slab store per image).
        for p in pad_refs:
            p[...] = jnp.zeros_like(p)

        in_refs = (x_ref,) + tuple(pad_refs)
        feats = None

        for li, lc in enumerate(cfg):
            K, Cout = lc["k"], lc["cout"]
            OH, OW, Hp = lc["oh"], lc["ow"], lc["hp"]
            M = N * Hp - (K - 1)                    # batched conv rows (incl. seam rows)
            wb = lrefs[li]["wb"]

            # ---- conv: K banded MXU dots over the whole batch ------------------
            xs_all = in_refs[li][...]               # (N*Hp, Wp*Cin)
            acc = jnp.dot(xs_all[0:M, :], wb[0], preferred_element_type=f32)
            for kh in range(1, K):
                acc = acc + jnp.dot(xs_all[kh:kh + M, :], wb[kh],
                                    preferred_element_type=f32)
            y = acc + lrefs[li]["br"][...]          # bias (pre-tiled to OW*Cout)
            y = jnp.where(y > 0.0, y, NEG_SLOPE * y)          # leaky_relu
            # Only rows [n*Hp, n*Hp+OH) are valid conv outputs; the (K-1) seam rows
            # between images are garbage and excluded from the BN statistics below.

            # ---- train-mode BN stats (single-pass), channel fold on the MXU ----
            s_tot = None
            q_tot = None
            for n in range(N):
                yv = y[n * Hp:n * Hp + OH, :]
                s = jnp.sum(yv, axis=0, keepdims=True)         # (1, OW*Cout)
                q = jnp.sum(yv * yv, axis=0, keepdims=True)
                s_tot = s if s_tot is None else s_tot + s
                q_tot = q if q_tot is None else q_tot + q
            sq_ch = jnp.dot(jnp.concatenate([s_tot, q_tot], axis=0),
                            lrefs[li]["fold"][...],
                            preferred_element_type=f32)        # (2, Cout)
            inv_m = 1.0 / float(N * OH * OW)
            mean = sq_ch[0:1, :] * inv_m
            var = jnp.maximum(sq_ch[1:2, :] * inv_m - mean * mean, 0.0)
            scale = jax.lax.rsqrt(var + BN_EPS)     # gamma = 1 (fresh BN) => scale > 0
            shift = -mean * scale                   # beta = 0

            # Broadcast scale/shift to slab width with one MXU dot (rep matrix).
            sc_sh_row = jnp.dot(jnp.concatenate([scale, shift], axis=0),
                                lrefs[li]["rep"][...],
                                preferred_element_type=f32)    # (2, tile_w*Cout)
            scale_row = sc_sh_row[0:1, :]
            shift_row = sc_sh_row[1:2, :]

            if not lc["pool"]:
                # BN applied to the whole slab; ONE lane-dense interior store/image.
                ynorm = y * scale_row + shift_row
                nxt = in_refs[li + 1]
                hp_n = cfg[li + 1]["hp"]
                for n in range(N):
                    nxt[n * hp_n + 1:n * hp_n + 1 + OH,
                        Cout:(OW + 1) * Cout] = ynorm[n * Hp:n * Hp + OH, :]
            else:
                PH, PW = OH // 2, OW // 2
                # vertical 2x1 max: full-row (lane-dense) maxima, stacked over batch
                rows = []
                for n in range(N):
                    for ph in range(PH):
                        i0 = n * Hp + 2 * ph
                        rows.append(jnp.maximum(y[i0:i0 + 1, :], y[i0 + 1:i0 + 2, :]))
                r = rows[0] if len(rows) == 1 else jnp.concatenate(rows, axis=0)
                # horizontal 1x2 max: stride-2*Cout lane gather done on the MXU
                se = lrefs[li]["se"][...]
                so = lrefs[li]["so"][...]
                pooled = jnp.maximum(
                    jnp.dot(r, se, preferred_element_type=f32),
                    jnp.dot(r, so, preferred_element_type=f32))   # (N*PH, PW*Cout)
                # BN affine commutes with max since scale > 0 (gamma = 1)
                pooled = pooled * scale_row + shift_row

                if li + 1 < len(cfg):
                    nxt = in_refs[li + 1]
                    hp_n = cfg[li + 1]["hp"]
                    for n in range(N):
                        nxt[n * hp_n + 1:n * hp_n + 1 + PH,
                            Cout:(PW + 1) * Cout] = pooled[n * PH:(n + 1) * PH, :]
                else:
                    # conv4: flatten (spatial is 1x1 here -> channel order) and keep
                    # the features in registers for fc0.
                    fs = [pooled[n * PH:(n + 1) * PH, :].reshape(1, PH * PW * Cout)
                          for n in range(N)]
                    feats = fs[0] if N == 1 else jnp.concatenate(fs, axis=0)

        # TODO(synk): nn.Dropout(p=0.1) train-mode mask -> identity here.
        out_ref[...] = (jnp.dot(feats, wfc_ref[...], preferred_element_type=f32)
                        + bfc_ref[...])

    # ---- assemble inputs / specs (order must match the kernel parsing above) ---
    inputs = [x2d]
    in_specs = [_full_spec(x2d.shape)]
    for li, lp in enumerate(layers):
        names = ["wband", "bias_row", "fold", "rep"]
        if cfg[li]["pool"]:
            names += ["sel_even", "sel_odd"]
        for name in names:
            arr = lp[name]
            inputs.append(arr)
            in_specs.append(_full_spec(arr.shape))
    inputs += [fc_w, fc_b]
    in_specs += [_full_spec(fc_w.shape), _full_spec(fc_b.shape)]

    scratch_shapes = [
        pltpu.VMEM((N * cfg[li]["hp"], cfg[li]["hp"] * cfg[li]["cin"]), jnp.float32)
        for li in (1, 2, 3)
    ]

    out = pl.pallas_call(
        fused_kernel,
        out_shape=jax.ShapeDtypeStruct((N, noutput), jnp.float32),
        grid=(1,),
        in_specs=in_specs,
        out_specs=_full_spec((N, noutput)),
        scratch_shapes=scratch_shapes,
        compiler_params=pltpu.CompilerParams(dimension_semantics=("arbitrary",)),
    )(*inputs)

    if noutput == 1:
        out = jnp.squeeze(out)
    return out


# ----------------------------------------------------------------------------
# Pure-XLA reference of the same forward (for a numeric cross-check)
# ----------------------------------------------------------------------------
def hkcnn_reference(x_nchw, params):
    cfg = params["cfg"]
    pad = params["padding"]
    x = jnp.transpose(x_nchw, (0, 2, 3, 1)).astype(jnp.float32)   # NHWC
    for li, lc in enumerate(cfg):
        w = params["layers"][li]["w_conv"]                        # (Cout, Cin, K, K)
        b = params["layers"][li]["b_conv"]
        y = jax.lax.conv_general_dilated(
            x, jnp.transpose(w, (2, 3, 1, 0)), (1, 1),
            [(pad, pad), (pad, pad)],
            dimension_numbers=("NHWC", "HWIO", "NHWC"),
            precision=jax.lax.Precision.HIGHEST) + b
        y = jnp.where(y > 0.0, y, NEG_SLOPE * y)
        mean = jnp.mean(y, axis=(0, 1, 2), keepdims=True)
        var = jnp.mean((y - mean) ** 2, axis=(0, 1, 2), keepdims=True)
        y = (y - mean) * jax.lax.rsqrt(var + BN_EPS)              # gamma=1, beta=0
        if lc["pool"]:
            y = jax.lax.reduce_window(y, -jnp.inf, jax.lax.max,
                                      (1, 2, 2, 1), (1, 2, 2, 1), "VALID")
        x = y
    flat = jnp.transpose(x, (0, 3, 1, 2)).reshape(x.shape[0], -1)
    out = jnp.dot(flat, params["fc0"]["w"],
                  precision=jax.lax.Precision.HIGHEST) + params["fc0"]["b"]
    if params["noutput"] == 1:
        out = jnp.squeeze(out)
    return out


if __name__ == "__main__":
    key = jax.random.PRNGKey(0)
    kp, kx = jax.random.split(key)

    depth, width, batch = 4, 16, 2                  # x: (2, 4, 16, 16), NCHW
    params = init_params(kp, depth, width)
    x = jax.random.normal(kx, (batch, depth, width, width), jnp.float32)

    fwd = jax.jit(lambda inp: hkcnn_forward(inp, params))
    out = jax.block_until_ready(fwd(x))

    assert out.shape == (batch, 2), out.shape
    assert bool(jnp.all(jnp.isfinite(out)))

    # cross-check the fused kernel against the pure-XLA reference
    ref = jax.block_until_ready(hkcnn_reference(x, params))
    assert bool(jnp.allclose(out, ref, rtol=5e-2, atol=5e-2)), (out, ref)

    print("KERNEL_OK")
</pallas_src>

<mosaic_0001>
module attributes {stable_mosaic.version = 11 : i64} {
  func.func @fused_kernel(%arg0: i32, %arg1: memref<36x72xf32, #tpu.memory_space<vmem>>, %arg2: memref<8x72x88xf32, #tpu.memory_space<vmem>>, %arg3: memref<1x88xf32, #tpu.memory_space<vmem>>, %arg4: memref<88x8xf32, #tpu.memory_space<vmem>>, %arg5: memref<8x88xf32, #tpu.memory_space<vmem>>, %arg6: memref<3x104x176xf32, #tpu.memory_space<vmem>>, %arg7: memref<1x176xf32, #tpu.memory_space<vmem>>, %arg8: memref<176x16xf32, #tpu.memory_space<vmem>>, %arg9: memref<16x80xf32, #tpu.memory_space<vmem>>, %arg10: memref<176x80xf32, #tpu.memory_space<vmem>>, %arg11: memref<176x80xf32, #tpu.memory_space<vmem>>, %arg12: memref<3x112x160xf32, #tpu.memory_space<vmem>>, %arg13: memref<1x160xf32, #tpu.memory_space<vmem>>, %arg14: memref<160x32xf32, #tpu.memory_space<vmem>>, %arg15: memref<32x64xf32, #tpu.memory_space<vmem>>, %arg16: memref<160x64xf32, #tpu.memory_space<vmem>>, %arg17: memref<160x64xf32, #tpu.memory_space<vmem>>, %arg18: memref<3x128x128xf32, #tpu.memory_space<vmem>>, %arg19: memref<1x128xf32, #tpu.memory_space<vmem>>, %arg20: memref<128x64xf32, #tpu.memory_space<vmem>>, %arg21: memref<64x64xf32, #tpu.memory_space<vmem>>, %arg22: memref<128x64xf32, #tpu.memory_space<vmem>>, %arg23: memref<128x64xf32, #tpu.memory_space<vmem>>, %arg24: memref<64x2xf32, #tpu.memory_space<vmem>>, %arg25: memref<1x2xf32, #tpu.memory_space<vmem>>, %arg26: memref<2x2xf32, #tpu.memory_space<vmem>>, %arg27: memref<26x104xf32, #tpu.memory_space<vmem>>, %arg28: memref<14x112xf32, #tpu.memory_space<vmem>>, %arg29: memref<8x128xf32, #tpu.memory_space<vmem>>) attributes {dimension_semantics = [#tpu.dimension_semantics<arbitrary>], iteration_bounds = array<i64: 1>, scalar_prefetch = 0 : i64, scratch_operands = 3 : i64, tpu.core_type = #tpu.core_type<tc>, window_params = [{pipeline_mode = #tpu.pipeline_mode<synchronous>, transform_indices = @transform_0, window_bounds = array<i64: 36, 72>}, {pipeline_mode = #tpu.pipeline_mode<synchronous>, transform_indices = @transform_1, window_bounds = array<i64: 8, 72, 88>}, {pipeline_mode = #tpu.pipeline_mode<synchronous>, transform_indices = @transform_2, window_bounds = array<i64: 1, 88>}, {pipeline_mode = #tpu.pipeline_mode<synchronous>, transform_indices = @transform_3, window_bounds = array<i64: 88, 8>}, {pipeline_mode = #tpu.pipeline_mode<synchronous>, transform_indices = @transform_4, window_bounds = array<i64: 8, 88>}, {pipeline_mode = #tpu.pipeline_mode<synchronous>, transform_indices = @transform_5, window_bounds = array<i64: 3, 104, 176>}, {pipeline_mode = #tpu.pipeline_mode<synchronous>, transform_indices = @transform_6, window_bounds = array<i64: 1, 176>}, {pipeline_mode = #tpu.pipeline_mode<synchronous>, transform_indices = @transform_7, window_bounds = array<i64: 176, 16>}, {pipeline_mode = #tpu.pipeline_mode<synchronous>, transform_indices = @transform_8, window_bounds = array<i64: 16, 80>}, {pipeline_mode = #tpu.pipeline_mode<synchronous>, transform_indices = @transform_9, window_bounds = array<i64: 176, 80>}, {pipeline_mode = #tpu.pipeline_mode<synchronous>, transform_indices = @transform_10, window_bounds = array<i64: 176, 80>}, {pipeline_mode = #tpu.pipeline_mode<synchronous>, transform_indices = @transform_11, window_bounds = array<i64: 3, 112, 160>}, {pipeline_mode = #tpu.pipeline_mode<synchronous>, transform_indices = @transform_12, window_bounds = array<i64: 1, 160>}, {pipeline_mode = #tpu.pipeline_mode<synchronous>, transform_indices = @transform_13, window_bounds = array<i64: 160, 32>}, {pipeline_mode = #tpu.pipeline_mode<synchronous>, transform_indices = @transform_14, window_bounds = array<i64: 32, 64>}, {pipeline_mode = #tpu.pipeline_mode<synchronous>, transform_indices = @transform_15, window_bounds = array<i64: 160, 64>}, {pipeline_mode = #tpu.pipeline_mode<synchronous>, transform_indices = @transform_16, window_bounds = array<i64: 160, 64>}, {pipeline_mode = #tpu.pipeline_mode<synchronous>, transform_indices = @transform_17, window_bounds = array<i64: 3, 128, 128>}, {pipeline_mode = #tpu.pipeline_mode<synchronous>, transform_indices = @transform_18, window_bounds = array<i64: 1, 128>}, {pipeline_mode = #tpu.pipeline_mode<synchronous>, transform_indices = @transform_19, window_bounds = array<i64: 128, 64>}, {pipeline_mode = #tpu.pipeline_mode<synchronous>, transform_indices = @transform_20, window_bounds = array<i64: 64, 64>}, {pipeline_mode = #tpu.pipeline_mode<synchronous>, transform_indices = @transform_21, window_bounds = array<i64: 128, 64>}, {pipeline_mode = #tpu.pipeline_mode<synchronous>, transform_indices = @transform_22, window_bounds = array<i64: 128, 64>}, {pipeline_mode = #tpu.pipeline_mode<synchronous>, transform_indices = @transform_23, window_bounds = array<i64: 64, 2>}, {pipeline_mode = #tpu.pipeline_mode<synchronous>, transform_indices = @transform_24, window_bounds = array<i64: 1, 2>}, {pipeline_mode = #tpu.pipeline_mode<synchronous>, transform_indices = @transform_25, window_bounds = array<i64: 2, 2>}]} {
    %cst = arith.constant 0.000000e+00 : f32
    %0 = vector.broadcast %cst : f32 to vector<26x104xf32>
    %c0 = arith.constant 0 : index
    %c0_0 = arith.constant 0 : index
    %1 = vector.load %arg27[%c0, %c0_0] : memref<26x104xf32, #tpu.memory_space<vmem>>, vector<26x104xf32>
    tpu.vector_store %arg27[%c0, %c0_0], %0 {strides = array<i32>} : memref<26x104xf32, #tpu.memory_space<vmem>>, vector<26x104xf32>,
    %cst_1 = arith.constant 0.000000e+00 : f32
    %2 = vector.broadcast %cst_1 : f32 to vector<14x112xf32>
    %c0_2 = arith.constant 0 : index
    %c0_3 = arith.constant 0 : index
    %3 = vector.load %arg28[%c0_2, %c0_3] : memref<14x112xf32, #tpu.memory_space<vmem>>, vector<14x112xf32>
    tpu.vector_store %arg28[%c0_2, %c0_3], %2 {strides = array<i32>} : memref<14x112xf32, #tpu.memory_space<vmem>>, vector<14x112xf32>,
    %cst_4 = arith.constant 0.000000e+00 : f32
    %4 = vector.broadcast %cst_4 : f32 to vector<8x128xf32>
    %c0_5 = arith.constant 0 : index
    %c0_6 = arith.constant 0 : index
    %5 = vector.load %arg29[%c0_5, %c0_6] : memref<8x128xf32, #tpu.memory_space<vmem>>, vector<8x128xf32>
    tpu.vector_store %arg29[%c0_5, %c0_6], %4 {strides = array<i32>} : memref<8x128xf32, #tpu.memory_space<vmem>>, vector<8x128xf32>,
    %c0_7 = arith.constant 0 : index
    %c0_8 = arith.constant 0 : index
    %6 = vector.load %arg1[%c0_7, %c0_8] : memref<36x72xf32, #tpu.memory_space<vmem>>, vector<36x72xf32>
    %7 = vector.extract_strided_slice %6 {offsets = [0, 0], sizes = [29, 72], strides = [1, 1]} : vector<36x72xf32> to vector<29x72xf32>
    %c0_9 = arith.constant 0 : index
    %c0_10 = arith.constant 0 : index
    %c0_11 = arith.constant 0 : index
    %8 = vector.load %arg2[%c0_9, %c0_10, %c0_11] : memref<8x72x88xf32, #tpu.memory_space<vmem>>, vector<1x72x88xf32>
    %9 = vector.shape_cast %8 : vector<1x72x88xf32> to vector<72x88xf32>
    %cst_12 = arith.constant dense<0.000000e+00> : vector<29x88xf32>
    %10 = tpu.matmul %7, %9, %cst_12 {dimension_numbers = #tpu.dot_dimension_numbers<[1], [0], [0], [1], [0, 0, 1, 1], [], []>} : vector<29x72xf32>, vector<72x88xf32>, vector<29x88xf32> -> vector<29x88xf32>
    %11 = vector.extract_strided_slice %6 {offsets = [1, 0], sizes = [29, 72], strides = [1, 1]} : vector<36x72xf32> to vector<29x72xf32>
    %c1 = arith.constant 1 : index
    %c0_13 = arith.constant 0 : index
    %c0_14 = arith.constant 0 : index
    %12 = vector.load %arg2[%c1, %c0_13, %c0_14] : memref<8x72x88xf32, #tpu.memory_space<vmem>>, vector<1x72x88xf32>
    %13 = vector.shape_cast %12 : vector<1x72x88xf32> to vector<72x88xf32>
    %cst_15 = arith.constant dense<0.000000e+00> : vector<29x88xf32>
    %14 = tpu.matmul %11, %13, %cst_15 {dimension_numbers = #tpu.dot_dimension_numbers<[1], [0], [0], [1], [0, 0, 1, 1], [], []>} : vector<29x72xf32>, vector<72x88xf32>, vector<29x88xf32> -> vector<29x88xf32>
    %15 = arith.addf %10, %14 : vector<29x88xf32>
    %16 = vector.extract_strided_slice %6 {offsets = [2, 0], sizes = [29, 72], strides = [1, 1]} : vector<36x72xf32> to vector<29x72xf32>
    %c2 = arith.constant 2 : index
    %c0_16 = arith.constant 0 : index
    %c0_17 = arith.constant 0 : index
    %17 = vector.load %arg2[%c2, %c0_16, %c0_17] : memref<8x72x88xf32, #tpu.memory_space<vmem>>, vector<1x72x88xf32>
    %18 = vector.shape_cast %17 : vector<1x72x88xf32> to vector<72x88xf32>
    %cst_18 = arith.constant dense<0.000000e+00> : vector<29x88xf32>
    %19 = tpu.matmul %16, %18, %cst_18 {dimension_numbers = #tpu.dot_dimension_numbers<[1], [0], [0], [1], [0, 0, 1, 1], [], []>} : vector<29x72xf32>, vector<72x88xf32>, vector<29x88xf32> -> vector<29x88xf32>
    %20 = arith.addf %15, %19 : vector<29x88xf32>
    %21 = vector.extract_strided_slice %6 {offsets = [3, 0], sizes = [29, 72], strides = [1, 1]} : vector<36x72xf32> to vector<29x72xf32>
    %c3 = arith.constant 3 : index
    %c0_19 = arith.constant 0 : index
    %c0_20 = arith.constant 0 : index
    %22 = vector.load %arg2[%c3, %c0_19, %c0_20] : memref<8x72x88xf32, #tpu.memory_space<vmem>>, vector<1x72x88xf32>
    %23 = vector.shape_cast %22 : vector<1x72x88xf32> to vector<72x88xf32>
    %cst_21 = arith.constant dense<0.000000e+00> : vector<29x88xf32>
    %24 = tpu.matmul %21, %23, %cst_21 {dimension_numbers = #tpu.dot_dimension_numbers<[1], [0], [0], [1], [0, 0, 1, 1], [], []>} : vector<29x72xf32>, vector<72x88xf32>, vector<29x88xf32> -> vector<29x88xf32>
    %25 = arith.addf %20, %24 : vector<29x88xf32>
    %26 = vector.extract_strided_slice %6 {offsets = [4, 0], sizes = [29, 72], strides = [1, 1]} : vector<36x72xf32> to vector<29x72xf32>
    %c4 = arith.constant 4 : index
    %c0_22 = arith.constant 0 : index
    %c0_23 = arith.constant 0 : index
    %27 = vector.load %arg2[%c4, %c0_22, %c0_23] : memref<8x72x88xf32, #tpu.memory_space<vmem>>, vector<1x72x88xf32>
    %28 = vector.shape_cast %27 : vector<1x72x88xf32> to vector<72x88xf32>
    %cst_24 = arith.constant dense<0.000000e+00> : vector<29x88xf32>
    %29 = tpu.matmul %26, %28, %cst_24 {dimension_numbers = #tpu.dot_dimension_numbers<[1], [0], [0], [1], [0, 0, 1, 1], [], []>} : vector<29x72xf32>, vector<72x88xf32>, vector<29x88xf32> -> vector<29x88xf32>
    %30 = arith.addf %25, %29 : vector<29x88xf32>
    %31 = vector.extract_strided_slice %6 {offsets = [5, 0], sizes = [29, 72], strides = [1, 1]} : vector<36x72xf32> to vector<29x72xf32>
    %c5 = arith.constant 5 : index
    %c0_25 = arith.constant 0 : index
    %c0_26 = arith.constant 0 : index
    %32 = vector.load %arg2[%c5, %c0_25, %c0_26] : memref<8x72x88xf32, #tpu.memory_space<vmem>>, vector<1x72x88xf32>
    %33 = vector.shape_cast %32 : vector<1x72x88xf32> to vector<72x88xf32>
    %cst_27 = arith.constant dense<0.000000e+00> : vector<29x88xf32>
    %34 = tpu.matmul %31, %33, %cst_27 {dimension_numbers = #tpu.dot_dimension_numbers<[1], [0], [0], [1], [0, 0, 1, 1], [], []>} : vector<29x72xf32>, vector<72x88xf32>, vector<29x88xf32> -> vector<29x88xf32>
    %35 = arith.addf %30, %34 : vector<29x88xf32>
    %36 = vector.extract_strided_slice %6 {offsets = [6, 0], sizes = [29, 72], strides = [1, 1]} : vector<36x72xf32> to vector<29x72xf32>
    %c6 = arith.constant 6 : index
    %c0_28 = arith.constant 0 : index
    %c0_29 = arith.constant 0 : index
    %37 = vector.load %arg2[%c6, %c0_28, %c0_29] : memref<8x72x88xf32, #tpu.memory_space<vmem>>, vector<1x72x88xf32>
    %38 = vector.shape_cast %37 : vector<1x72x88xf32> to vector<72x88xf32>
    %cst_30 = arith.constant dense<0.000000e+00> : vector<29x88xf32>
    %39 = tpu.matmul %36, %38, %cst_30 {dimension_numbers = #tpu.dot_dimension_numbers<[1], [0], [0], [1], [0, 0, 1, 1], [], []>} : vector<29x72xf32>, vector<72x88xf32>, vector<29x88xf32> -> vector<29x88xf32>
    %40 = arith.addf %35, %39 : vector<29x88xf32>
    %41 = vector.extract_strided_slice %6 {offsets = [7, 0], sizes = [29, 72], strides = [1, 1]} : vector<36x72xf32> to vector<29x72xf32>
    %c7 = arith.constant 7 : index
    %c0_31 = arith.constant 0 : index
    %c0_32 = arith.constant 0 : index
    %42 = vector.load %arg2[%c7, %c0_31, %c0_32] : memref<8x72x88xf32, #tpu.memory_space<vmem>>, vector<1x72x88xf32>
    %43 = vector.shape_cast %42 : vector<1x72x88xf32> to vector<72x88xf32>
    %cst_33 = arith.constant dense<0.000000e+00> : vector<29x88xf32>
    %44 = tpu.matmul %41, %43, %cst_33 {dimension_numbers = #tpu.dot_dimension_numbers<[1], [0], [0], [1], [0, 0, 1, 1], [], []>} : vector<29x72xf32>, vector<72x88xf32>, vector<29x88xf32> -> vector<29x88xf32>
    %45 = arith.addf %40, %44 : vector<29x88xf32>
    %c0_34 = arith.constant 0 : index
    %c0_35 = arith.constant 0 : index
    %46 = vector.load %arg3[%c0_34, %c0_35] : memref<1x88xf32, #tpu.memory_space<vmem>>, vector<1x88xf32>
    %47 = vector.broadcast %46 : vector<1x88xf32> to vector<29x88xf32>
    %48 = arith.addf %45, %47 : vector<29x88xf32>
    %cst_36 = arith.constant 0.000000e+00 : f32
    %49 = vector.broadcast %cst_36 : f32 to vector<29x88xf32>
    %50 = arith.cmpf ogt, %48, %49 : vector<29x88xf32>
    %cst_37 = arith.constant 0.00999999977 : f32
    %51 = vector.broadcast %cst_37 : f32 to vector<29x88xf32>
    %52 = arith.mulf %51, %48 : vector<29x88xf32>
    %53 = arith.select %50, %48, %52 : vector<29x88xi1>, vector<29x88xf32>
    %54 = vector.extract_strided_slice %53 {offsets = [0, 0], sizes = [11, 88], strides = [1, 1]} : vector<29x88xf32> to vector<11x88xf32>
    %cst_38 = arith.constant dense<0.000000e+00> : vector<88xf32>
    %55 = vector.multi_reduction <add>, %54, %cst_38 [0] : vector<11x88xf32> to vector<88xf32>
    %56 = vector.shape_cast %55 : vector<88xf32> to vector<1x88xf32>
    %57 = arith.mulf %54, %54 : vector<11x88xf32>
    %cst_39 = arith.constant dense<0.000000e+00> : vector<88xf32>
    %58 = vector.multi_reduction <add>, %57, %cst_39 [0] : vector<11x88xf32> to vector<88xf32>
    %59 = vector.shape_cast %58 : vector<88xf32> to vector<1x88xf32>
    %60 = vector.extract_strided_slice %53 {offsets = [18, 0], sizes = [11, 88], strides = [1, 1]} : vector<29x88xf32> to vector<11x88xf32>
    %cst_40 = arith.constant dense<0.000000e+00> : vector<88xf32>
    %61 = vector.multi_reduction <add>, %60, %cst_40 [0] : vector<11x88xf32> to vector<88xf32>
    %62 = vector.shape_cast %61 : vector<88xf32> to vector<1x88xf32>
    %63 = arith.mulf %60, %60 : vector<11x88xf32>
    %cst_41 = arith.constant dense<0.000000e+00> : vector<88xf32>
    %64 = vector.multi_reduction <add>, %63, %cst_41 [0] : vector<11x88xf32> to vector<88xf32>
    %65 = vector.shape_cast %64 : vector<88xf32> to vector<1x88xf32>
    %66 = arith.addf %56, %62 : vector<1x88xf32>
    %67 = arith.addf %59, %65 : vector<1x88xf32>
    %68 = tpu.concatenate %66, %67 in 0 : vector<1x88xf32>, vector<1x88xf32> -> vector<2x88xf32>
    %c0_42 = arith.constant 0 : index
    %c0_43 = arith.constant 0 : index
    %69 = vector.load %arg4[%c0_42, %c0_43] : memref<88x8xf32, #tpu.memory_space<vmem>>, vector<88x8xf32>
    %cst_44 = arith.constant dense<0.000000e+00> : vector<2x8xf32>
    %70 = tpu.matmul %68, %69, %cst_44 {dimension_numbers = #tpu.dot_dimension_numbers<[1], [0], [0], [1], [0, 0, 1, 1], [], []>} : vector<2x88xf32>, vector<88x8xf32>, vector<2x8xf32> -> vector<2x8xf32>
    %71 = vector.extract_strided_slice %70 {offsets = [0, 0], sizes = [1, 8], strides = [1, 1]} : vector<2x8xf32> to vector<1x8xf32>
    %cst_45 = arith.constant 0.00413223123 : f32
    %72 = vector.broadcast %cst_45 : f32 to vector<1x8xf32>
    %73 = arith.mulf %71, %72 : vector<1x8xf32>
    %74 = vector.extract_strided_slice %70 {offsets = [1, 0], sizes = [1, 8], strides = [1, 1]} : vector<2x8xf32> to vector<1x8xf32>
    %cst_46 = arith.constant 0.00413223123 : f32
    %75 = vector.broadcast %cst_46 : f32 to vector<1x8xf32>
    %76 = arith.mulf %74, %75 : vector<1x8xf32>
    %77 = arith.mulf %73, %73 : vector<1x8xf32>
    %78 = arith.subf %76, %77 : vector<1x8xf32>
    %cst_47 = arith.constant 0.000000e+00 : f32
    %79 = vector.broadcast %cst_47 : f32 to vector<1x8xf32>
    %80 = arith.maximumf %78, %79 : vector<1x8xf32>
    %cst_48 = arith.constant 9.99999974E-6 : f32
    %81 = vector.broadcast %cst_48 : f32 to vector<1x8xf32>
    %82 = arith.addf %80, %81 : vector<1x8xf32>
    %83 = math.rsqrt %82 : vector<1x8xf32>
    %cst_49 = arith.constant 0.000000e+00 : f32
    %84 = vector.broadcast %cst_49 : f32 to vector<1x8xf32>
    %85 = arith.subf %84, %73 : vector<1x8xf32>
    %86 = arith.mulf %85, %83 : vector<1x8xf32>
    %87 = tpu.concatenate %83, %86 in 0 : vector<1x8xf32>, vector<1x8xf32> -> vector<2x8xf32>
    %c0_50 = arith.constant 0 : index
    %c0_51 = arith.constant 0 : index
    %88 = vector.load %arg5[%c0_50, %c0_51] : memref<8x88xf32, #tpu.memory_space<vmem>>, vector<8x88xf32>
    %cst_52 = arith.constant dense<0.000000e+00> : vector<2x88xf32>
    %89 = tpu.matmul %87, %88, %cst_52 {dimension_numbers = #tpu.dot_dimension_numbers<[1], [0], [0], [1], [0, 0, 1, 1], [], []>} : vector<2x8xf32>, vector<8x88xf32>, vector<2x88xf32> -> vector<2x88xf32>
    %90 = vector.extract_strided_slice %89 {offsets = [0, 0], sizes = [1, 88], strides = [1, 1]} : vector<2x88xf32> to vector<1x88xf32>
    %91 = vector.extract_strided_slice %89 {offsets = [1, 0], sizes = [1, 88], strides = [1, 1]} : vector<2x88xf32> to vector<1x88xf32>
    %92 = vector.broadcast %90 : vector<1x88xf32> to vector<29x88xf32>
    %93 = arith.mulf %53, %92 : vector<29x88xf32>
    %94 = vector.broadcast %91 : vector<1x88xf32> to vector<29x88xf32>
    %95 = arith.addf %93, %94 : vector<29x88xf32>
    %96 = vector.extract_strided_slice %95 {offsets = [0, 0], sizes = [11, 88], strides = [1, 1]} : vector<29x88xf32> to vector<11x88xf32>
    %c1_53 = arith.constant 1 : index
    %c8 = arith.constant 8 : index
    %97 = vector.load %arg27[%c1_53, %c8] : memref<26x104xf32, #tpu.memory_space<vmem>>, vector<11x88xf32>
    tpu.vector_store %arg27[%c1_53, %c8], %96 {strides = array<i32>} : memref<26x104xf32, #tpu.memory_space<vmem>>, vector<11x88xf32>,
    %98 = vector.extract_strided_slice %95 {offsets = [18, 0], sizes = [11, 88], strides = [1, 1]} : vector<29x88xf32> to vector<11x88xf32>
    %c14 = arith.constant 14 : index
    %c8_54 = arith.constant 8 : index
    %99 = vector.load %arg27[%c14, %c8_54] : memref<26x104xf32, #tpu.memory_space<vmem>>, vector<11x88xf32>
    tpu.vector_store %arg27[%c14, %c8_54], %98 {strides = array<i32>} : memref<26x104xf32, #tpu.memory_space<vmem>>, vector<11x88xf32>,
    %c0_55 = arith.constant 0 : index
    %c0_56 = arith.constant 0 : index
    %100 = vector.load %arg27[%c0_55, %c0_56] : memref<26x104xf32, #tpu.memory_space<vmem>>, vector<26x104xf32>
    %101 = vector.extract_strided_slice %100 {offsets = [0, 0], sizes = [24, 104], strides = [1, 1]} : vector<26x104xf32> to vector<24x104xf32>
    %c0_57 = arith.constant 0 : index
    %c0_58 = arith.constant 0 : index
    %c0_59 = arith.constant 0 : index
    %102 = vector.load %arg6[%c0_57, %c0_58, %c0_59] : memref<3x104x176xf32, #tpu.memory_space<vmem>>, vector<1x104x176xf32>
    %103 = vector.shape_cast %102 : vector<1x104x176xf32> to vector<104x176xf32>
    %cst_60 = arith.constant dense<0.000000e+00> : vector<24x176xf32>
    %104 = tpu.matmul %101, %103, %cst_60 {dimension_numbers = #tpu.dot_dimension_numbers<[1], [0], [0], [1], [0, 0, 1, 1], [], []>} : vector<24x104xf32>, vector<104x176xf32>, vector<24x176xf32> -> vector<24x176xf32>
    %105 = vector.extract_strided_slice %100 {offsets = [1, 0], sizes = [24, 104], strides = [1, 1]} : vector<26x104xf32> to vector<24x104xf32>
    %c1_61 = arith.constant 1 : index
    %c0_62 = arith.constant 0 : index
    %c0_63 = arith.constant 0 : index
    %106 = vector.load %arg6[%c1_61, %c0_62, %c0_63] : memref<3x104x176xf32, #tpu.memory_space<vmem>>, vector<1x104x176xf32>
    %107 = vector.shape_cast %106 : vector<1x104x176xf32> to vector<104x176xf32>
    %cst_64 = arith.constant dense<0.000000e+00> : vector<24x176xf32>
    %108 = tpu.matmul %105, %107, %cst_64 {dimension_numbers = #tpu.dot_dimension_numbers<[1], [0], [0], [1], [0, 0, 1, 1], [], []>} : vector<24x104xf32>, vector<104x176xf32>, vector<24x176xf32> -> vector<24x176xf32>
    %109 = arith.addf %104, %108 : vector<24x176xf32>
    %110 = vector.extract_strided_slice %100 {offsets = [2, 0], sizes = [24, 104], strides = [1, 1]} : vector<26x104xf32> to vector<24x104xf32>
    %c2_65 = arith.constant 2 : index
    %c0_66 = arith.constant 0 : index
    %c0_67 = arith.constant 0 : index
    %111 = vector.load %arg6[%c2_65, %c0_66, %c0_67] : memref<3x104x176xf32, #tpu.memory_space<vmem>>, vector<1x104x176xf32>
    %112 = vector.shape_cast %111 : vector<1x104x176xf32> to vector<104x176xf32>
    %cst_68 = arith.constant dense<0.000000e+00> : vector<24x176xf32>
    %113 = tpu.matmul %110, %112, %cst_68 {dimension_numbers = #tpu.dot_dimension_numbers<[1], [0], [0], [1], [0, 0, 1, 1], [], []>} : vector<24x104xf32>, vector<104x176xf32>, vector<24x176xf32> -> vector<24x176xf32>
    %114 = arith.addf %109, %113 : vector<24x176xf32>
    %c0_69 = arith.constant 0 : index
    %c0_70 = arith.constant 0 : index
    %115 = vector.load %arg7[%c0_69, %c0_70] : memref<1x176xf32, #tpu.memory_space<vmem>>, vector<1x176xf32>
    %116 = vector.broadcast %115 : vector<1x176xf32> to vector<24x176xf32>
    %117 = arith.addf %114, %116 : vector<24x176xf32>
    %cst_71 = arith.constant 0.000000e+00 : f32
    %118 = vector.broadcast %cst_71 : f32 to vector<24x176xf32>
    %119 = arith.cmpf ogt, %117, %118 : vector<24x176xf32>
    %cst_72 = arith.constant 0.00999999977 : f32
    %120 = vector.broadcast %cst_72 : f32 to vector<24x176xf32>
    %121 = arith.mulf %120, %117 : vector<24x176xf32>
    %122 = arith.select %119, %117, %121 : vector<24x176xi1>, vector<24x176xf32>
    %123 = vector.extract_strided_slice %122 {offsets = [0, 0], sizes = [11, 176], strides = [1, 1]} : vector<24x176xf32> to vector<11x176xf32>
    %cst_73 = arith.constant dense<0.000000e+00> : vector<176xf32>
    %124 = vector.multi_reduction <add>, %123, %cst_73 [0] : vector<11x176xf32> to vector<176xf32>
    %125 = vector.shape_cast %124 : vector<176xf32> to vector<1x176xf32>
    %126 = arith.mulf %123, %123 : vector<11x176xf32>
    %cst_74 = arith.constant dense<0.000000e+00> : vector<176xf32>
    %127 = vector.multi_reduction <add>, %126, %cst_74 [0] : vector<11x176xf32> to vector<176xf32>
    %128 = vector.shape_cast %127 : vector<176xf32> to vector<1x176xf32>
    %129 = vector.extract_strided_slice %122 {offsets = [13, 0], sizes = [11, 176], strides = [1, 1]} : vector<24x176xf32> to vector<11x176xf32>
    %cst_75 = arith.constant dense<0.000000e+00> : vector<176xf32>
    %130 = vector.multi_reduction <add>, %129, %cst_75 [0] : vector<11x176xf32> to vector<176xf32>
    %131 = vector.shape_cast %130 : vector<176xf32> to vector<1x176xf32>
    %132 = arith.mulf %129, %129 : vector<11x176xf32>
    %cst_76 = arith.constant dense<0.000000e+00> : vector<176xf32>
    %133 = vector.multi_reduction <add>, %132, %cst_76 [0] : vector<11x176xf32> to vector<176xf32>
    %134 = vector.shape_cast %133 : vector<176xf32> to vector<1x176xf32>
    %135 = arith.addf %125, %131 : vector<1x176xf32>
    %136 = arith.addf %128, %134 : vector<1x176xf32>
    %137 = tpu.concatenate %135, %136 in 0 : vector<1x176xf32>, vector<1x176xf32> -> vector<2x176xf32>
    %c0_77 = arith.constant 0 : index
    %c0_78 = arith.constant 0 : index
    %138 = vector.load %arg8[%c0_77, %c0_78] : memref<176x16xf32, #tpu.memory_space<vmem>>, vector<176x16xf32>
    %cst_79 = arith.constant dense<0.000000e+00> : vector<2x16xf32>
    %139 = tpu.matmul %137, %138, %cst_79 {dimension_numbers = #tpu.dot_dimension_numbers<[1], [0], [0], [1], [0, 0, 1, 1], [], []>} : vector<2x176xf32>, vector<176x16xf32>, vector<2x16xf32> -> vector<2x16xf32>
    %140 = vector.extract_strided_slice %139 {offsets = [0, 0], sizes = [1, 16], strides = [1, 1]} : vector<2x16xf32> to vector<1x16xf32>
    %cst_80 = arith.constant 0.00413223123 : f32
    %141 = vector.broadcast %cst_80 : f32 to vector<1x16xf32>
    %142 = arith.mulf %140, %141 : vector<1x16xf32>
    %143 = vector.extract_strided_slice %139 {offsets = [1, 0], sizes = [1, 16], strides = [1, 1]} : vector<2x16xf32> to vector<1x16xf32>
    %cst_81 = arith.constant 0.00413223123 : f32
    %144 = vector.broadcast %cst_81 : f32 to vector<1x16xf32>
    %145 = arith.mulf %143, %144 : vector<1x16xf32>
    %146 = arith.mulf %142, %142 : vector<1x16xf32>
    %147 = arith.subf %145, %146 : vector<1x16xf32>
    %cst_82 = arith.constant 0.000000e+00 : f32
    %148 = vector.broadcast %cst_82 : f32 to vector<1x16xf32>
    %149 = arith.maximumf %147, %148 : vector<1x16xf32>
    %cst_83 = arith.constant 9.99999974E-6 : f32
    %150 = vector.broadcast %cst_83 : f32 to vector<1x16xf32>
    %151 = arith.addf %149, %150 : vector<1x16xf32>
    %152 = math.rsqrt %151 : vector<1x16xf32>
    %cst_84 = arith.constant 0.000000e+00 : f32
    %153 = vector.broadcast %cst_84 : f32 to vector<1x16xf32>
    %154 = arith.subf %153, %142 : vector<1x16xf32>
    %155 = arith.mulf %154, %152 : vector<1x16xf32>
    %156 = tpu.concatenate %152, %155 in 0 : vector<1x16xf32>, vector<1x16xf32> -> vector<2x16xf32>
    %c0_85 = arith.constant 0 : index
    %c0_86 = arith.constant 0 : index
    %157 = vector.load %arg9[%c0_85, %c0_86] : memref<16x80xf32, #tpu.memory_space<vmem>>, vector<16x80xf32>
    %cst_87 = arith.constant dense<0.000000e+00> : vector<2x80xf32>
    %158 = tpu.matmul %156, %157, %cst_87 {dimension_numbers = #tpu.dot_dimension_numbers<[1], [0], [0], [1], [0, 0, 1, 1], [], []>} : vector<2x16xf32>, vector<16x80xf32>, vector<2x80xf32> -> vector<2x80xf32>
    %159 = vector.extract_strided_slice %158 {offsets = [0, 0], sizes = [1, 80], strides = [1, 1]} : vector<2x80xf32> to vector<1x80xf32>
    %160 = vector.extract_strided_slice %158 {offsets = [1, 0], sizes = [1, 80], strides = [1, 1]} : vector<2x80xf32> to vector<1x80xf32>
    %161 = vector.extract_strided_slice %122 {offsets = [0, 0], sizes = [1, 176], strides = [1, 1]} : vector<24x176xf32> to vector<1x176xf32>
    %162 = vector.extract_strided_slice %122 {offsets = [1, 0], sizes = [1, 176], strides = [1, 1]} : vector<24x176xf32> to vector<1x176xf32>
    %163 = arith.maximumf %161, %162 : vector<1x176xf32>
    %164 = vector.extract_strided_slice %122 {offsets = [2, 0], sizes = [1, 176], strides = [1, 1]} : vector<24x176xf32> to vector<1x176xf32>
    %165 = vector.extract_strided_slice %122 {offsets = [3, 0], sizes = [1, 176], strides = [1, 1]} : vector<24x176xf32> to vector<1x176xf32>
    %166 = arith.maximumf %164, %165 : vector<1x176xf32>
    %167 = vector.extract_strided_slice %122 {offsets = [4, 0], sizes = [1, 176], strides = [1, 1]} : vector<24x176xf32> to vector<1x176xf32>
    %168 = vector.extract_strided_slice %122 {offsets = [5, 0], sizes = [1, 176], strides = [1, 1]} : vector<24x176xf32> to vector<1x176xf32>
    %169 = arith.maximumf %167, %168 : vector<1x176xf32>
    %170 = vector.extract_strided_slice %122 {offsets = [6, 0], sizes = [1, 176], strides = [1, 1]} : vector<24x176xf32> to vector<1x176xf32>
    %171 = vector.extract_strided_slice %122 {offsets = [7, 0], sizes = [1, 176], strides = [1, 1]} : vector<24x176xf32> to vector<1x176xf32>
    %172 = arith.maximumf %170, %171 : vector<1x176xf32>
    %173 = vector.extract_strided_slice %122 {offsets = [8, 0], sizes = [1, 176], strides = [1, 1]} : vector<24x176xf32> to vector<1x176xf32>
    %174 = vector.extract_strided_slice %122 {offsets = [9, 0], sizes = [1, 176], strides = [1, 1]} : vector<24x176xf32> to vector<1x176xf32>
    %175 = arith.maximumf %173, %174 : vector<1x176xf32>
    %176 = vector.extract_strided_slice %122 {offsets = [13, 0], sizes = [1, 176], strides = [1, 1]} : vector<24x176xf32> to vector<1x176xf32>
    %177 = vector.extract_strided_slice %122 {offsets = [14, 0], sizes = [1, 176], strides = [1, 1]} : vector<24x176xf32> to vector<1x176xf32>
    %178 = arith.maximumf %176, %177 : vector<1x176xf32>
    %179 = vector.extract_strided_slice %122 {offsets = [15, 0], sizes = [1, 176], strides = [1, 1]} : vector<24x176xf32> to vector<1x176xf32>
    %180 = vector.extract_strided_slice %122 {offsets = [16, 0], sizes = [1, 176], strides = [1, 1]} : vector<24x176xf32> to vector<1x176xf32>
    %181 = arith.maximumf %179, %180 : vector<1x176xf32>
    %182 = vector.extract_strided_slice %122 {offsets = [17, 0], sizes = [1, 176], strides = [1, 1]} : vector<24x176xf32> to vector<1x176xf32>
    %183 = vector.extract_strided_slice %122 {offsets = [18, 0], sizes = [1, 176], strides = [1, 1]} : vector<24x176xf32> to vector<1x176xf32>
    %184 = arith.maximumf %182, %183 : vector<1x176xf32>
    %185 = vector.extract_strided_slice %122 {offsets = [19, 0], sizes = [1, 176], strides = [1, 1]} : vector<24x176xf32> to vector<1x176xf32>
    %186 = vector.extract_strided_slice %122 {offsets = [20, 0], sizes = [1, 176], strides = [1, 1]} : vector<24x176xf32> to vector<1x176xf32>
    %187 = arith.maximumf %185, %186 : vector<1x176xf32>
    %188 = vector.extract_strided_slice %122 {offsets = [21, 0], sizes = [1, 176], strides = [1, 1]} : vector<24x176xf32> to vector<1x176xf32>
    %189 = vector.extract_strided_slice %122 {offsets = [22, 0], sizes = [1, 176], strides = [1, 1]} : vector<24x176xf32> to vector<1x176xf32>
    %190 = arith.maximumf %188, %189 : vector<1x176xf32>
    %191 = tpu.concatenate %163, %166, %169, %172, %175, %178, %181, %184, %187, %190 in 0 : vector<1x176xf32>, vector<1x176xf32>, vector<1x176xf32>, vector<1x176xf32>, vector<1x176xf32>, vector<1x176xf32>, vector<1x176xf32>, vector<1x176xf32>, vector<1x176xf32>, vector<1x176xf32> -> vector<10x176xf32>
    %c0_88 = arith.constant 0 : index
    %c0_89 = arith.constant 0 : index
    %192 = vector.load %arg10[%c0_88, %c0_89] : memref<176x80xf32, #tpu.memory_space<vmem>>, vector<176x80xf32>
    %c0_90 = arith.constant 0 : index
    %c0_91 = arith.constant 0 : index
    %193 = vector.load %arg11[%c0_90, %c0_91] : memref<176x80xf32, #tpu.memory_space<vmem>>, vector<176x80xf32>
    %cst_92 = arith.constant dense<0.000000e+00> : vector<10x80xf32>
    %194 = tpu.matmul %191, %192, %cst_92 {dimension_numbers = #tpu.dot_dimension_numbers<[1], [0], [0], [1], [0, 0, 1, 1], [], []>} : vector<10x176xf32>, vector<176x80xf32>, vector<10x80xf32> -> vector<10x80xf32>
    %cst_93 = arith.constant dense<0.000000e+00> : vector<10x80xf32>
    %195 = tpu.matmul %191, %193, %cst_93 {dimension_numbers = #tpu.dot_dimension_numbers<[1], [0], [0], [1], [0, 0, 1, 1], [], []>} : vector<10x176xf32>, vector<176x80xf32>, vector<10x80xf32> -> vector<10x80xf32>
    %196 = arith.maximumf %194, %195 : vector<10x80xf32>
    %197 = vector.broadcast %159 : vector<1x80xf32> to vector<10x80xf32>
    %198 = arith.mulf %196, %197 : vector<10x80xf32>
    %199 = vector.broadcast %160 : vector<1x80xf32> to vector<10x80xf32>
    %200 = arith.addf %198, %199 : vector<10x80xf32>
    %201 = vector.extract_strided_slice %200 {offsets = [0, 0], sizes = [5, 80], strides = [1, 1]} : vector<10x80xf32> to vector<5x80xf32>
    %c1_94 = arith.constant 1 : index
    %c16 = arith.constant 16 : index
    %202 = vector.load %arg28[%c1_94, %c16] : memref<14x112xf32, #tpu.memory_space<vmem>>, vector<5x80xf32>
    tpu.vector_store %arg28[%c1_94, %c16], %201 {strides = array<i32>} : memref<14x112xf32, #tpu.memory_space<vmem>>, vector<5x80xf32>,
    %203 = vector.extract_strided_slice %200 {offsets = [5, 0], sizes = [5, 80], strides = [1, 1]} : vector<10x80xf32> to vector<5x80xf32>
    %c8_95 = arith.constant 8 : index
    %c16_96 = arith.constant 16 : index
    %204 = vector.load %arg28[%c8_95, %c16_96] : memref<14x112xf32, #tpu.memory_space<vmem>>, vector<5x80xf32>
    tpu.vector_store %arg28[%c8_95, %c16_96], %203 {strides = array<i32>} : memref<14x112xf32, #tpu.memory_space<vmem>>, vector<5x80xf32>,
    %c0_97 = arith.constant 0 : index
    %c0_98 = arith.constant 0 : index
    %205 = vector.load %arg28[%c0_97, %c0_98] : memref<14x112xf32, #tpu.memory_space<vmem>>, vector<14x112xf32>
    %206 = vector.extract_strided_slice %205 {offsets = [0, 0], sizes = [12, 112], strides = [1, 1]} : vector<14x112xf32> to vector<12x112xf32>
    %c0_99 = arith.constant 0 : index
    %c0_100 = arith.constant 0 : index
    %c0_101 = arith.constant 0 : index
    %207 = vector.load %arg12[%c0_99, %c0_100, %c0_101] : memref<3x112x160xf32, #tpu.memory_space<vmem>>, vector<1x112x160xf32>
    %208 = vector.shape_cast %207 : vector<1x112x160xf32> to vector<112x160xf32>
    %cst_102 = arith.constant dense<0.000000e+00> : vector<12x160xf32>
    %209 = tpu.matmul %206, %208, %cst_102 {dimension_numbers = #tpu.dot_dimension_numbers<[1], [0], [0], [1], [0, 0, 1, 1], [], []>} : vector<12x112xf32>, vector<112x160xf32>, vector<12x160xf32> -> vector<12x160xf32>
    %210 = vector.extract_strided_slice %205 {offsets = [1, 0], sizes = [12, 112], strides = [1, 1]} : vector<14x112xf32> to vector<12x112xf32>
    %c1_103 = arith.constant 1 : index
    %c0_104 = arith.constant 0 : index
    %c0_105 = arith.constant 0 : index
    %211 = vector.load %arg12[%c1_103, %c0_104, %c0_105] : memref<3x112x160xf32, #tpu.memory_space<vmem>>, vector<1x112x160xf32>
    %212 = vector.shape_cast %211 : vector<1x112x160xf32> to vector<112x160xf32>
    %cst_106 = arith.constant dense<0.000000e+00> : vector<12x160xf32>
    %213 = tpu.matmul %210, %212, %cst_106 {dimension_numbers = #tpu.dot_dimension_numbers<[1], [0], [0], [1], [0, 0, 1, 1], [], []>} : vector<12x112xf32>, vector<112x160xf32>, vector<12x160xf32> -> vector<12x160xf32>
    %214 = arith.addf %209, %213 : vector<12x160xf32>
    %215 = vector.extract_strided_slice %205 {offsets = [2, 0], sizes = [12, 112], strides = [1, 1]} : vector<14x112xf32> to vector<12x112xf32>
    %c2_107 = arith.constant 2 : index
    %c0_108 = arith.constant 0 : index
    %c0_109 = arith.constant 0 : index
    %216 = vector.load %arg12[%c2_107, %c0_108, %c0_109] : memref<3x112x160xf32, #tpu.memory_space<vmem>>, vector<1x112x160xf32>
    %217 = vector.shape_cast %216 : vector<1x112x160xf32> to vector<112x160xf32>
    %cst_110 = arith.constant dense<0.000000e+00> : vector<12x160xf32>
    %218 = tpu.matmul %215, %217, %cst_110 {dimension_numbers = #tpu.dot_dimension_numbers<[1], [0], [0], [1], [0, 0, 1, 1], [], []>} : vector<12x112xf32>, vector<112x160xf32>, vector<12x160xf32> -> vector<12x160xf32>
    %219 = arith.addf %214, %218 : vector<12x160xf32>
    %c0_111 = arith.constant 0 : index
    %c0_112 = arith.constant 0 : index
    %220 = vector.load %arg13[%c0_111, %c0_112] : memref<1x160xf32, #tpu.memory_space<vmem>>, vector<1x160xf32>
    %221 = vector.broadcast %220 : vector<1x160xf32> to vector<12x160xf32>
    %222 = arith.addf %219, %221 : vector<12x160xf32>
    %cst_113 = arith.constant 0.000000e+00 : f32
    %223 = vector.broadcast %cst_113 : f32 to vector<12x160xf32>
    %224 = arith.cmpf ogt, %222, %223 : vector<12x160xf32>
    %cst_114 = arith.constant 0.00999999977 : f32
    %225 = vector.broadcast %cst_114 : f32 to vector<12x160xf32>
    %226 = arith.mulf %225, %222 : vector<12x160xf32>
    %227 = arith.select %224, %222, %226 : vector<12x160xi1>, vector<12x160xf32>
    %228 = vector.extract_strided_slice %227 {offsets = [0, 0], sizes = [5, 160], strides = [1, 1]} : vector<12x160xf32> to vector<5x160xf32>
    %cst_115 = arith.constant dense<0.000000e+00> : vector<160xf32>
    %229 = vector.multi_reduction <add>, %228, %cst_115 [0] : vector<5x160xf32> to vector<160xf32>
    %230 = vector.shape_cast %229 : vector<160xf32> to vector<1x160xf32>
    %231 = arith.mulf %228, %228 : vector<5x160xf32>
    %cst_116 = arith.constant dense<0.000000e+00> : vector<160xf32>
    %232 = vector.multi_reduction <add>, %231, %cst_116 [0] : vector<5x160xf32> to vector<160xf32>
    %233 = vector.shape_cast %232 : vector<160xf32> to vector<1x160xf32>
    %234 = vector.extract_strided_slice %227 {offsets = [7, 0], sizes = [5, 160], strides = [1, 1]} : vector<12x160xf32> to vector<5x160xf32>
    %cst_117 = arith.constant dense<0.000000e+00> : vector<160xf32>
    %235 = vector.multi_reduction <add>, %234, %cst_117 [0] : vector<5x160xf32> to vector<160xf32>
    %236 = vector.shape_cast %235 : vector<160xf32> to vector<1x160xf32>
    %237 = arith.mulf %234, %234 : vector<5x160xf32>
    %cst_118 = arith.constant dense<0.000000e+00> : vector<160xf32>
    %238 = vector.multi_reduction <add>, %237, %cst_118 [0] : vector<5x160xf32> to vector<160xf32>
    %239 = vector.shape_cast %238 : vector<160xf32> to vector<1x160xf32>
    %240 = arith.addf %230, %236 : vector<1x160xf32>
    %241 = arith.addf %233, %239 : vector<1x160xf32>
    %242 = tpu.concatenate %240, %241 in 0 : vector<1x160xf32>, vector<1x160xf32> -> vector<2x160xf32>
    %c0_119 = arith.constant 0 : index
    %c0_120 = arith.constant 0 : index
    %243 = vector.load %arg14[%c0_119, %c0_120] : memref<160x32xf32, #tpu.memory_space<vmem>>, vector<160x32xf32>
    %cst_121 = arith.constant dense<0.000000e+00> : vector<2x32xf32>
    %244 = tpu.matmul %242, %243, %cst_121 {dimension_numbers = #tpu.dot_dimension_numbers<[1], [0], [0], [1], [0, 0, 1, 1], [], []>} : vector<2x160xf32>, vector<160x32xf32>, vector<2x32xf32> -> vector<2x32xf32>
    %245 = vector.extract_strided_slice %244 {offsets = [0, 0], sizes = [1, 32], strides = [1, 1]} : vector<2x32xf32> to vector<1x32xf32>
    %cst_122 = arith.constant 2.000000e-02 : f32
    %246 = vector.broadcast %cst_122 : f32 to vector<1x32xf32>
    %247 = arith.mulf %245, %246 : vector<1x32xf32>
    %248 = vector.extract_strided_slice %244 {offsets = [1, 0], sizes = [1, 32], strides = [1, 1]} : vector<2x32xf32> to vector<1x32xf32>
    %cst_123 = arith.constant 2.000000e-02 : f32
    %249 = vector.broadcast %cst_123 : f32 to vector<1x32xf32>
    %250 = arith.mulf %248, %249 : vector<1x32xf32>
    %251 = arith.mulf %247, %247 : vector<1x32xf32>
    %252 = arith.subf %250, %251 : vector<1x32xf32>
    %cst_124 = arith.constant 0.000000e+00 : f32
    %253 = vector.broadcast %cst_124 : f32 to vector<1x32xf32>
    %254 = arith.maximumf %252, %253 : vector<1x32xf32>
    %cst_125 = arith.constant 9.99999974E-6 : f32
    %255 = vector.broadcast %cst_125 : f32 to vector<1x32xf32>
    %256 = arith.addf %254, %255 : vector<1x32xf32>
    %257 = math.rsqrt %256 : vector<1x32xf32>
    %cst_126 = arith.constant 0.000000e+00 : f32
    %258 = vector.broadcast %cst_126 : f32 to vector<1x32xf32>
    %259 = arith.subf %258, %247 : vector<1x32xf32>
    %260 = arith.mulf %259, %257 : vector<1x32xf32>
    %261 = tpu.concatenate %257, %260 in 0 : vector<1x32xf32>, vector<1x32xf32> -> vector<2x32xf32>
    %c0_127 = arith.constant 0 : index
    %c0_128 = arith.constant 0 : index
    %262 = vector.load %arg15[%c0_127, %c0_128] : memref<32x64xf32, #tpu.memory_space<vmem>>, vector<32x64xf32>
    %cst_129 = arith.constant dense<0.000000e+00> : vector<2x64xf32>
    %263 = tpu.matmul %261, %262, %cst_129 {dimension_numbers = #tpu.dot_dimension_numbers<[1], [0], [0], [1], [0, 0, 1, 1], [], []>} : vector<2x32xf32>, vector<32x64xf32>, vector<2x64xf32> -> vector<2x64xf32>
    %264 = vector.extract_strided_slice %263 {offsets = [0, 0], sizes = [1, 64], strides = [1, 1]} : vector<2x64xf32> to vector<1x64xf32>
    %265 = vector.extract_strided_slice %263 {offsets = [1, 0], sizes = [1, 64], strides = [1, 1]} : vector<2x64xf32> to vector<1x64xf32>
    %266 = vector.extract_strided_slice %227 {offsets = [0, 0], sizes = [1, 160], strides = [1, 1]} : vector<12x160xf32> to vector<1x160xf32>
    %267 = vector.extract_strided_slice %227 {offsets = [1, 0], sizes = [1, 160], strides = [1, 1]} : vector<12x160xf32> to vector<1x160xf32>
    %268 = arith.maximumf %266, %267 : vector<1x160xf32>
    %269 = vector.extract_strided_slice %227 {offsets = [2, 0], sizes = [1, 160], strides = [1, 1]} : vector<12x160xf32> to vector<1x160xf32>
    %270 = vector.extract_strided_slice %227 {offsets = [3, 0], sizes = [1, 160], strides = [1, 1]} : vector<12x160xf32> to vector<1x160xf32>
    %271 = arith.maximumf %269, %270 : vector<1x160xf32>
    %272 = vector.extract_strided_slice %227 {offsets = [7, 0], sizes = [1, 160], strides = [1, 1]} : vector<12x160xf32> to vector<1x160xf32>
    %273 = vector.extract_strided_slice %227 {offsets = [8, 0], sizes = [1, 160], strides = [1, 1]} : vector<12x160xf32> to vector<1x160xf32>
    %274 = arith.maximumf %272, %273 : vector<1x160xf32>
    %275 = vector.extract_strided_slice %227 {offsets = [9, 0], sizes = [1, 160], strides = [1, 1]} : vector<12x160xf32> to vector<1x160xf32>
    %276 = vector.extract_strided_slice %227 {offsets = [10, 0], sizes = [1, 160], strides = [1, 1]} : vector<12x160xf32> to vector<1x160xf32>
    %277 = arith.maximumf %275, %276 : vector<1x160xf32>
    %278 = tpu.concatenate %268, %271, %274, %277 in 0 : vector<1x160xf32>, vector<1x160xf32>, vector<1x160xf32>, vector<1x160xf32> -> vector<4x160xf32>
    %c0_130 = arith.constant 0 : index
    %c0_131 = arith.constant 0 : index
    %279 = vector.load %arg16[%c0_130, %c0_131] : memref<160x64xf32, #tpu.memory_space<vmem>>, vector<160x64xf32>
    %c0_132 = arith.constant 0 : index
    %c0_133 = arith.constant 0 : index
    %280 = vector.load %arg17[%c0_132, %c0_133] : memref<160x64xf32, #tpu.memory_space<vmem>>, vector<160x64xf32>
    %cst_134 = arith.constant dense<0.000000e+00> : vector<4x64xf32>
    %281 = tpu.matmul %278, %279, %cst_134 {dimension_numbers = #tpu.dot_dimension_numbers<[1], [0], [0], [1], [0, 0, 1, 1], [], []>} : vector<4x160xf32>, vector<160x64xf32>, vector<4x64xf32> -> vector<4x64xf32>
    %cst_135 = arith.constant dense<0.000000e+00> : vector<4x64xf32>
    %282 = tpu.matmul %278, %280, %cst_135 {dimension_numbers = #tpu.dot_dimension_numbers<[1], [0], [0], [1], [0, 0, 1, 1], [], []>} : vector<4x160xf32>, vector<160x64xf32>, vector<4x64xf32> -> vector<4x64xf32>
    %283 = arith.maximumf %281, %282 : vector<4x64xf32>
    %284 = vector.broadcast %264 : vector<1x64xf32> to vector<4x64xf32>
    %285 = arith.mulf %283, %284 : vector<4x64xf32>
    %286 = vector.broadcast %265 : vector<1x64xf32> to vector<4x64xf32>
    %287 = arith.addf %285, %286 : vector<4x64xf32>
    %288 = vector.extract_strided_slice %287 {offsets = [0, 0], sizes = [2, 64], strides = [1, 1]} : vector<4x64xf32> to vector<2x64xf32>
    %c1_136 = arith.constant 1 : index
    %c32 = arith.constant 32 : index
    %289 = vector.load %arg29[%c1_136, %c32] : memref<8x128xf32, #tpu.memory_space<vmem>>, vector<2x64xf32>
    tpu.vector_store %arg29[%c1_136, %c32], %288 {strides = array<i32>} : memref<8x128xf32, #tpu.memory_space<vmem>>, vector<2x64xf32>,
    %290 = vector.extract_strided_slice %287 {offsets = [2, 0], sizes = [2, 64], strides = [1, 1]} : vector<4x64xf32> to vector<2x64xf32>
    %c5_137 = arith.constant 5 : index
    %c32_138 = arith.constant 32 : index
    %291 = vector.load %arg29[%c5_137, %c32_138] : memref<8x128xf32, #tpu.memory_space<vmem>>, vector<2x64xf32>
    tpu.vector_store %arg29[%c5_137, %c32_138], %290 {strides = array<i32>} : memref<8x128xf32, #tpu.memory_space<vmem>>, vector<2x64xf32>,
    %c0_139 = arith.constant 0 : index
    %c0_140 = arith.constant 0 : index
    %292 = vector.load %arg29[%c0_139, %c0_140] : memref<8x128xf32, #tpu.memory_space<vmem>>, vector<8x128xf32>
    %293 = vector.extract_strided_slice %292 {offsets = [0, 0], sizes = [6, 128], strides = [1, 1]} : vector<8x128xf32> to vector<6x128xf32>
    %c0_141 = arith.constant 0 : index
    %c0_142 = arith.constant 0 : index
    %c0_143 = arith.constant 0 : index
    %294 = vector.load %arg18[%c0_141, %c0_142, %c0_143] : memref<3x128x128xf32, #tpu.memory_space<vmem>>, vector<1x128x128xf32>
    %295 = vector.shape_cast %294 : vector<1x128x128xf32> to vector<128x128xf32>
    %cst_144 = arith.constant dense<0.000000e+00> : vector<6x128xf32>
    %296 = tpu.matmul %293, %295, %cst_144 {dimension_numbers = #tpu.dot_dimension_numbers<[1], [0], [0], [1], [0, 0, 1, 1], [], []>} : vector<6x128xf32>, vector<128x128xf32>, vector<6x128xf32> -> vector<6x128xf32>
    %297 = vector.extract_strided_slice %292 {offsets = [1, 0], sizes = [6, 128], strides = [1, 1]} : vector<8x128xf32> to vector<6x128xf32>
    %c1_145 = arith.constant 1 : index
    %c0_146 = arith.constant 0 : index
    %c0_147 = arith.constant 0 : index
    %298 = vector.load %arg18[%c1_145, %c0_146, %c0_147] : memref<3x128x128xf32, #tpu.memory_space<vmem>>, vector<1x128x128xf32>
    %299 = vector.shape_cast %298 : vector<1x128x128xf32> to vector<128x128xf32>
    %cst_148 = arith.constant dense<0.000000e+00> : vector<6x128xf32>
    %300 = tpu.matmul %297, %299, %cst_148 {dimension_numbers = #tpu.dot_dimension_numbers<[1], [0], [0], [1], [0, 0, 1, 1], [], []>} : vector<6x128xf32>, vector<128x128xf32>, vector<6x128xf32> -> vector<6x128xf32>
    %301 = arith.addf %296, %300 : vector<6x128xf32>
    %302 = vector.extract_strided_slice %292 {offsets = [2, 0], sizes = [6, 128], strides = [1, 1]} : vector<8x128xf32> to vector<6x128xf32>
    %c2_149 = arith.constant 2 : index
    %c0_150 = arith.constant 0 : index
    %c0_151 = arith.constant 0 : index
    %303 = vector.load %arg18[%c2_149, %c0_150, %c0_151] : memref<3x128x128xf32, #tpu.memory_space<vmem>>, vector<1x128x128xf32>
    %304 = vector.shape_cast %303 : vector<1x128x128xf32> to vector<128x128xf32>
    %cst_152 = arith.constant dense<0.000000e+00> : vector<6x128xf32>
    %305 = tpu.matmul %302, %304, %cst_152 {dimension_numbers = #tpu.dot_dimension_numbers<[1], [0], [0], [1], [0, 0, 1, 1], [], []>} : vector<6x128xf32>, vector<128x128xf32>, vector<6x128xf32> -> vector<6x128xf32>
    %306 = arith.addf %301, %305 : vector<6x128xf32>
    %c0_153 = arith.constant 0 : index
    %c0_154 = arith.constant 0 : index
    %307 = vector.load %arg19[%c0_153, %c0_154] : memref<1x128xf32, #tpu.memory_space<vmem>>, vector<1x128xf32>
    %308 = vector.broadcast %307 : vector<1x128xf32> to vector<6x128xf32>
    %309 = arith.addf %306, %308 : vector<6x128xf32>
    %cst_155 = arith.constant 0.000000e+00 : f32
    %310 = vector.broadcast %cst_155 : f32 to vector<6x128xf32>
    %311 = arith.cmpf ogt, %309, %310 : vector<6x128xf32>
    %cst_156 = arith.constant 0.00999999977 : f32
    %312 = vector.broadcast %cst_156 : f32 to vector<6x128xf32>
    %313 = arith.mulf %312, %309 : vector<6x128xf32>
    %314 = arith.select %311, %309, %313 : vector<6x128xi1>, vector<6x128xf32>
    %315 = vector.extract_strided_slice %314 {offsets = [0, 0], sizes = [2, 128], strides = [1, 1]} : vector<6x128xf32> to vector<2x128xf32>
    %cst_157 = arith.constant dense<0.000000e+00> : vector<128xf32>
    %316 = vector.multi_reduction <add>, %315, %cst_157 [0] : vector<2x128xf32> to vector<128xf32>
    %317 = vector.shape_cast %316 : vector<128xf32> to vector<1x128xf32>
    %318 = arith.mulf %315, %315 : vector<2x128xf32>
    %cst_158 = arith.constant dense<0.000000e+00> : vector<128xf32>
    %319 = vector.multi_reduction <add>, %318, %cst_158 [0] : vector<2x128xf32> to vector<128xf32>
    %320 = vector.shape_cast %319 : vector<128xf32> to vector<1x128xf32>
    %321 = vector.extract_strided_slice %314 {offsets = [4, 0], sizes = [2, 128], strides = [1, 1]} : vector<6x128xf32> to vector<2x128xf32>
    %cst_159 = arith.constant dense<0.000000e+00> : vector<128xf32>
    %322 = vector.multi_reduction <add>, %321, %cst_159 [0] : vector<2x128xf32> to vector<128xf32>
    %323 = vector.shape_cast %322 : vector<128xf32> to vector<1x128xf32>
    %324 = arith.mulf %321, %321 : vector<2x128xf32>
    %cst_160 = arith.constant dense<0.000000e+00> : vector<128xf32>
    %325 = vector.multi_reduction <add>, %324, %cst_160 [0] : vector<2x128xf32> to vector<128xf32>
    %326 = vector.shape_cast %325 : vector<128xf32> to vector<1x128xf32>
    %327 = arith.addf %317, %323 : vector<1x128xf32>
    %328 = arith.addf %320, %326 : vector<1x128xf32>
    %329 = tpu.concatenate %327, %328 in 0 : vector<1x128xf32>, vector<1x128xf32> -> vector<2x128xf32>
    %c0_161 = arith.constant 0 : index
    %c0_162 = arith.constant 0 : index
    %330 = vector.load %arg20[%c0_161, %c0_162] : memref<128x64xf32, #tpu.memory_space<vmem>>, vector<128x64xf32>
    %cst_163 = arith.constant dense<0.000000e+00> : vector<2x64xf32>
    %331 = tpu.matmul %329, %330, %cst_163 {dimension_numbers = #tpu.dot_dimension_numbers<[1], [0], [0], [1], [0, 0, 1, 1], [], []>} : vector<2x128xf32>, vector<128x64xf32>, vector<2x64xf32> -> vector<2x64xf32>
    %332 = vector.extract_strided_slice %331 {offsets = [0, 0], sizes = [1, 64], strides = [1, 1]} : vector<2x64xf32> to vector<1x64xf32>
    %cst_164 = arith.constant 1.250000e-01 : f32
    %333 = vector.broadcast %cst_164 : f32 to vector<1x64xf32>
    %334 = arith.mulf %332, %333 : vector<1x64xf32>
    %335 = vector.extract_strided_slice %331 {offsets = [1, 0], sizes = [1, 64], strides = [1, 1]} : vector<2x64xf32> to vector<1x64xf32>
    %cst_165 = arith.constant 1.250000e-01 : f32
    %336 = vector.broadcast %cst_165 : f32 to vector<1x64xf32>
    %337 = arith.mulf %335, %336 : vector<1x64xf32>
    %338 = arith.mulf %334, %334 : vector<1x64xf32>
    %339 = arith.subf %337, %338 : vector<1x64xf32>
    %cst_166 = arith.constant 0.000000e+00 : f32
    %340 = vector.broadcast %cst_166 : f32 to vector<1x64xf32>
    %341 = arith.maximumf %339, %340 : vector<1x64xf32>
    %cst_167 = arith.constant 9.99999974E-6 : f32
    %342 = vector.broadcast %cst_167 : f32 to vector<1x64xf32>
    %343 = arith.addf %341, %342 : vector<1x64xf32>
    %344 = math.rsqrt %343 : vector<1x64xf32>
    %cst_168 = arith.constant 0.000000e+00 : f32
    %345 = vector.broadcast %cst_168 : f32 to vector<1x64xf32>
    %346 = arith.subf %345, %334 : vector<1x64xf32>
    %347 = arith.mulf %346, %344 : vector<1x64xf32>
    %348 = tpu.concatenate %344, %347 in 0 : vector<1x64xf32>, vector<1x64xf32> -> vector<2x64xf32>
    %c0_169 = arith.constant 0 : index
    %c0_170 = arith.constant 0 : index
    %349 = vector.load %arg21[%c0_169, %c0_170] : memref<64x64xf32, #tpu.memory_space<vmem>>, vector<64x64xf32>
    %cst_171 = arith.constant dense<0.000000e+00> : vector<2x64xf32>
    %350 = tpu.matmul %348, %349, %cst_171 {dimension_numbers = #tpu.dot_dimension_numbers<[1], [0], [0], [1], [0, 0, 1, 1], [], []>} : vector<2x64xf32>, vector<64x64xf32>, vector<2x64xf32> -> vector<2x64xf32>
    %351 = vector.extract_strided_slice %350 {offsets = [0, 0], sizes = [1, 64], strides = [1, 1]} : vector<2x64xf32> to vector<1x64xf32>
    %352 = vector.extract_strided_slice %350 {offsets = [1, 0], sizes = [1, 64], strides = [1, 1]} : vector<2x64xf32> to vector<1x64xf32>
    %353 = vector.extract_strided_slice %314 {offsets = [0, 0], sizes = [1, 128], strides = [1, 1]} : vector<6x128xf32> to vector<1x128xf32>
    %354 = vector.extract_strided_slice %314 {offsets = [1, 0], sizes = [1, 128], strides = [1, 1]} : vector<6x128xf32> to vector<1x128xf32>
    %355 = arith.maximumf %353, %354 : vector<1x128xf32>
    %356 = vector.extract_strided_slice %314 {offsets = [4, 0], sizes = [1, 128], strides = [1, 1]} : vector<6x128xf32> to vector<1x128xf32>
    %357 = vector.extract_strided_slice %314 {offsets = [5, 0], sizes = [1, 128], strides = [1, 1]} : vector<6x128xf32> to vector<1x128xf32>
    %358 = arith.maximumf %356, %357 : vector<1x128xf32>
    %359 = tpu.concatenate %355, %358 in 0 : vector<1x128xf32>, vector<1x128xf32> -> vector<2x128xf32>
    %c0_172 = arith.constant 0 : index
    %c0_173 = arith.constant 0 : index
    %360 = vector.load %arg22[%c0_172, %c0_173] : memref<128x64xf32, #tpu.memory_space<vmem>>, vector<128x64xf32>
    %c0_174 = arith.constant 0 : index
    %c0_175 = arith.constant 0 : index
    %361 = vector.load %arg23[%c0_174, %c0_175] : memref<128x64xf32, #tpu.memory_space<vmem>>, vector<128x64xf32>
    %cst_176 = arith.constant dense<0.000000e+00> : vector<2x64xf32>
    %362 = tpu.matmul %359, %360, %cst_176 {dimension_numbers = #tpu.dot_dimension_numbers<[1], [0], [0], [1], [0, 0, 1, 1], [], []>} : vector<2x128xf32>, vector<128x64xf32>, vector<2x64xf32> -> vector<2x64xf32>
    %cst_177 = arith.constant dense<0.000000e+00> : vector<2x64xf32>
    %363 = tpu.matmul %359, %361, %cst_177 {dimension_numbers = #tpu.dot_dimension_numbers<[1], [0], [0], [1], [0, 0, 1, 1], [], []>} : vector<2x128xf32>, vector<128x64xf32>, vector<2x64xf32> -> vector<2x64xf32>
    %364 = arith.maximumf %362, %363 : vector<2x64xf32>
    %365 = vector.broadcast %351 : vector<1x64xf32> to vector<2x64xf32>
    %366 = arith.mulf %364, %365 : vector<2x64xf32>
    %367 = vector.broadcast %352 : vector<1x64xf32> to vector<2x64xf32>
    %368 = arith.addf %366, %367 : vector<2x64xf32>
    %369 = vector.extract_strided_slice %368 {offsets = [0, 0], sizes = [1, 64], strides = [1, 1]} : vector<2x64xf32> to vector<1x64xf32>
    %370 = vector.extract_strided_slice %368 {offsets = [1, 0], sizes = [1, 64], strides = [1, 1]} : vector<2x64xf32> to vector<1x64xf32>
    %371 = tpu.concatenate %369, %370 in 0 : vector<1x64xf32>, vector<1x64xf32> -> vector<2x64xf32>
    %c0_178 = arith.constant 0 : index
    %c0_179 = arith.constant 0 : index
    %372 = vector.load %arg24[%c0_178, %c0_179] : memref<64x2xf32, #tpu.memory_space<vmem>>, vector<64x2xf32>
    %cst_180 = arith.constant dense<0.000000e+00> : vector<2x2xf32>
    %373 = tpu.matmul %371, %372, %cst_180 {dimension_numbers = #tpu.dot_dimension_numbers<[1], [0], [0], [1], [0, 0, 1, 1], [], []>} : vector<2x64xf32>, vector<64x2xf32>, vector<2x2xf32> -> vector<2x2xf32>
    %c0_181 = arith.constant 0 : index
    %c0_182 = arith.constant 0 : index
    %374 = vector.load %arg25[%c0_181, %c0_182] : memref<1x2xf32, #tpu.memory_space<vmem>>, vector<1x2xf32>
    %375 = vector.broadcast %374 : vector<1x2xf32> to vector<2x2xf32>
    %376 = arith.addf %373, %375 : vector<2x2xf32>
    %c0_183 = arith.constant 0 : index
    %c0_184 = arith.constant 0 : index
    %377 = vector.load %arg26[%c0_183, %c0_184] : memref<2x2xf32, #tpu.memory_space<vmem>>, vector<2x2xf32>
    tpu.vector_store %arg26[%c0_183, %c0_184], %376 {strides = array<i32>} : memref<2x2xf32, #tpu.memory_space<vmem>>, vector<2x2xf32>,
    return
  }
  func.func @transform_0(%arg0: i32) -> (i32, i32) {
    %c0_i32 = arith.constant 0 : i32
    %c0_i32_0 = arith.constant 0 : i32
    %c0_i32_1 = arith.constant 0 : i32
    return %c0_i32, %c0_i32_0 : i32, i32
  }
  func.func @transform_1(%arg0: i32) -> (i32, i32, i32) {
    %c0_i32 = arith.constant 0 : i32
    %c0_i32_0 = arith.constant 0 : i32
    %c0_i32_1 = arith.constant 0 : i32
    %c0_i32_2 = arith.constant 0 : i32
    return %c0_i32, %c0_i32_0, %c0_i32_1 : i32, i32, i32
  }
  func.func @transform_2(%arg0: i32) -> (i32, i32) {
    %c0_i32 = arith.constant 0 : i32
    %c0_i32_0 = arith.constant 0 : i32
    %c0_i32_1 = arith.constant 0 : i32
    return %c0_i32, %c0_i32_0 : i32, i32
  }
  func.func @transform_3(%arg0: i32) -> (i32, i32) {
    %c0_i32 = arith.constant 0 : i32
    %c0_i32_0 = arith.constant 0 : i32
    %c0_i32_1 = arith.constant 0 : i32
    return %c0_i32, %c0_i32_0 : i32, i32
  }
  func.func @transform_4(%arg0: i32) -> (i32, i32) {
    %c0_i32 = arith.constant 0 : i32
    %c0_i32_0 = arith.constant 0 : i32
    %c0_i32_1 = arith.constant 0 : i32
    return %c0_i32, %c0_i32_0 : i32, i32
  }
  func.func @transform_5(%arg0: i32) -> (i32, i32, i32) {
    %c0_i32 = arith.constant 0 : i32
    %c0_i32_0 = arith.constant 0 : i32
    %c0_i32_1 = arith.constant 0 : i32
    %c0_i32_2 = arith.constant 0 : i32
    return %c0_i32, %c0_i32_0, %c0_i32_1 : i32, i32, i32
  }
  func.func @transform_6(%arg0: i32) -> (i32, i32) {
    %c0_i32 = arith.constant 0 : i32
    %c0_i32_0 = arith.constant 0 : i32
    %c0_i32_1 = arith.constant 0 : i32
    return %c0_i32, %c0_i32_0 : i32, i32
  }
  func.func @transform_7(%arg0: i32) -> (i32, i32) {
    %c0_i32 = arith.constant 0 : i32
    %c0_i32_0 = arith.constant 0 : i32
    %c0_i32_1 = arith.constant 0 : i32
    return %c0_i32, %c0_i32_0 : i32, i32
  }
  func.func @transform_8(%arg0: i32) -> (i32, i32) {
    %c0_i32 = arith.constant 0 : i32
    %c0_i32_0 = arith.constant 0 : i32
    %c0_i32_1 = arith.constant 0 : i32
    return %c0_i32, %c0_i32_0 : i32, i32
  }
  func.func @transform_9(%arg0: i32) -> (i32, i32) {
    %c0_i32 = arith.constant 0 : i32
    %c0_i32_0 = arith.constant 0 : i32
    %c0_i32_1 = arith.constant 0 : i32
    return %c0_i32, %c0_i32_0 : i32, i32
  }
  func.func @transform_10(%arg0: i32) -> (i32, i32) {
    %c0_i32 = arith.constant 0 : i32
    %c0_i32_0 = arith.constant 0 : i32
    %c0_i32_1 = arith.constant 0 : i32
    return %c0_i32, %c0_i32_0 : i32, i32
  }
  func.func @transform_11(%arg0: i32) -> (i32, i32, i32) {
    %c0_i32 = arith.constant 0 : i32
    %c0_i32_0 = arith.constant 0 : i32
    %c0_i32_1 = arith.constant 0 : i32
    %c0_i32_2 = arith.constant 0 : i32
    return %c0_i32, %c0_i32_0, %c0_i32_1 : i32, i32, i32
  }
  func.func @transform_12(%arg0: i32) -> (i32, i32) {
    %c0_i32 = arith.constant 0 : i32
    %c0_i32_0 = arith.constant 0 : i32
    %c0_i32_1 = arith.constant 0 : i32
    return %c0_i32, %c0_i32_0 : i32, i32
  }
  func.func @transform_13(%arg0: i32) -> (i32, i32) {
    %c0_i32 = arith.constant 0 : i32
    %c0_i32_0 = arith.constant 0 : i32
    %c0_i32_1 = arith.constant 0 : i32
    return %c0_i32, %c0_i32_0 : i32, i32
  }
  func.func @transform_14(%arg0: i32) -> (i32, i32) {
    %c0_i32 = arith.constant 0 : i32
    %c0_i32_0 = arith.constant 0 : i32
    %c0_i32_1 = arith.constant 0 : i32
    return %c0_i32, %c0_i32_0 : i32, i32
  }
  func.func @transform_15(%arg0: i32) -> (i32, i32) {
    %c0_i32 = arith.constant 0 : i32
    %c0_i32_0 = arith.constant 0 : i32
    %c0_i32_1 = arith.constant 0 : i32
    return %c0_i32, %c0_i32_0 : i32, i32
  }
  func.func @transform_16(%arg0: i32) -> (i32, i32) {
    %c0_i32 = arith.constant 0 : i32
    %c0_i32_0 = arith.constant 0 : i32
    %c0_i32_1 = arith.constant 0 : i32
    return %c0_i32, %c0_i32_0 : i32, i32
  }
  func.func @transform_17(%arg0: i32) -> (i32, i32, i32) {
    %c0_i32 = arith.constant 0 : i32
    %c0_i32_0 = arith.constant 0 : i32
    %c0_i32_1 = arith.constant 0 : i32
    %c0_i32_2 = arith.constant 0 : i32
    return %c0_i32, %c0_i32_0, %c0_i32_1 : i32, i32, i32
  }
  func.func @transform_18(%arg0: i32) -> (i32, i32) {
    %c0_i32 = arith.constant 0 : i32
    %c0_i32_0 = arith.constant 0 : i32
    %c0_i32_1 = arith.constant 0 : i32
    return %c0_i32, %c0_i32_0 : i32, i32
  }
  func.func @transform_19(%arg0: i32) -> (i32, i32) {
    %c0_i32 = arith.constant 0 : i32
    %c0_i32_0 = arith.constant 0 : i32
    %c0_i32_1 = arith.constant 0 : i32
    return %c0_i32, %c0_i32_0 : i32, i32
  }
  func.func @transform_20(%arg0: i32) -> (i32, i32) {
    %c0_i32 = arith.constant 0 : i32
    %c0_i32_0 = arith.constant 0 : i32
    %c0_i32_1 = arith.constant 0 : i32
    return %c0_i32, %c0_i32_0 : i32, i32
  }
  func.func @transform_21(%arg0: i32) -> (i32, i32) {
    %c0_i32 = arith.constant 0 : i32
    %c0_i32_0 = arith.constant 0 : i32
    %c0_i32_1 = arith.constant 0 : i32
    return %c0_i32, %c0_i32_0 : i32, i32
  }
  func.func @transform_22(%arg0: i32) -> (i32, i32) {
    %c0_i32 = arith.constant 0 : i32
    %c0_i32_0 = arith.constant 0 : i32
    %c0_i32_1 = arith.constant 0 : i32
    return %c0_i32, %c0_i32_0 : i32, i32
  }
  func.func @transform_23(%arg0: i32) -> (i32, i32) {
    %c0_i32 = arith.constant 0 : i32
    %c0_i32_0 = arith.constant 0 : i32
    %c0_i32_1 = arith.constant 0 : i32
    return %c0_i32, %c0_i32_0 : i32, i32
  }
  func.func @transform_24(%arg0: i32) -> (i32, i32) {
    %c0_i32 = arith.constant 0 : i32
    %c0_i32_0 = arith.constant 0 : i32
    %c0_i32_1 = arith.constant 0 : i32
    return %c0_i32, %c0_i32_0 : i32, i32
  }
  func.func @transform_25(%arg0: i32) -> (i32, i32) {
    %c0_i32 = arith.constant 0 : i32
    %c0_i32_0 = arith.constant 0 : i32
    %c0_i32_1 = arith.constant 0 : i32
    return %c0_i32, %c0_i32_0 : i32, i32
  }
}

</mosaic_0001>

<bundles_post_ra>
// kernel: _lambda_.1
= control target key start
LH: loop header
LB: loop body
LE: loop exit
PB: predicated region body
PF: predicated region fallthrough
CT: control target
= control target key end

     0   :  { %s7809_s0 = inlined_call_operand.vmem [shape: f32[36,72], index: 0, kind: input, shape index: {}]   ;;  %s7810_s1 = inlined_call_operand.hbm [shape: f32[8,72,88], index: 1, kind: input, shape index: {}]   ;;  %s7811_s2 = inlined_call_operand.hbm [shape: f32[1,88], index: 2, kind: input, shape index: {}]   ;;  %s7812_s3 = inlined_call_operand.hbm [shape: f32[88,8], index: 3, kind: input, shape index: {}]   ;;  %s7813_s4 = inlined_call_operand.hbm [shape: f32[8,88], index: 4, kind: input, shape index: {}]   ;;  %s7814_s5 = inlined_call_operand.hbm [shape: f32[3,104,176], index: 5, kind: input, shape index: {}]   ;;  %s7815_s6 = inlined_call_operand.hbm [shape: f32[1,176], index: 6, kind: input, shape index: {}]   ;;  %s7816_s7 = inlined_call_operand.hbm [shape: f32[176,16], index: 7, kind: input, shape index: {}]   ;;  %s7817_s8 = inlined_call_operand.hbm [shape: f32[16,80], index: 8, kind: input, shape index: {}]   ;;  %s7818_s9 = inlined_call_operand.hbm [shape: f32[176,80], index: 9, kind: input, shape index: {}]   ;;  %s7819_s10 = inlined_call_operand.vmem [shape: f32[176,80], index: 10, kind: input, shape index: {}]   ;;  %s7820_s11 = inlined_call_operand.vmem [shape: f32[3,112,160], index: 11, kind: input, shape index: {}]   ;;  %s7821_s12 = inlined_call_operand.hbm [shape: f32[1,160], index: 12, kind: input, shape index: {}]   ;;  %s7822_s13 = inlined_call_operand.hbm [shape: f32[160,32], index: 13, kind: input, shape index: {}]   ;;  %s7823_s14 = inlined_call_operand.hbm [shape: f32[32,64], index: 14, kind: input, shape index: {}]   ;;  %s7824_s15 = inlined_call_operand.hbm [shape: f32[160,64], index: 15, kind: input, shape index: {}]   ;;  %s7825_s16 = inlined_call_operand.hbm [shape: f32[160,64], index: 16, kind: input, shape index: {}]   ;;  %s7826_s17 = inlined_call_operand.hbm [shape: f32[3,128,128], index: 17, kind: input, shape index: {}]   ;;  %s7827_s18 = inlined_call_operand.vmem [shape: f32[1,128], index: 18, kind: input, shape index: {}]   ;;  %s7828_s19 = inlined_call_operand.hbm [shape: f32[128,64], index: 19, kind: input, shape index: {}]   ;;  %s7829_s20 = inlined_call_operand.hbm [shape: f32[64,64], index: 20, kind: input, shape index: {}]   ;;  %s7830_s21 = inlined_call_operand.hbm [shape: f32[128,64], index: 21, kind: input, shape index: {}]   ;;  %s7831_s22 = inlined_call_operand.hbm [shape: f32[128,64], index: 22, kind: input, shape index: {}]   ;;  %s7832_s23 = inlined_call_operand.vmem [shape: f32[64,2], index: 23, kind: input, shape index: {}]   ;;  %s7833_s24 = inlined_call_operand.vmem [shape: f32[1,2], index: 24, kind: input, shape index: {}]   ;;  %s7834_s25 = inlined_call_operand.hbm [shape: f32[2,2], index: 25, kind: output, shape index: {}]  }
   0x1   :  { %7846 = sst [smem:[#allocation47_spill]] %s7809_s0 }
   0x2   :  { %7847 = sst [smem:[#allocation48_spill]] %s7810_s1 }
   0x3   :  { %7848 = sst [smem:[#allocation49_spill]] %s7811_s2 }
   0x4   :  { %7849 = sst [smem:[#allocation50_spill]] %s7812_s3 }
   0x5   :  { %7850 = sst [smem:[#allocation51_spill]] %s7813_s4 }
   0x6   :  { %7851 = sst [smem:[#allocation52_spill]] %s7814_s5 }
   0x7   :  { %7852 = sst [smem:[#allocation53_spill]] %s7815_s6 }
   0x8   :  { %7853 = sst [smem:[#allocation54_spill]] %s7816_s7 }
   0x9   :  { %7854 = sst [smem:[#allocation55_spill]] %s7817_s8 }
   0xa   :  { %7855 = sst [smem:[#allocation56_spill]] %s7818_s9 }
   0xb   :  { %7856 = sst [smem:[#allocation57_spill]] %s7834_s25 }
   0xc   :  { %30 = vsyncpa [#allocation6], 0 }
   0xd   :  { %31 = vsyncpa [#allocation9], 0 }
   0xe   :  { %32 = vsyncpa [#allocation12], 0 }
   0xf   :  { %33 = vsyncpa [#allocation15], 0 }
  0x10   :  { %34 = vsyncpa [#allocation18], 0 }
  0x11   :  { %35 = vsyncpa [#allocation21], 0 }
  0x12   :  { %36 = vsyncpa [#allocation24], 0 }
  0x13   :  { %37 = vsyncpa [#allocation27], 0 }
  0x14   :  { %38 = vsyncpa [#allocation30], 0 }
  0x15   :  { %39 = vsyncpa [#allocation33], 0 }
  0x16   :  { %40 = vsyncpa [#allocation7], 0  ;;  %s6342_s29 = smov [#allocation8]   ;;  %s6343_s6 = smov [#allocation11]  }
  0x17   :  { %s61_s2 = sshll.u32 %s6342_s29, 4  ;;  %s83_s30 = sshll.u32 %s6343_s6, 4  ;;  %s62_s2 = int_to_ptr.vmem [resolvable:$true] %s61_s2  ;;  %s84_s30 = int_to_ptr.vmem [resolvable:$true] %s83_s30 }
  0x18   :  { %s7857_s26 = sld [smem:[#allocation49_spill]] }
  0x1e   :  { %s5880_s1 = scalar_lea.hbm %s7857_s26, 16 }
  0x1f   :  { %p5881_p0 = scmp.ne.s32.totalorder %s7857_s26, %s5880_s1  ;;  %p5884_p1 = scmp.lt.u32.totalorder %s5880_s1, %s7857_s26 }
  0x21   :  { %p5886_p2 = pnand %p5884_p1, %p5881_p0 }
  0x23   :  { %5889 = shalt.err (!%p5886_p2)
}
  0x24   :  { %s5890_s9 = scalar_lea.vmem %s62_s2, 16  ;;  %s5894_s5 = scalar_lea.vmem %s62_s2, 32 }
  0x25   :  { %p5891_p3 = scmp.ne.s32.totalorder %s62_s2, %s5890_s9  ;;  %p5895_p4 = scmp.lt.s32.totalorder %s62_s2, %s62_s2 }
  0x26   :  { %p5896_p5 = scmp.lt.s32.totalorder %s5894_s5, %s5890_s9 }
  0x28   :  { %p5897_p6 = por %p5896_p5, %p5895_p4 }
  0x2a   :  { %p5898_p7 = pnand %p5897_p6, %p5891_p3 }
  0x2c   :  { %5901 = shalt.err (!%p5898_p7)
}
  0x2d   :  { %64 = dma.hbm_to_vmem [thread:$0]  %s7857_s26, 16, %s62_s2, [#allocation9]  }
  0x2e   :  { %s7858_s3 = sld [smem:[#allocation51_spill]] }
  0x34   :  { %s5902_s8 = scalar_lea.hbm %s7858_s3, 128 }
  0x35   :  { %p5903_p8 = scmp.ne.s32.totalorder %s7858_s3, %s5902_s8  ;;  %p5906_p9 = scmp.lt.u32.totalorder %s5902_s8, %s7858_s3 }
  0x37   :  { %p5908_p10 = pnand %p5906_p9, %p5903_p8 }
  0x39   :  { %5911 = shalt.err (!%p5908_p10)
}
  0x3a   :  { %s5912_s9 = scalar_lea.vmem %s84_s30, 128  ;;  %p5917_p12 = scmp.lt.s32.totalorder %s84_s30, %s84_s30 }
  0x3b   :  { %p5913_p11 = scmp.ne.s32.totalorder %s84_s30, %s5912_s9  ;;  %p5918_p13 = scmp.lt.s32.totalorder %s5912_s9, %s5912_s9 }
  0x3d   :  { %p5919_p0 = por %p5918_p13, %p5917_p12 }
  0x3f   :  { %p5920_p1 = pnand %p5919_p0, %p5913_p11 }
  0x41   :  { %5923 = shalt.err (!%p5920_p1)
}
  0x42   :  { %86 = dma.hbm_to_vmem [thread:$0]  %s7858_s3, 128, %s84_s30, [#allocation12]  }
  0x43   :  { %s6344_s5 = smov [#allocation14]   ;;  %s7859_s7 = sld [smem:[#allocation53_spill]] }
  0x44   :  { %s105_s0 = sshll.u32 %s6344_s5, 4  ;;  %s106_s0 = int_to_ptr.vmem [resolvable:$true] %s105_s0 }
  0x49   :  { %s5924_s8 = scalar_lea.hbm %s7859_s7, 32 }
  0x4a   :  { %p5925_p2 = scmp.ne.s32.totalorder %s7859_s7, %s5924_s8  ;;  %p5928_p3 = scmp.lt.u32.totalorder %s5924_s8, %s7859_s7 }
  0x4c   :  { %p5930_p4 = pnand %p5928_p3, %p5925_p2 }
  0x4e   :  { %5933 = shalt.err (!%p5930_p4)
}
  0x4f   :  { %s5934_s9 = scalar_lea.vmem %s106_s0, 32  ;;  %p5939_p6 = scmp.lt.s32.totalorder %s106_s0, %s106_s0 }
  0x50   :  { %p5935_p5 = scmp.ne.s32.totalorder %s106_s0, %s5934_s9  ;;  %p5940_p7 = scmp.lt.s32.totalorder %s5934_s9, %s5934_s9 }
  0x52   :  { %p5941_p8 = por %p5940_p7, %p5939_p6 }
  0x54   :  { %p5942_p9 = pnand %p5941_p8, %p5935_p5 }
  0x56   :  { %5945 = shalt.err (!%p5942_p9)
}
  0x57   :  { %108 = dma.hbm_to_vmem [thread:$0]  %s7859_s7, 32, %s106_s0, [#allocation15]  }
  0x58   :  { %s6345_s2 = smov [#allocation17]   ;;  %s6346_s5 = smov [#allocation20]  }
  0x59   :  { %s126_s26 = sshll.u32 %s6345_s2, 4  ;;  %s155_s29 = sshll.u32 %s6346_s5, 4  ;;  %s127_s26 = int_to_ptr.vmem [resolvable:$true] %s126_s26  ;;  %s156_s29 = int_to_ptr.vmem [resolvable:$true] %s155_s29 }
  0x5a   :  { %s7860_s27 = sld [smem:[#allocation55_spill]] }
  0x60   :  { %s5946_s1 = scalar_lea.hbm %s7860_s27, 256 }
  0x61   :  { %p5947_p10 = scmp.ne.s32.totalorder %s7860_s27, %s5946_s1  ;;  %p5950_p11 = scmp.lt.u32.totalorder %s5946_s1, %s7860_s27 }
  0x63   :  { %p5952_p12 = pnand %p5950_p11, %p5947_p10 }
  0x65   :  { %5955 = shalt.err (!%p5952_p12)
}
  0x66   :  { %s5956_s0 = scalar_lea.vmem %s127_s26, 256  ;;  %p5961_p0 = scmp.lt.s32.totalorder %s127_s26, %s127_s26 }
  0x67   :  { %p5957_p13 = scmp.ne.s32.totalorder %s127_s26, %s5956_s0  ;;  %p5962_p1 = scmp.lt.s32.totalorder %s5956_s0, %s5956_s0 }
  0x69   :  { %p5963_p2 = por %p5962_p1, %p5961_p0 }
  0x6b   :  { %p5964_p3 = pnand %p5963_p2, %p5957_p13 }
  0x6d   :  { %5967 = shalt.err (!%p5964_p3)
}
  0x6e   :  { %s6347_s7 = smov 128   ;;  %s6348_s30 = smov 8  }
  0x6f   :  { %132 = dma.hbm_to_vmem [thread:$0]  %s7860_s27, 256, %s127_s26, [#allocation18], %s6347_s7, %s6347_s7, %s6348_s30  }
  0x70   :  { %s5968_s6 = scalar_lea.hbm %s7821_s12, 32 }
  0x71   :  { %p5969_p4 = scmp.ne.s32.totalorder %s7821_s12, %s5968_s6  ;;  %p5972_p5 = scmp.lt.u32.totalorder %s5968_s6, %s7821_s12 }
  0x73   :  { %p5974_p6 = pnand %p5972_p5, %p5969_p4 }
  0x75   :  { %5977 = shalt.err (!%p5974_p6)
}
  0x76   :  { %s5978_s9 = scalar_lea.vmem %s156_s29, 32  ;;  %p5983_p8 = scmp.lt.s32.totalorder %s156_s29, %s156_s29 }
  0x77   :  { %p5979_p7 = scmp.ne.s32.totalorder %s156_s29, %s5978_s9  ;;  %p5984_p9 = scmp.lt.s32.totalorder %s5978_s9, %s5978_s9 }
  0x79   :  { %p5985_p10 = por %p5984_p9, %p5983_p8 }
  0x7b   :  { %p5986_p11 = pnand %p5985_p10, %p5979_p7 }
  0x7d   :  { %5989 = shalt.err (!%p5986_p11)
}
  0x7e   :  { %158 = dma.hbm_to_vmem [thread:$0]  %s7821_s12, 32, %s156_s29, [#allocation21]  }
  0x7f   :  { %s6349_s0 = smov [#allocation23]   ;;  %s6350_s2 = smov [#allocation26]  }
  0x80   :  { %s176_s3 = sshll.u32 %s6349_s0, 4  ;;  %s200_s25 = sshll.u32 %s6350_s2, 4  ;;  %s177_s3 = int_to_ptr.vmem [resolvable:$true] %s176_s3  ;;  %s201_s25 = int_to_ptr.vmem [resolvable:$true] %s200_s25 }
  0x81   :  { %s5990_s8 = scalar_lea.hbm %s7823_s14, 512 }
  0x82   :  { %p5991_p12 = scmp.ne.s32.totalorder %s7823_s14, %s5990_s8  ;;  %p5994_p13 = scmp.lt.u32.totalorder %s5990_s8, %s7823_s14 }
  0x84   :  { %p5996_p0 = pnand %p5994_p13, %p5991_p12 }
  0x86   :  { %5999 = shalt.err (!%p5996_p0)
}
  0x87   :  { %s6000_s12 = scalar_lea.vmem %s177_s3, 512  ;;  %p6005_p2 = scmp.lt.s32.totalorder %s177_s3, %s177_s3 }
  0x88   :  { %p6001_p1 = scmp.ne.s32.totalorder %s177_s3, %s6000_s12  ;;  %p6006_p3 = scmp.lt.s32.totalorder %s6000_s12, %s6000_s12 }
  0x8a   :  { %p6007_p4 = por %p6006_p3, %p6005_p2 }
  0x8c   :  { %p6008_p5 = pnand %p6007_p4, %p6001_p1 }
  0x8e   :  { %6011 = shalt.err (!%p6008_p5)
}
  0x8f   :  { %182 = dma.hbm_to_vmem [thread:$0]  %s7823_s14, 512, %s177_s3, [#allocation24], %s6347_s7, %s6347_s7, %s6348_s30  }
  0x90   :  { %s6012_s2 = scalar_lea.hbm %s7825_s16, 2560 }
  0x91   :  { %p6013_p6 = scmp.ne.s32.totalorder %s7825_s16, %s6012_s2  ;;  %p6016_p7 = scmp.lt.u32.totalorder %s6012_s2, %s7825_s16 }
  0x93   :  { %p6018_p8 = pnand %p6016_p7, %p6013_p6 }
  0x95   :  { %6021 = shalt.err (!%p6018_p8)
}
  0x96   :  { %s6022_s4 = scalar_lea.vmem %s201_s25, 2560  ;;  %p6027_p10 = scmp.lt.s32.totalorder %s201_s25, %s201_s25 }
  0x97   :  { %p6023_p9 = scmp.ne.s32.totalorder %s201_s25, %s6022_s4  ;;  %p6028_p11 = scmp.lt.s32.totalorder %s6022_s4, %s6022_s4 }
  0x99   :  { %p6029_p12 = por %p6028_p11, %p6027_p10 }
  0x9b   :  { %p6030_p13 = pnand %p6029_p12, %p6023_p9 }
  0x9d   :  { %6033 = shalt.err (!%p6030_p13)
}
  0x9e   :  { %206 = dma.hbm_to_vmem [thread:$0]  %s7825_s16, 2560, %s201_s25, [#allocation27], %s6347_s7, %s6347_s7, %s6348_s30  }
  0x9f   :  { %s6351_s28 = smov [#allocation29]   ;;  %s6352_s12 = smov [#allocation32]  }
  0xa0   :  { %s226_s9 = sshll.u32 %s6351_s28, 4  ;;  %s250_s29 = sshll.u32 %s6352_s12, 4  ;;  %s227_s9 = int_to_ptr.vmem [resolvable:$true] %s226_s9  ;;  %s251_s29 = int_to_ptr.vmem [resolvable:$true] %s250_s29 }
  0xa1   :  { %s6034_s0 = scalar_lea.hbm %s7828_s19, 2048 }
  0xa2   :  { %p6035_p0 = scmp.ne.s32.totalorder %s7828_s19, %s6034_s0  ;;  %p6038_p1 = scmp.lt.u32.totalorder %s6034_s0, %s7828_s19 }
  0xa4   :  { %p6040_p2 = pnand %p6038_p1, %p6035_p0 }
  0xa6   :  { %6043 = shalt.err (!%p6040_p2)
}
  0xa7   :  { %s6044_s16 = scalar_lea.vmem %s227_s9, 2048  ;;  %p6049_p4 = scmp.lt.s32.totalorder %s227_s9, %s227_s9 }
  0xa8   :  { %p6045_p3 = scmp.ne.s32.totalorder %s227_s9, %s6044_s16  ;;  %p6050_p5 = scmp.lt.s32.totalorder %s6044_s16, %s6044_s16 }
  0xaa   :  { %p6051_p6 = por %p6050_p5, %p6049_p4 }
  0xac   :  { %p6052_p7 = pnand %p6051_p6, %p6045_p3 }
  0xae   :  { %6055 = shalt.err (!%p6052_p7)
}
  0xaf   :  { %232 = dma.hbm_to_vmem [thread:$0]  %s7828_s19, 2048, %s227_s9, [#allocation30], %s6347_s7, %s6347_s7, %s6348_s30  }
  0xb0   :  { %s6056_s3 = scalar_lea.hbm %s7830_s21, 2048 }
  0xb1   :  { %p6057_p8 = scmp.ne.s32.totalorder %s7830_s21, %s6056_s3  ;;  %p6060_p9 = scmp.lt.u32.totalorder %s6056_s3, %s7830_s21 }
  0xb3   :  { %p6062_p10 = pnand %p6060_p9, %p6057_p8 }
  0xb5   :  { %6065 = shalt.err (!%p6062_p10)
}
  0xb6   :  { %s6066_s0 = scalar_lea.vmem %s251_s29, 2048  ;;  %p6071_p12 = scmp.lt.s32.totalorder %s251_s29, %s251_s29 }
  0xb7   :  { %p6067_p11 = scmp.ne.s32.totalorder %s251_s29, %s6066_s0  ;;  %p6072_p13 = scmp.lt.s32.totalorder %s6066_s0, %s6066_s0 }
  0xb9   :  { %p6073_p0 = por %p6072_p13, %p6071_p12 }
  0xbb   :  { %p6074_p1 = pnand %p6073_p0, %p6067_p11 }
  0xbd   :  { %6077 = shalt.err (!%p6074_p1)
}
  0xbe   :  { %256 = dma.hbm_to_vmem [thread:$0]  %s7830_s21, 2048, %s251_s29, [#allocation33], %s6347_s7, %s6347_s7, %s6348_s30  }
  0xbf   :  { %s6353_s2 = smov [#allocation5]   ;;  %s6354_s6 = smov [#allocation10]  }
  0xc0   :  { %s48_s5 = sshll.u32 %s6353_s2, 4  ;;  %s70_s8 = sshll.u32 %s6354_s6, 4  ;;  %s49_s5 = int_to_ptr.vmem [resolvable:$true] %s48_s5  ;;  %s71_s8 = int_to_ptr.vmem [resolvable:$true] %s70_s8 }
  0xc1   :  { %s7861_s1 = sld [smem:[#allocation48_spill]] }
  0xc7   :  { %s6078_s4 = scalar_lea.hbm %s7861_s1, 9216 }
  0xc8   :  { %p6079_p2 = scmp.ne.s32.totalorder %s7861_s1, %s6078_s4  ;;  %p6082_p3 = scmp.lt.u32.totalorder %s6078_s4, %s7861_s1 }
  0xca   :  { %p6084_p4 = pnand %p6082_p3, %p6079_p2 }
  0xcc   :  { %6087 = shalt.err (!%p6084_p4)
}
  0xcd   :  { %s6088_s21 = scalar_lea.vmem %s49_s5, 9216  ;;  %p6093_p6 = scmp.lt.s32.totalorder %s49_s5, %s49_s5 }
  0xce   :  { %p6089_p5 = scmp.ne.s32.totalorder %s49_s5, %s6088_s21  ;;  %p6094_p7 = scmp.lt.s32.totalorder %s6088_s21, %s6088_s21 }
  0xd0   :  { %p6095_p8 = por %p6094_p7, %p6093_p6 }
  0xd2   :  { %p6096_p9 = pnand %p6095_p8, %p6089_p5 }
  0xd4   :  { %6099 = shalt.err (!%p6096_p9)
}
  0xd5   :  { %54 = dma.hbm_to_vmem [thread:$0]  %s7861_s1, 9216, %s49_s5, [#allocation6], %s6347_s7, %s6347_s7, %s6348_s30  }
  0xd6   :  { %s7862_s19 = sld [smem:[#allocation50_spill]] }
  0xdc   :  { %s6100_s9 = scalar_lea.hbm %s7862_s19, 1408 }
  0xdd   :  { %p6101_p10 = scmp.ne.s32.totalorder %s7862_s19, %s6100_s9  ;;  %p6104_p11 = scmp.lt.u32.totalorder %s6100_s9, %s7862_s19 }
  0xdf   :  { %p6106_p12 = pnand %p6104_p11, %p6101_p10 }
  0xe1   :  { %6109 = shalt.err (!%p6106_p12)
}
  0xe2   :  { %s6110_s4 = scalar_lea.vmem %s71_s8, 1408  ;;  %p6115_p0 = scmp.lt.s32.totalorder %s71_s8, %s71_s8 }
  0xe3   :  { %p6111_p13 = scmp.ne.s32.totalorder %s71_s8, %s6110_s4  ;;  %p6116_p1 = scmp.lt.s32.totalorder %s6110_s4, %s6110_s4 }
  0xe5   :  { %p6117_p2 = por %p6116_p1, %p6115_p0 }
  0xe7   :  { %p6118_p3 = pnand %p6117_p2, %p6111_p13 }
  0xe9   :  { %6121 = shalt.err (!%p6118_p3)
}
  0xea   :  { %76 = dma.hbm_to_vmem [thread:$0]  %s7862_s19, 1408, %s71_s8, [#allocation9], %s6347_s7, %s6347_s7, %s6348_s30  }
  0xeb   :  { %s6355_s14 = smov [#allocation13]   ;;  %s7863_s21 = sld [smem:[#allocation52_spill]] }
  0xec   :  { %s92_s3 = sshll.u32 %s6355_s14, 4  ;;  %s93_s3 = int_to_ptr.vmem [resolvable:$true] %s92_s3 }
  0xf1   :  { %s6122_s29 = scalar_lea.hbm %s7863_s21, 9984 }
  0xf2   :  { %p6123_p4 = scmp.ne.s32.totalorder %s7863_s21, %s6122_s29  ;;  %p6126_p5 = scmp.lt.u32.totalorder %s6122_s29, %s7863_s21 }
  0xf4   :  { %p6128_p6 = pnand %p6126_p5, %p6123_p4 }
  0xf6   :  { %6131 = shalt.err (!%p6128_p6)
}
  0xf7   :  { %s6132_s2 = scalar_lea.vmem %s93_s3, 9984  ;;  %p6137_p8 = scmp.lt.s32.totalorder %s93_s3, %s93_s3 }
  0xf8   :  { %p6133_p7 = scmp.ne.s32.totalorder %s93_s3, %s6132_s2  ;;  %p6138_p9 = scmp.lt.s32.totalorder %s6132_s2, %s6132_s2 }
  0xfa   :  { %p6139_p10 = por %p6138_p9, %p6137_p8 }
  0xfc   :  { %p6140_p11 = pnand %p6139_p10, %p6133_p7 }
  0xfe   :  { %6143 = shalt.err (!%p6140_p11)
}
  0xff   :  { %s6356_s8 = smov 256   ;;  %s6357_s19 = smov 16  }
 0x100   :  { %98 = dma.hbm_to_vmem [thread:$0]  %s7863_s21, 9984, %s93_s3, [#allocation12], %s6356_s8, %s6356_s8, %s6357_s19  }
 0x101   :  { %s6358_s25 = smov [#allocation16]   ;;  %s6359_s5 = smov [#allocation19]  }
 0x102   :  { %s114_s4 = sshll.u32 %s6358_s25, 4  ;;  %s138_s1 = sshll.u32 %s6359_s5, 4  ;;  %s115_s4 = int_to_ptr.vmem [resolvable:$true] %s114_s4  ;;  %s6666_s1 = int_to_ptr.vmem [resolvable:$true] %s138_s1 }
 0x103   :  { %s7864_s12 = sld [smem:[#allocation54_spill]] }
 0x109   :  { %s6144_s29 = scalar_lea.hbm %s7864_s12, 2816 }
 0x10a   :  { %p6145_p12 = scmp.ne.s32.totalorder %s7864_s12, %s6144_s29  ;;  %p6148_p13 = scmp.lt.u32.totalorder %s6144_s29, %s7864_s12 }
 0x10c   :  { %p6150_p0 = pnand %p6148_p13, %p6145_p12 }
 0x10e   :  { %6153 = shalt.err (!%p6150_p0)
}
 0x10f   :  { %s6154_s3 = scalar_lea.vmem %s115_s4, 2816  ;;  %p6159_p2 = scmp.lt.s32.totalorder %s115_s4, %s115_s4 }
 0x110   :  { %p6155_p1 = scmp.ne.s32.totalorder %s115_s4, %s6154_s3  ;;  %p6160_p3 = scmp.lt.s32.totalorder %s6154_s3, %s6154_s3 }
 0x112   :  { %p6161_p4 = por %p6160_p3, %p6159_p2 }
 0x114   :  { %p6162_p5 = pnand %p6161_p4, %p6155_p1 }
 0x116   :  { %6165 = shalt.err (!%p6162_p5)
}
 0x117   :  { %120 = dma.hbm_to_vmem [thread:$0]  %s7864_s12, 2816, %s115_s4, [#allocation15], %s6347_s7, %s6347_s7, %s6348_s30  }
 0x118   :  { %s7865_s16 = sld [smem:[#allocation56_spill]] }
 0x11e   :  { %s6166_s25 = scalar_lea.hbm %s7865_s16, 2816 }
 0x11f   :  { %p6167_p6 = scmp.ne.s32.totalorder %s7865_s16, %s6166_s25  ;;  %p6170_p7 = scmp.lt.u32.totalorder %s6166_s25, %s7865_s16 }
 0x121   :  { %p6172_p8 = pnand %p6170_p7, %p6167_p6 }
 0x123   :  { %6175 = shalt.err (!%p6172_p8)
}
 0x124   :  { %s6176_s26 = scalar_lea.vmem %s6666_s1, 2816  ;;  %p6181_p10 = scmp.lt.s32.totalorder %s6666_s1, %s6666_s1 }
 0x125   :  { %p6177_p9 = scmp.ne.s32.totalorder %s6666_s1, %s6176_s26  ;;  %p6182_p11 = scmp.lt.s32.totalorder %s6176_s26, %s6176_s26 }
 0x127   :  { %p6183_p12 = por %p6182_p11, %p6181_p10 }
 0x129   :  { %p6184_p13 = pnand %p6183_p12, %p6177_p9 }
 0x12b   :  { %6187 = shalt.err (!%p6184_p13)
}
 0x12c   :  { %144 = dma.hbm_to_vmem [thread:$0]  %s7865_s16, 2816, %s6666_s1, [#allocation18], %s6347_s7, %s6347_s7, %s6348_s30  }
 0x12d   :  { %s6360_s27 = smov [#allocation22]   ;;  %s6361_s9 = smov [#allocation25]  }
 0x12e   :  { %s164_s0 = sshll.u32 %s6360_s27, 4  ;;  %s188_s3 = sshll.u32 %s6361_s9, 4  ;;  %s165_s0 = int_to_ptr.vmem [resolvable:$true] %s164_s0  ;;  %s6703_s3 = int_to_ptr.vmem [resolvable:$true] %s188_s3 }
 0x12f   :  { %s6188_s8 = scalar_lea.hbm %s7822_s13, 2560 }
 0x130   :  { %p6189_p0 = scmp.ne.s32.totalorder %s7822_s13, %s6188_s8  ;;  %p6192_p1 = scmp.lt.u32.totalorder %s6188_s8, %s7822_s13 }
 0x132   :  { %p6194_p2 = pnand %p6192_p1, %p6189_p0 }
 0x134   :  { %6197 = shalt.err (!%p6194_p2)
}
 0x135   :  { %s6198_s1 = scalar_lea.vmem %s165_s0, 2560  ;;  %p6203_p4 = scmp.lt.s32.totalorder %s165_s0, %s165_s0 }
 0x136   :  { %p6199_p3 = scmp.ne.s32.totalorder %s165_s0, %s6198_s1  ;;  %p6204_p5 = scmp.lt.s32.totalorder %s6198_s1, %s6198_s1 }
 0x138   :  { %p6205_p6 = por %p6204_p5, %p6203_p4 }
 0x13a   :  { %p6206_p7 = pnand %p6205_p6, %p6199_p3 }
 0x13c   :  { %6209 = shalt.err (!%p6206_p7)
}
 0x13d   :  { %170 = dma.hbm_to_vmem [thread:$0]  %s7822_s13, 2560, %s165_s0, [#allocation21], %s6347_s7, %s6347_s7, %s6348_s30  }
 0x13e   :  { %s6210_s4 = scalar_lea.hbm %s7824_s15, 2560 }
 0x13f   :  { %p6211_p8 = scmp.ne.s32.totalorder %s7824_s15, %s6210_s4  ;;  %p6214_p9 = scmp.lt.u32.totalorder %s6210_s4, %s7824_s15 }
 0x141   :  { %p6216_p10 = pnand %p6214_p9, %p6211_p8 }
 0x143   :  { %6219 = shalt.err (!%p6216_p10)
}
 0x144   :  { %s6220_s2 = scalar_lea.vmem %s6703_s3, 2560  ;;  %p6225_p12 = scmp.lt.s32.totalorder %s6703_s3, %s6703_s3 }
 0x145   :  { %p6221_p11 = scmp.ne.s32.totalorder %s6703_s3, %s6220_s2  ;;  %p6226_p13 = scmp.lt.s32.totalorder %s6220_s2, %s6220_s2 }
 0x147   :  { %p6227_p0 = por %p6226_p13, %p6225_p12 }
 0x149   :  { %p6228_p1 = pnand %p6227_p0, %p6221_p11 }
 0x14b   :  { %6231 = shalt.err (!%p6228_p1)
}
 0x14c   :  { %194 = dma.hbm_to_vmem [thread:$0]  %s7824_s15, 2560, %s6703_s3, [#allocation24], %s6347_s7, %s6347_s7, %s6348_s30  }
 0x14d   :  { %s6362_s8 = smov [#allocation28]   ;;  %s6363_s25 = smov [#allocation31]  }
 0x14e   :  { %s212_s6 = sshll.u32 %s6362_s8, 4  ;;  %s238_s5 = sshll.u32 %s6363_s25, 4  ;;  %s213_s6 = int_to_ptr.vmem [resolvable:$true] %s212_s6  ;;  %s6740_s5 = int_to_ptr.vmem [resolvable:$true] %s238_s5 }
 0x14f   :  { %s6232_s16 = scalar_lea.hbm %s7826_s17, 6144 }
 0x150   :  { %p6233_p2 = scmp.ne.s32.totalorder %s7826_s17, %s6232_s16  ;;  %p6236_p3 = scmp.lt.u32.totalorder %s6232_s16, %s7826_s17 }
 0x152   :  { %p6238_p4 = pnand %p6236_p3, %p6233_p2 }
 0x154   :  { %6241 = shalt.err (!%p6238_p4)
}
 0x155   :  { %s6242_s15 = scalar_lea.vmem %s213_s6, 6144  ;;  %p6247_p6 = scmp.lt.s32.totalorder %s213_s6, %s213_s6 }
 0x156   :  { %p6243_p5 = scmp.ne.s32.totalorder %s213_s6, %s6242_s15  ;;  %p6248_p7 = scmp.lt.s32.totalorder %s6242_s15, %s6242_s15 }
 0x158   :  { %p6249_p8 = por %p6248_p7, %p6247_p6 }
 0x15a   :  { %p6250_p9 = pnand %p6249_p8, %p6243_p5 }
 0x15c   :  { %6253 = shalt.err (!%p6250_p9)
}
 0x15d   :  { %218 = dma.hbm_to_vmem [thread:$0]  %s7826_s17, 6144, %s213_s6, [#allocation27], %s6347_s7, %s6347_s7, %s6348_s30  }
 0x15e   :  { %s6254_s21 = scalar_lea.hbm %s7829_s20, 1024 }
 0x15f   :  { %p6255_p10 = scmp.ne.s32.totalorder %s7829_s20, %s6254_s21  ;;  %p6258_p11 = scmp.lt.u32.totalorder %s6254_s21, %s7829_s20 }
 0x161   :  { %p6260_p12 = pnand %p6258_p11, %p6255_p10 }
 0x163   :  { %6263 = shalt.err (!%p6260_p12)
}
 0x164   :  { %s6264_s25 = scalar_lea.vmem %s6740_s5, 1024  ;;  %p6269_p0 = scmp.lt.s32.totalorder %s6740_s5, %s6740_s5 }
 0x165   :  { %p6265_p13 = scmp.ne.s32.totalorder %s6740_s5, %s6264_s25  ;;  %p6270_p1 = scmp.lt.s32.totalorder %s6264_s25, %s6264_s25 }
 0x167   :  { %p6271_p2 = por %p6270_p1, %p6269_p0 }
 0x169   :  { %p6272_p3 = pnand %p6271_p2, %p6265_p13 }
 0x16b   :  { %6275 = shalt.err (!%p6272_p3)
}
 0x16c   :  { %244 = dma.hbm_to_vmem [thread:$0]  %s7829_s20, 1024, %s6740_s5, [#allocation30], %s6347_s7, %s6347_s7, %s6348_s30  }
 0x16d   :  { %s6364_s14 = smov [#allocation34]   ;;  %s6276_s29 = scalar_lea.hbm %s7831_s22, 2048 }
 0x16e   :  { %s262_s1 = sshll.u32 %s6364_s14, 4  ;;  %p6277_p4 = scmp.ne.s32.totalorder %s7831_s22, %s6276_s29  ;;  %s263_s1 = int_to_ptr.vmem [resolvable:$true] %s262_s1 }
 0x16f   :  { %p6280_p5 = scmp.lt.u32.totalorder %s6276_s29, %s7831_s22 }
 0x171   :  { %p6282_p6 = pnand %p6280_p5, %p6277_p4 }
 0x173   :  { %6285 = shalt.err (!%p6282_p6)
}
 0x174   :  { %s6286_s12 = scalar_lea.vmem %s263_s1, 2048  ;;  %p6291_p8 = scmp.lt.s32.totalorder %s263_s1, %s263_s1 }
 0x175   :  { %p6287_p7 = scmp.ne.s32.totalorder %s263_s1, %s6286_s12  ;;  %p6292_p9 = scmp.lt.s32.totalorder %s6286_s12, %s6286_s12 }
 0x177   :  { %p6293_p10 = por %p6292_p9, %p6291_p8 }
 0x179   :  { %p6294_p11 = pnand %p6293_p10, %p6287_p7 }
 0x17b   :  { %6297 = shalt.err (!%p6294_p11)
}
 0x17c   :  { %268 = dma.hbm_to_vmem [thread:$0]  %s7831_s22, 2048, %s263_s1, [#allocation33], %s6347_s7, %s6347_s7, %s6348_s30  }
 0x17d   :  { %6320 = dma.done.wait [#allocation6], 9216  }
 0x17e   :  { %6321 = vsyncadd [#allocation6], 4294958080 }
 0x17f   :  { %6322 = dma.done.wait [#allocation9], 1424  }
 0x180   :  { %6323 = vsyncadd [#allocation9], 4294965872 }
 0x181   :  { %6324 = dma.done.wait [#allocation12], 10112  }
 0x182   :  { %6325 = vsyncadd [#allocation12], 4294957184 }
 0x183   :  { %6326 = dma.done.wait [#allocation15], 2848  }
 0x184   :  { %6327 = vsyncadd [#allocation15], 4294964448 }
 0x185   :  { %6328 = dma.done.wait [#allocation18], 3072  }
 0x186   :  { %6329 = vsyncadd [#allocation18], 4294964224 }
 0x187   :  { %6330 = dma.done.wait [#allocation21], 2592  }
 0x188   :  { %6331 = vsyncadd [#allocation21], 4294964704 }
 0x189   :  { %6332 = dma.done.wait [#allocation24], 3072  }
 0x18a   :  { %6333 = vsyncadd [#allocation24], 4294964224 }
 0x18b   :  { %6334 = dma.done.wait [#allocation27], 8704  }
 0x18c   :  { %6335 = vsyncadd [#allocation27], 4294958592 }
 0x18d   :  { %6336 = dma.done.wait [#allocation30], 3072  }
 0x18e   :  { %6337 = vsyncadd [#allocation30], 4294964224 }
 0x18f   :  { %6338 = dma.done.wait [#allocation33], 4096  }
 0x190   :  { %6339 = vsyncadd [#allocation33], 4294963200  ;;  %v356_v0 = vld [vmem:[#allocation5 + $0x48] sm:$0xff]  ;;  %v357_v1 = vld [vmem:[#allocation5 + $0x50] sm:$0xff]  ;;  %s7866_s27 = sld [smem:[#allocation47_spill]]  ;;  %vm369_vm0 = vcmask 1046528  }
 0x191   :  { %v358_v2 = vld [vmem:[#allocation5 + $0x58] sm:$0xff]  ;;  %v5129_v3 = vpack.c.bf16 %v357_v1, %v356_v0  ;;  %v359_v4 = vld [vmem:[#allocation5 + $0x60] sm:$0xff]  ;;  %v360_v6 = vld [vmem:[#allocation5 + $0x68] sm:$0xff]  ;;  %vm377_vm1 = vcmask 588800   ;;  %vm805_vm2 = vcmask 1043456   ;;  %vm922_vm3 = vcmask 1042432  }
 0x192   :  { %v5133_v5 = vpack.c.bf16 %v359_v4, %v358_v2  ;;  %v361_v7 = vld [vmem:[#allocation5 + $0x70] sm:$0xff]  ;;  %v362_v13 = vld [vmem:[#allocation5 + $0x78] sm:$0xff]  ;;  %v363_v14 = vld [vmem:[#allocation5 + $0x80] sm:$0xff]  ;;  %vm1039_vm4 = vcmask 1041408   ;;  %vm1156_vm5 = vcmask 1040384   ;;  %vm574_vm6 = vcmask 1045504  }
 0x193   :  { %5130 = vmatprep.subr.bf16.mxu0 %v5129_v3  ;;  %v5137_v12 = vpack.c.bf16 %v361_v7, %v360_v6  ;;  %v5141_v16 = vpack.c.bf16 %v363_v14, %v362_v13  ;;  %v364_v25 = vld [vmem:[#allocation5 + $0x88] sm:$0xff]  ;;  %v346_v26 = vld [vmem:[#allocation5] sm:$0xff]  ;;  %v348_v36 = vld [vmem:[#allocation5 + $0x10] sm:$0xff]  ;;  %vm689_vm7 = vcmask 1044480   ;;  %vm6367_vm8 = vmmov 0   ;;  %s6369_s21 = smov [#allocation35]  }
 0x194   :  { %5132 = vmatpush3.bf16.msra.mxu0 %v5129_v3  ;;  %v347_v27 = vld [vmem:[#allocation5 + $0x8] sm:$0xff]  ;;  %v349_v37 = vld [vmem:[#allocation5 + $0x18] sm:$0xff]  ;;  %v350_v51 = vld [vmem:[#allocation5 + $0x20] sm:$0xff]  ;;  %vm1288_vm10 = vcmask 714752   ;;  %vm1286_vm12 = vcmask 719872   ;;  %vm1448_vm15 = vcmask 64512  }
 0x195   :  { %5134 = vmatprep.subr.bf16.mxu0 %v5133_v5  ;;  %v5145_v40 = vpack.c.bf16 %v347_v27, %v346_v26  ;;  %v5149_v47 = vpack.c.bf16 %v349_v37, %v348_v36  ;;  %v351_v52 = vld [vmem:[#allocation5 + $0x28] sm:$0xff]  ;;  %v352_v60 = vld [vmem:[#allocation5 + $0x30] sm:$0xff]  ;;  %v353_v61 = vld [vmem:[#allocation5 + $0x38] sm:$0xff]  ;;  %s4257_s2 = sshll.u32 %s6369_s21, 4  ;;  %s4258_s2 = int_to_ptr.vmem [resolvable:$true] %s4257_s2 }
 0x196   :  { %v6795_v8 = vld [vmem:[%s7866_s27] sm:$0xff]  ;;  %v6800_v9 = vld [vmem:[%s7866_s27 + $0x8] sm:$0xff]  ;;  %v6809_v17 = vld [vmem:[%s7866_s27 + $0x10] sm:$0xff]  ;;  %v5153_v57 = vpack.c.bf16 %v351_v52, %v350_v51  ;;  %v5157_v63 = vpack.c.bf16 %v353_v61, %v352_v60  ;;  %s6298_s13 = scalar_lea.vmem %s4258_s2, 32  ;;  %p6303_p13 = scmp.lt.s32.totalorder %s4258_s2, %s4258_s2 }
 0x197   :  { %v370_v10 = vrot.slane %v6795_v8, 1  ;;  %v371_v11 = vrot.slane %v6800_v9, 1  ;;  %v6814_v18 = vld [vmem:[%s7866_s27 + $0x18] sm:$0xff]  ;;  %v806_v19 = vrot.slane %v6795_v8, 4  ;;  %v807_v20 = vrot.slane %v6800_v9, 4  ;;  %v565_v1 = vld [vmem:[#allocation5 + $0x90] sm:$0xff]  ;;  %p6299_p12 = scmp.ne.s32.totalorder %s4258_s2, %s6298_s13  ;;  %p6304_p0 = scmp.lt.s32.totalorder %s6298_s13, %s6298_s13 }
 0x198   :  { %5136 = vmatpush3.bf16.msra.mxu0 %v5133_v5  ;;  %v809_v21 = vrot.slane %v6809_v17, 4  ;;  %v811_v22 = vrot.slane %v6814_v18, 4  ;;  %v923_v23 = vrot.slane %v6795_v8, 5  ;;  %v924_v24 = vrot.slane %v6800_v9, 5  ;;  %v354_v0 = vld [vmem:[#allocation5 + $0x40] sm:$0xff]  ;;  %v566_v2 = vld [vmem:[#allocation5 + $0x98] sm:$0xff] }
 0x199   :  { %v372_v15 = vsel %vm369_vm0, %v370_v10, %v371_v11  ;;  %5138 = vmatprep.subr.bf16.mxu0 %v5137_v12  ;;  %v373_v28 = vrot.slane %v6809_v17, 1  ;;  %v6824_v29 = vsel %vm805_vm2, %v806_v19, %v807_v20  ;;  %v375_v32 = vrot.slane %v6814_v18, 1  ;;  %v567_v3 = vld [vmem:[#allocation5 + $0xa0] sm:$0xff]  ;;  %v568_v4 = vld [vmem:[#allocation5 + $0xa8] sm:$0xff]  ;;  %v683_v27 = vld [vmem:[#allocation5 + $0xf0] sm:$0xff]  ;;  %p6305_p1 = por %p6304_p0, %p6303_p13 }
 0x19a   :  { %4659 = vmatprep.mubr.msk.f32.mxu0 %vm377_vm1, %v372_v15  ;;  %v6827_v30 = vsel %vm805_vm2, %v807_v20, %v809_v21  ;;  %v6832_v31 = vsel %vm805_vm2, %v809_v21, %v811_v22  ;;  %v6836_v33 = vsel %vm922_vm3, %v923_v23, %v924_v24  ;;  %v926_v34 = vrot.slane %v6809_v17, 5  ;;  %v571_v15 = vld [vmem:[#allocation5 + $0xc0] sm:$0xff]  ;;  %v573_v20 = vld [vmem:[#allocation5 + $0xd0] sm:$0xff]  ;;  %v680_v21 = vld [vmem:[#allocation5 + $0xd8] sm:$0xff] }
 0x19b   :  { %v928_v35 = vrot.slane %v6814_v18, 5  ;;  %v1040_v38 = vrot.slane %v6795_v8, 6  ;;  %v1041_v39 = vrot.slane %v6800_v9, 6  ;;  %v1043_v43 = vrot.slane %v6809_v17, 6  ;;  %v681_v23 = vld [vmem:[#allocation5 + $0xe0] sm:$0xff]  ;;  %v682_v26 = vld [vmem:[#allocation5 + $0xe8] sm:$0xff]  ;;  %p6306_p2 = pnand %p6305_p1, %p6299_p12 }
 0x19c   :  { %5140 = vmatpush3.bf16.msra.mxu0 %v5137_v12  ;;  %v6843_v41 = vsel %vm922_vm3, %v924_v24, %v926_v34  ;;  %v374_v44 = vsel %vm369_vm0, %v371_v11, %v373_v28  ;;  %v1045_v46 = vrot.slane %v6814_v18, 6  ;;  %v376_v48 = vsel %vm369_vm0, %v373_v28, %v375_v32  ;;  %v569_v11 = vld [vmem:[#allocation5 + $0xb0] sm:$0xff]  ;;  %v570_v12 = vld [vmem:[#allocation5 + $0xb8] sm:$0xff]  ;;  %v796_v51 = vld [vmem:[#allocation5 + $0x128] sm:$0xff] }
 0x19d   :  { %5142 = vmatprep.subr.bf16.mxu0 %v5141_v16  ;;  %v6848_v42 = vsel %vm922_vm3, %v926_v34, %v928_v35  ;;  %v6853_v45 = vsel %vm1039_vm4, %v1040_v38, %v1041_v39  ;;  %v6858_v49 = vsel %vm1039_vm4, %v1041_v39, %v1043_v43  ;;  %v1157_v50 = vrot.slane %v6795_v8, 7  ;;  %v684_v39 = vld [vmem:[#allocation5 + $0xf8] sm:$0xff] }
 0x19e   :  { %v6864_v53 = vsel %vm1039_vm4, %v1043_v43, %v1045_v46  ;;  %v1158_v54 = vrot.slane %v6800_v9, 7  ;;  %v1160_v55 = vrot.slane %v6809_v17, 7  ;;  %v1162_v56 = vrot.slane %v6814_v18, 7 }
 0x19f   :  { %v5161_v5 = vpack.c.bf16 %v566_v2, %v565_v1  ;;  %v5165_v6 = vpack.c.bf16 %v568_v4, %v567_v3  ;;  %v575_v7 = vrot.slane %v6795_v8, 2  ;;  %v576_v10 = vrot.slane %v6800_v9, 2  ;;  %v799_v1 = vld [vmem:[#allocation5 + $0x140] sm:$0xff]  ;;  %v800_v2 = vld [vmem:[#allocation5 + $0x148] sm:$0xff]  ;;  %v801_v3 = vld [vmem:[#allocation5 + $0x150] sm:$0xff] }
 0x1a0   :  { %5144 = vmatpush3.bf16.msra.mxu0 %v5141_v16  ;;  %v6872_v58 = vsel %vm1156_vm5, %v1157_v50, %v1158_v54  ;;  %v6875_v59 = vsel %vm1156_vm5, %v1158_v54, %v1160_v55  ;;  %v6880_v62 = vsel %vm1156_vm5, %v1160_v55, %v1162_v56  ;;  %v5169_v13 = vpack.c.bf16 %v570_v12, %v569_v11  ;;  %v572_v16 = vld [vmem:[#allocation5 + $0xc8] sm:$0xff]  ;;  %v795_v50 = vld [vmem:[#allocation5 + $0x120] sm:$0xff]  ;;  %v797_v55 = vld [vmem:[#allocation5 + $0x130] sm:$0xff] }
 0x1a1   :  { %4657 = vmatprep.subr.mxu0 %v364_v25  ;;  %v577_v14 = vsel %vm574_vm6, %v575_v7, %v576_v10  ;;  %v5173_v19 = vpack.c.bf16 %v572_v16, %v571_v15  ;;  %v578_v24 = vrot.slane %v6809_v17, 2  ;;  %v5177_v28 = vpack.c.bf16 %v681_v23, %v680_v21  ;;  %v802_v4 = vld [vmem:[#allocation5 + $0x158] sm:$0xff]  ;;  %v913_v7 = vld [vmem:[#allocation5 + $0x168] sm:$0xff] }
 0x1a2   :  { %v5181_v34 = vpack.c.bf16 %v683_v27, %v682_v26  ;;  %v690_v37 = vrot.slane %v6795_v8, 3  ;;  %v691_v38 = vrot.slane %v6800_v9, 3  ;;  %v693_v52 = vrot.slane %v6809_v17, 3  ;;  %v6918_v11 = vld [vmem:[%s7866_s27 + $0x20] sm:$0xf]  ;;  %v915_v12 = vld [vmem:[#allocation5 + $0x178] sm:$0xff] }
 0x1a3   :  { %v695_v54 = vrot.slane %v6814_v18, 3  ;;  %v5193_v60 = vpack.c.bf16 %v796_v51, %v795_v50  ;;  %v813_v15 = vrot.slane %v6918_v11, 4  ;;  %v917_v16 = vld [vmem:[#allocation5 + $0x188] sm:$0xff]  ;;  %v919_v23 = vld [vmem:[#allocation5 + $0x198] sm:$0xff]  ;;  %v1032_v27 = vld [vmem:[#allocation5 + $0x1c0] sm:$0xff] }
 0x1a4   :  { %4658 = vmatpush3.msra.mxu0 %v364_v25  ;;  %v580_v25 = vrot.slane %v6814_v18, 2  ;;  %v694_v61 = vsel %vm689_vm7, %v691_v38, %v693_v52  ;;  %v1031_v26 = vld [vmem:[#allocation5 + $0x1b8] sm:$0xff]  ;;  %v1152_v51 = vld [vmem:[#allocation5 + $0x220] sm:$0xff] }
 0x1a5   :  { %5146 = vmatprep.subr.bf16.mxu0 %v5145_v40  ;;  %4660 = vmatmul.mubr.msk.f32.vlgmr.msra.gmra.mrb[0].mxu0 %vm377_vm1, %v374_v44  ;;  %v692_v44 = vsel %vm689_vm7, %v690_v37, %v691_v38  ;;  %v1035_v37 = vld [vmem:[#allocation5 + $0x1d8] sm:$0xff] }
 0x1a6   :  { %5148 = vmatpush3.bf16.msra.mxu0 %v5145_v40  ;;  %4662 = vmatprep.mubr.msk.f32.mxu0 %vm377_vm1, %v376_v48  ;;  %v581_v36 = vsel %vm574_vm6, %v578_v24, %v580_v25  ;;  %v685_v40 = vld [vmem:[#allocation5 + $0x100] sm:$0xff]  ;;  %v687_v48 = vld [vmem:[#allocation5 + $0x110] sm:$0xff]  ;;  %v1151_v50 = vld [vmem:[#allocation5 + $0x218] sm:$0xff] }
 0x1a7   :  { %5150 = vmatprep.subr.bf16.mxu0 %v5149_v47  ;;  %v5185_v43 = vpack.c.bf16 %v685_v40, %v684_v39  ;;  %v1036_v39 = vld [vmem:[#allocation5 + $0x1e0] sm:$0xff]  ;;  %v1037_v40 = vld [vmem:[#allocation5 + $0x1e8] sm:$0xff] }
 0x1a9   :  { %4663 = vmatmul.mubr.msk.f32.gmra.mrb[2].mxu0 %vm377_vm1, %v375_v32  ;;  %v579_v32 = vsel %vm574_vm6, %v576_v10, %v578_v24  ;;  %v914_v10 = vld [vmem:[#allocation5 + $0x170] sm:$0xff]  ;;  %v920_v24 = vld [vmem:[#allocation5 + $0x1a0] sm:$0xff] }
 0x1aa   :  { %5152 = vmatpush3.bf16.msra.mxu0 %v5149_v47  ;;  %4683 = vmatprep.mubr.msk.f32.mxu0 %vm377_vm1, %v6795_v8  ;;  %v686_v47 = vld [vmem:[#allocation5 + $0x108] sm:$0xff] }
 0x1ab   :  { %5154 = vmatprep.subr.bf16.mxu0 %v5153_v57  ;;  %v5189_v8 = vpack.c.bf16 %v687_v48, %v686_v47  ;;  %v1149_v47 = vld [vmem:[#allocation5 + $0x208] sm:$0xff] }
 0x1ae   :  { %5156 = vmatpush3.bf16.msra.mxu0 %v5153_v57  ;;  %v798_v57 = vld [vmem:[#allocation5 + $0x138] sm:$0xff] }
 0x1af   :  { %5158 = vmatprep.subr.bf16.mxu0 %v5157_v63 }
 0x1b2   :  { %5160 = vmatpush3.bf16.msra.mxu0 %v5157_v63  ;;  %v5197_v63 = vpack.c.bf16 %v798_v57, %v797_v55  ;;  %v1154_v55 = vld [vmem:[#allocation5 + $0x230] sm:$0xff]  ;;  %v1155_v57 = vld [vmem:[#allocation5 + $0x238] sm:$0xff] }
 0x1b3   :  { %4681 = vmatprep.subr.mxu0 %v354_v0 }
 0x1b6   :  { %4682 = vmatpush3.msra.mxu0 %v354_v0  ;;  %v696_v0 = vsel %vm689_vm7, %v693_v52, %v695_v54  ;;  %v5249_v52 = vpack.c.bf16 %v1152_v51, %v1151_v50 }
 0x1b7   :  { %5162 = vmatprep.subr.bf16.mxu0 %v5161_v5  ;;  %4684 = vmatmul.mubr.msk.f32.vlgmr.msra.gmra.mrb[0].mxu0 %vm377_vm1, %v6800_v9  ;;  %v688_v9 = vld [vmem:[#allocation5 + $0x118] sm:$0xff] }
 0x1b8   :  { %5164 = vmatpush3.bf16.msra.mxu0 %v5161_v5  ;;  %4686 = vmatprep.mubr.msk.f32.mxu0 %vm377_vm1, %v6809_v17  ;;  %v5201_v17 = vpack.c.bf16 %v800_v2, %v799_v1  ;;  %v5205_v5 = vpack.c.bf16 %v802_v4, %v801_v3  ;;  %v1349_v1 = vld [vmem:[#allocation10 + $0x20] sm:$0xff]  ;;  %v6366_v2 = vmov 0.0   ;;  %v1352_v3 = vld [vmem:[#allocation10 + $0x38] sm:$0xff] }
 0x1b9   :  { %5166 = vmatprep.subr.bf16.mxu0 %v5165_v6  ;;  %340 = vst [vmem:[#allocation4] sm:$0xff] %v6366_v2  ;;  %4855 = vmatprep.mubr.msk.f32.mxu1 %vm6367_vm8, %v6366_v2 }
 0x1bb   :  { %4687 = vmatmul.mubr.msk.f32.gmra.mrb[2].mxu0 %vm377_vm1, %v6814_v18  ;;  %v1350_v18 = vld [vmem:[#allocation10 + $0x28] sm:$0xff] }
 0x1bc   :  { %5168 = vmatpush3.bf16.msra.mxu0 %v5165_v6  ;;  %4707 = vmatprep.mubr.msk.f32.mxu0 %vm377_vm1, %v577_v14  ;;  %v803_v6 = vld [vmem:[#allocation5 + $0x160] sm:$0xff]  ;;  %v5209_v14 = vpack.c.bf16 %v914_v10, %v913_v7  ;;  %v1355_v10 = vld [vmem:[#allocation10 + $0x50] sm:$0xff] }
 0x1bd   :  { %5170 = vmatprep.subr.bf16.mxu0 %v5169_v13 }
 0x1c0   :  { %5172 = vmatpush3.bf16.msra.mxu0 %v5169_v13  ;;  %v916_v13 = vld [vmem:[#allocation5 + $0x180] sm:$0xff] }
 0x1c1   :  { %5174 = vmatprep.subr.bf16.mxu0 %v5173_v19 }
 0x1c4   :  { %5176 = vmatpush3.bf16.msra.mxu0 %v5173_v19  ;;  %v918_v19 = vld [vmem:[#allocation5 + $0x190] sm:$0xff] }
 0x1c5   :  { %4705 = vmatprep.subr.mxu0 %v573_v20  ;;  %v5217_v21 = vpack.c.bf16 %v918_v19, %v917_v16 }
 0x1c8   :  { %4706 = vmatpush3.msra.mxu0 %v573_v20  ;;  %v814_v20 = vsel %vm805_vm2, %v811_v22, %v813_v15  ;;  %v1033_v22 = vld [vmem:[#allocation5 + $0x1c8] sm:$0xff] }
 0x1c9   :  { %5178 = vmatprep.subr.bf16.mxu0 %v5177_v28  ;;  %4708 = vmatmul.mubr.msk.f32.vlgmr.msra.gmra.mrb[0].mxu0 %vm377_vm1, %v579_v32  ;;  %v930_v32 = vrot.slane %v6918_v11, 5 }
 0x1ca   :  { %5180 = vmatpush3.bf16.msra.mxu0 %v5177_v28  ;;  %4710 = vmatprep.mubr.msk.f32.mxu0 %vm377_vm1, %v581_v36  ;;  %v1034_v36 = vld [vmem:[#allocation5 + $0x1d0] sm:$0xff] }
 0x1cb   :  { %5182 = vmatprep.subr.bf16.mxu0 %v5181_v34  ;;  %v5233_v38 = vpack.c.bf16 %v1035_v37, %v1034_v36 }
 0x1cd   :  { %4711 = vmatmul.mubr.msk.f32.gmra.mrb[2].mxu0 %vm377_vm1, %v580_v25  ;;  %v921_v25 = vld [vmem:[#allocation5 + $0x1a8] sm:$0xff] }
 0x1ce   :  { %5184 = vmatpush3.bf16.msra.mxu0 %v5181_v34  ;;  %4731 = vmatprep.mubr.msk.f32.mxu0 %vm377_vm1, %v692_v44  ;;  %v5229_v34 = vpack.c.bf16 %v1033_v22, %v1032_v27  ;;  %v1148_v44 = vld [vmem:[#allocation5 + $0x200] sm:$0xff] }
 0x1cf   :  { %5186 = vmatprep.subr.bf16.mxu0 %v5185_v43 }
 0x1d2   :  { %5188 = vmatpush3.bf16.msra.mxu0 %v5185_v43  ;;  %v1038_v43 = vld [vmem:[#allocation5 + $0x1f0] sm:$0xff] }
 0x1d3   :  { %5190 = vmatprep.subr.bf16.mxu0 %v5189_v8 }
 0x1d6   :  { %5192 = vmatpush3.bf16.msra.mxu0 %v5189_v8  ;;  %v1047_v8 = vrot.slane %v6918_v11, 6 }
 0x1d7   :  { %4729 = vmatprep.subr.mxu0 %v688_v9 }
 0x1da   :  { %4730 = vmatpush3.msra.mxu0 %v688_v9 }
 0x1db   :  { %5194 = vmatprep.subr.bf16.mxu0 %v5193_v60  ;;  %4732 = vmatmul.mubr.msk.f32.vlgmr.msra.gmra.mrb[0].mxu0 %vm377_vm1, %v694_v61 }
 0x1dc   :  { %5196 = vmatpush3.bf16.msra.mxu0 %v5193_v60  ;;  %4734 = vmatprep.mubr.msk.f32.mxu0 %vm377_vm1, %v696_v0  ;;  %v1346_v60 = vld [vmem:[#allocation10 + $0x8] sm:$0xff]  ;;  %v1348_v0 = vld [vmem:[#allocation10 + $0x18] sm:$0xff] }
 0x1dd   :  { %5198 = vmatprep.subr.bf16.mxu0 %v5197_v63 }
 0x1df   :  { %4735 = vmatmul.mubr.msk.f32.gmra.mrb[2].mxu0 %vm377_vm1, %v695_v54  ;;  %v1153_v54 = vld [vmem:[#allocation5 + $0x228] sm:$0xff] }
 0x1e0   :  { %5200 = vmatpush3.bf16.msra.mxu0 %v5197_v63  ;;  %4755 = vmatprep.mubr.msk.f32.mxu0 %vm377_vm1, %v6824_v29  ;;  %v5213_v29 = vpack.c.bf16 %v916_v13, %v915_v12  ;;  %v6365_v63 = vmov 0.0|0.0  }
 0x1e1   :  { %5202 = vmatprep.subr.bf16.mxu0 %v5201_v17  ;;  %5257 = vmatprep.subr.bf16.mxu1 %v6365_v63 }
 0x1e4   :  { %5204 = vmatpush3.bf16.msra.mxu0 %v5201_v17  ;;  %v1351_v17 = vld [vmem:[#allocation10 + $0x30] sm:$0xff] }
 0x1e5   :  { %5206 = vmatprep.subr.bf16.mxu0 %v5205_v5  ;;  %v5267_v4 = vpack.c.bf16 %v1352_v3, %v1351_v17 }
 0x1e8   :  { %5208 = vmatpush3.bf16.msra.mxu0 %v5205_v5  ;;  %v1353_v5 = vld [vmem:[#allocation10 + $0x40] sm:$0xff] }
 0x1e9   :  { %4753 = vmatprep.subr.mxu0 %v803_v6 }
 0x1ec   :  { %4754 = vmatpush3.msra.mxu0 %v803_v6  ;;  %v1354_v6 = vld [vmem:[#allocation10 + $0x48] sm:$0xff] }
 0x1ed   :  { %5210 = vmatprep.subr.bf16.mxu0 %v5209_v14  ;;  %4756 = vmatmul.mubr.msk.f32.vlgmr.msra.gmra.mrb[0].mxu0 %vm377_vm1, %v6827_v30  ;;  %v5221_v30 = vpack.c.bf16 %v920_v24, %v919_v23  ;;  %v5270_v7 = vpack.c.bf16 %v1354_v6, %v1353_v5 }
 0x1ee   :  { %5212 = vmatpush3.bf16.msra.mxu0 %v5209_v14  ;;  %4758 = vmatprep.mubr.msk.f32.mxu0 %vm377_vm1, %v6832_v31  ;;  %v1030_v31 = vld [vmem:[#allocation5 + $0x1b0] sm:$0xff] }
 0x1ef   :  { %5214 = vmatprep.subr.bf16.mxu0 %v5213_v29  ;;  %v5225_v28 = vpack.c.bf16 %v1031_v26, %v1030_v31 }
 0x1f1   :  { %4759 = vmatmul.mubr.msk.f32.gmra.mrb[2].mxu0 %vm377_vm1, %v814_v20 }
 0x1f2   :  { %5216 = vmatpush3.bf16.msra.mxu0 %v5213_v29  ;;  %4779 = vmatprep.mubr.msk.f32.mxu0 %vm377_vm1, %v6836_v33  ;;  %v931_v33 = vsel %vm922_vm3, %v928_v35, %v930_v32  ;;  %v1150_v35 = vld [vmem:[#allocation5 + $0x210] sm:$0xff] }
 0x1f3   :  { %5218 = vmatprep.subr.bf16.mxu0 %v5217_v21  ;;  %v5245_v9 = vpack.c.bf16 %v1150_v35, %v1149_v47 }
 0x1f6   :  { %5220 = vmatpush3.bf16.msra.mxu0 %v5217_v21 }
 0x1f7   :  { %5222 = vmatprep.subr.bf16.mxu0 %v5221_v30 }
 0x1fa   :  { %5224 = vmatpush3.bf16.msra.mxu0 %v5221_v30 }
 0x1fb   :  { %4777 = vmatprep.subr.mxu0 %v921_v25 }
 0x1fe   :  { %4778 = vmatpush3.msra.mxu0 %v921_v25 }
 0x1ff   :  { %5226 = vmatprep.subr.bf16.mxu0 %v5225_v28  ;;  %4780 = vmatmul.mubr.msk.f32.vlgmr.msra.gmra.mrb[0].mxu0 %vm377_vm1, %v6843_v41  ;;  %v5237_v41 = vpack.c.bf16 %v1037_v40, %v1036_v39 }
 0x200   :  { %5228 = vmatpush3.bf16.msra.mxu0 %v5225_v28  ;;  %4782 = vmatprep.mubr.msk.f32.mxu0 %vm377_vm1, %v6848_v42  ;;  %v1147_v42 = vld [vmem:[#allocation5 + $0x1f8] sm:$0xff] }
 0x201   :  { %5230 = vmatprep.subr.bf16.mxu0 %v5229_v34  ;;  %v5241_v48 = vpack.c.bf16 %v1148_v44, %v1147_v42 }
 0x203   :  { %4783 = vmatmul.mubr.msk.f32.gmra.mrb[2].mxu0 %vm377_vm1, %v931_v33 }
 0x204   :  { %5232 = vmatpush3.bf16.msra.mxu0 %v5229_v34  ;;  %4803 = vmatprep.mubr.msk.f32.mxu0 %vm377_vm1, %v6853_v45  ;;  %v1048_v45 = vsel %vm1039_vm4, %v1045_v46, %v1047_v8 }
 0x205   :  { %5234 = vmatprep.subr.bf16.mxu0 %v5233_v38 }
 0x208   :  { %5236 = vmatpush3.bf16.msra.mxu0 %v5233_v38 }
 0x209   :  { %5238 = vmatprep.subr.bf16.mxu0 %v5237_v41 }
 0x20c   :  { %5240 = vmatpush3.bf16.msra.mxu0 %v5237_v41 }
 0x20d   :  { %4801 = vmatprep.subr.mxu0 %v1038_v43 }
 0x210   :  { %4802 = vmatpush3.msra.mxu0 %v1038_v43 }
 0x211   :  { %5242 = vmatprep.subr.bf16.mxu0 %v5241_v48  ;;  %4804 = vmatmul.mubr.msk.f32.vlgmr.msra.gmra.mrb[0].mxu0 %vm377_vm1, %v6858_v49  ;;  %v5253_v49 = vpack.c.bf16 %v1154_v55, %v1153_v54 }
 0x212   :  { %5244 = vmatpush3.bf16.msra.mxu0 %v5241_v48  ;;  %4806 = vmatprep.mubr.msk.f32.mxu0 %vm377_vm1, %v6864_v53  ;;  %v1164_v53 = vrot.slane %v6918_v11, 7  ;;  %v4307_v11 = vld [vmem:[#allocation8] ss:$0 sm:$0xff] }
 0x213   :  { %5246 = vmatprep.subr.bf16.mxu0 %v5245_v9 }
 0x214   :  { %v1165_v46 = vsel %vm1156_vm5, %v1162_v56, %v1164_v53  ;;  %v5264_v56 = vpack.c.bf16 %v1350_v18, %v1349_v1 }
 0x215   :  { %4807 = vmatmul.mubr.msk.f32.gmra.mrb[2].mxu0 %vm377_vm1, %v1048_v45 }
 0x216   :  { %5248 = vmatpush3.bf16.msra.mxu0 %v5245_v9  ;;  %4827 = vmatprep.mubr.msk.f32.mxu0 %vm377_vm1, %v6872_v58  ;;  %v1345_v58 = vld [vmem:[#allocation10] sm:$0xff] }
 0x217   :  { %5250 = vmatprep.subr.bf16.mxu0 %v5249_v52  ;;  %v5258_v61 = vpack.c.bf16 %v1346_v60, %v1345_v58 }
 0x219   :  { %5259 = vmatpush3.bf16.msra.mxu1 %v5258_v61 }
 0x21a   :  { %5252 = vmatpush3.bf16.msra.mxu0 %v5249_v52  ;;  %5260 = vmatprep.subr.bf16.mxu1 %v6365_v63 }
 0x21b   :  { %5254 = vmatprep.subr.bf16.mxu0 %v5253_v49 }
 0x21e   :  { %5256 = vmatpush3.bf16.msra.mxu0 %v5253_v49 }
 0x21f   :  { %4825 = vmatprep.subr.mxu0 %v1155_v57 }
 0x222   :  { %4826 = vmatpush3.msra.mxu0 %v1155_v57 }
 0x223   :  { %4828 = vmatmul.mubr.msk.f32.vlgmr.msra.gmra.mrb[0].mxu0 %vm377_vm1, %v6875_v59  ;;  %5377 = vmatprep.subr.bf16.mxu0 %v6365_v63  ;;  %v1347_v59 = vld [vmem:[#allocation10 + $0x10] sm:$0xff] }
 0x224   :  { %4830 = vmatprep.mubr.msk.f32.mxu0 %vm377_vm1, %v6880_v62  ;;  %v5261_v62 = vpack.c.bf16 %v1348_v0, %v1347_v59 }
 0x226   :  { %5262 = vmatpush3.bf16.msra.mxu1 %v5261_v62 }
 0x227   :  { %4831 = vmatmul.mubr.msk.f32.gmra.mrb[2].mxu0 %vm377_vm1, %v1165_v46  ;;  %5263 = vmatprep.subr.bf16.mxu1 %v6365_v63  ;;  %vm330_vm1 = vcmask 850944  }
 0x228   :  { %4867 = vmatprep.mubr.msk.f32.mxu0 %vm6367_vm8, %v6366_v2  ;;  %332 = vst.msk [vmem:[#allocation2 + $0x8] sm:$0xff] %vm330_vm1, %v6366_v2  ;;  %333 = vst.msk [vmem:[#allocation2 + $0x10] sm:$0xff] %vm330_vm1, %v6366_v2 }
 0x229   :  { %331 = vst.msk [vmem:[#allocation2] sm:$0xff] %vm330_vm1, %v6366_v2 }
 0x22a   :  { %5265 = vmatpush3.bf16.msra.mxu1 %v5264_v56 }
 0x22b   :  { %5266 = vmatprep.subr.bf16.mxu1 %v6365_v63 }
 0x22e   :  { %5268 = vmatpush3.bf16.msra.mxu1 %v5267_v4 }
 0x22f   :  { %5269 = vmatprep.subr.bf16.mxu1 %v6365_v63 }
 0x232   :  { %5271 = vmatpush3.bf16.msra.mxu1 %v5270_v7 }
 0x233   :  { %4853 = vmatprep.subr.mxu1 %v6366_v2 }
 0x236   :  { %4854 = vmatpush3.msra.mxu1 %v1355_v10 }
 0x237   :  { %4858 = vmatprep.subr.mxu1 %v6366_v2 }
 0x2f6   :  { %v4829_v12 = vpop.f32.mrb[0].mxu0 }
 0x2f7   :  { %v1271_v13 = vadd.f32 %v4829_v12, %v4307_v11  ;;  %v1240_v14 = vpop.f32.mrb[1].mxu0 }
 0x2f8   :  { %v1270_v15 = vadd.f32 %v4307_v11, %v1240_v14 }
 0x2f9   :  { %vm1275_vm9 = vcmp.gt.f32.partialorder %v1271_v13, 0.0  ;;  %v1279_v29 = vmul.f32 0.01, %v1271_v13 }
 0x2fa   :  { %vm1274_vm11 = vcmp.gt.f32.partialorder %v1270_v15, 0.0  ;;  %v1278_v16 = vmul.f32 0.01, %v1270_v15  ;;  %v4832_v19 = vpop.f32.mrb[2].mxu0 }
 0x2fb   :  { %v6975_v20 = vsel %vm1275_vm9, %v1271_v13, %v1279_v29  ;;  %v1273_v21 = vadd.f32 %v4832_v19, %v4307_v11  ;;  %v1250_v23 = vpop.f32.mrb[3].mxu0  ;;  %vm334_vm9 = vcmask 844800  }
 0x2fc   :  { %v1289_v24 = vsel %vm1288_vm10, %v6975_v20, 0.0  ;;  %v1298_v30 = vmul.f32 %v6975_v20, %v6975_v20  ;;  %v6981_v25 = vsel %vm1274_vm11, %v1270_v15, %v1278_v16  ;;  %v1272_v31 = vadd.f32 %v4307_v11, %v1250_v23  ;;  %v1447_v15 = vld [vmem:[#allocation11] sm:$0xff]  ;;  %335 = vst.msk [vmem:[#allocation2 + $0x18] sm:$0x3] %vm334_vm9, %v6366_v2 }
 0x2fd   :  { %v1297_v26 = vmul.f32 %v6981_v25, %v6981_v25  ;;  %vm1277_vm13 = vcmp.gt.f32.partialorder %v1273_v21, 0.0  ;;  %v1281_v27 = vmul.f32 0.01, %v1273_v21  ;;  %v1287_v22 = vsel %vm1286_vm12, %v6981_v25, 0.0 }
 0x2fe   :  { %v1300_v28 = vsel %vm1288_vm10, %v1298_v30, 0.0  ;;  %vm1276_vm14 = vcmp.gt.f32.partialorder %v1272_v31, 0.0  ;;  %v1280_v32 = vmul.f32 0.01, %v1272_v31  ;;  %v1290_v34 = vadd.f32 %v1289_v24, %v1287_v22 }
 0x2ff   :  { %v6988_v36 = vsel %vm1277_vm13, %v1273_v21, %v1281_v27  ;;  %v1299_v37 = vsel %vm1286_vm12, %v1297_v26, 0.0  ;;  %vm1546_vm11 = vcmask 785472   ;;  %vm1548_vm13 = vcmask 780352  }
 0x300   :  { %v1311_v33 = vrot.slane %v6988_v36, 2  ;;  %v1325_v38 = vmul.f32 %v6988_v36, %v6988_v36  ;;  %v6994_v39 = vsel %vm1276_vm14, %v1272_v31, %v1280_v32  ;;  %v1291_v40 = vrot.slane %v1290_v34, 4 }
 0x301   :  { %v1310_v41 = vrot.slane %v6994_v39, 2  ;;  %v1324_v43 = vmul.f32 %v6994_v39, %v6994_v39  ;;  %v1301_v42 = vadd.f32 %v1300_v28, %v1299_v37  ;;  %v1594_v37 = vld [vmem:[#allocation13 + $0xd8] sm:$0xff] }
 0x302   :  { %v1329_v44 = vrot.slane %v1325_v38, 2  ;;  %v1292_v48 = vadd.f32 %v1291_v40, %v1290_v34  ;;  %v1316_v9 = vsel %vm1288_vm10, %v1311_v33, 0.0  ;;  %v1593_v38 = vld [vmem:[#allocation13 + $0xd0] sm:$0xff] }
 0x303   :  { %v1312_v47 = vsel %vm574_vm6, %v1310_v41, %v1311_v33  ;;  %v1328_v35 = vrot.slane %v1324_v43, 2  ;;  %v1302_v8 = vrot.slane %v1301_v42, 4  ;;  %v1596_v33 = vld [vmem:[#allocation13 + $0xe8] sm:$0xff]  ;;  %v1595_v41 = vld [vmem:[#allocation13 + $0xe0] sm:$0xff]  ;;  %v1598_v43 = vld [vmem:[#allocation13 + $0xf8] sm:$0xff] }
 0x304   :  { %v1315_v50 = vsel %vm1286_vm12, %v1312_v47, 0.0  ;;  %v1334_v54 = vsel %vm1288_vm10, %v1329_v44, 0.0  ;;  %v1293_v49 = vrot.slane %v1292_v48, 2  ;;  %v5272_v40 = vpack.c.bf16 %v1596_v33, %v1594_v37  ;;  %v1566_v37 = vld [vmem:[#allocation13] sm:$0xff]  ;;  %v1568_v33 = vld [vmem:[#allocation13 + $0x10] sm:$0xff] }
 0x305   :  { %v1330_v51 = vsel %vm574_vm6, %v1328_v35, %v1329_v44  ;;  %v1303_v45 = vadd.f32 %v1302_v8, %v1301_v42  ;;  %v1317_v52 = vadd.f32 %v1316_v9, %v1315_v50  ;;  %v1600_v42 = vld [vmem:[#allocation13 + $0x108] sm:$0xff]  ;;  %v5274_v44 = vpack.c.bf16 %v1595_v41, %v1593_v38  ;;  %v1597_v35 = vld [vmem:[#allocation13 + $0xf0] sm:$0xff]  ;;  %v1602_v8 = vld [vmem:[#allocation13 + $0x118] sm:$0xff] }
 0x306   :  { %v1333_v55 = vsel %vm1286_vm12, %v1330_v51, 0.0  ;;  %v1294_v61 = vadd.f32 %v1293_v49, %v1292_v48  ;;  %v5276_v47 = vpack.c.bf16 %v1600_v42, %v1598_v43  ;;  %v1599_v48 = vld [vmem:[#allocation13 + $0x100] sm:$0xff]  ;;  %v1604_v9 = vld [vmem:[#allocation13 + $0x128] sm:$0xff]  ;;  %v1606_v49 = vld [vmem:[#allocation13 + $0x138] sm:$0xff]  ;;  %vm1558_vm10 = vcmask 785474  }
 0x307   :  { %v1304_v57 = vrot.slane %v1303_v45, 2  ;;  %v1318_v53 = vrot.slane %v1317_v52, 4  ;;  %v1335_v46 = vadd.f32 %v1334_v54, %v1333_v55  ;;  %v5278_v50 = vpack.c.bf16 %v1599_v48, %v1597_v35  ;;  %v1571_v38 = vld [vmem:[#allocation13 + $0x28] sm:$0xff]  ;;  %v1570_v48 = vld [vmem:[#allocation13 + $0x20] sm:$0xff] }
 0x308   :  { %v1295_v56 = vrot.slane %v1294_v61, 1  ;;  %v5280_v51 = vpack.c.bf16 %v1604_v9, %v1602_v8  ;;  %v1522_v55 = vlaneseq  ;;  %v1572_v8 = vld [vmem:[#allocation13 + $0x30] sm:$0xff] }
 0x309   :  { %v1319_v58 = vadd.f32 %v1318_v53, %v1317_v52  ;;  %v1336_v60 = vrot.slane %v1335_v46, 4  ;;  %v1305_v59 = vadd.f32 %v1304_v57, %v1303_v45  ;;  %v1601_v45 = vld [vmem:[#allocation13 + $0x110] sm:$0xff]  ;;  %v1603_v52 = vld [vmem:[#allocation13 + $0x120] sm:$0xff]  ;;  %v1608_v57 = vld [vmem:[#allocation13 + $0x148] sm:$0xff] }
 0x30a   :  { %v1296_v7 = vadd.f32 %v1295_v56, %v1294_v61  ;;  %v5282_v54 = vpack.c.bf16 %v1603_v52, %v1601_v45  ;;  %v1523_v53 = vshrl.u32 %v1522_v55, 7  ;;  %v1611_v56 = vld [vmem:[#allocation13 + $0x160] sm:$0xff]  ;;  %v1577_v45 = vld [vmem:[#allocation13 + $0x58] sm:$0xff] }
 0x30b   :  { %v1320_v0 = vrot.slane %v1319_v58, 2  ;;  %v1337_v62 = vadd.f32 %v1336_v60, %v1335_v46  ;;  %v1306_v17 = vrot.slane %v1305_v59, 1  ;;  %v5284_v46 = vpack.c.bf16 %v1608_v57, %v1606_v49  ;;  %v1607_v60 = vld [vmem:[#allocation13 + $0x140] sm:$0xff]  ;;  %v1576_v57 = vld [vmem:[#allocation13 + $0x50] sm:$0xff] }
 0x30c   :  { %v1574_v49 = vld [vmem:[#allocation13 + $0x40] sm:$0xff] }
 0x30d   :  { %v1321_v1 = vadd.f32 %v1320_v0, %v1319_v58  ;;  %v1338_v18 = vrot.slane %v1337_v62, 2  ;;  %v1307_v10 = vadd.f32 %v1306_v17, %v1305_v59  ;;  %v1605_v58 = vld [vmem:[#allocation13 + $0x130] sm:$0xff]  ;;  %v1610_v59 = vld [vmem:[#allocation13 + $0x158] sm:$0xff]  ;;  %v1612_v0 = vld [vmem:[#allocation13 + $0x168] sm:$0xff] }
 0x30e   :  { %v5286_v61 = vpack.c.bf16 %v1607_v60, %v1605_v58  ;;  %v1579_v58 = vld [vmem:[#allocation13 + $0x68] sm:$0xff]  ;;  %v1581_v60 = vld [vmem:[#allocation13 + $0x78] sm:$0xff] }
 0x30f   :  { %v1322_v3 = vrot.slane %v1321_v1, 1  ;;  %v1339_v4 = vadd.f32 %v1338_v18, %v1337_v62  ;;  %v7018_v62 = vsub.s32 0, %v1523_v53  ;;  %v1609_v18 = vld [vmem:[#allocation13 + $0x150] sm:$0xff] }
 0x310   :  { %v5290_v17 = vpack.c.bf16 %v1611_v56, %v1609_v18  ;;  %v1583_v56 = vld [vmem:[#allocation13 + $0x88] sm:$0xff] }
 0x311   :  { %v1323_v5 = vadd.f32 %v1322_v3, %v1321_v1  ;;  %v1340_v6 = vrot.slane %v1339_v4, 1  ;;  %v5288_v1 = vpack.c.bf16 %v1612_v0, %v1610_v59  ;;  %v1614_v3 = vld [vmem:[#allocation13 + $0x178] sm:$0xff]  ;;  %v5308_v59 = vpack.c.bf16 %v1581_v60, %v1579_v58  ;;  %v1578_v0 = vld [vmem:[#allocation13 + $0x60] sm:$0xff]  ;;  %v1831_v58 = vld [vmem:[#allocation13 + $0x250] sm:$0xff] }
 0x313   :  { %v1341_v11 = vadd.f32 %v1340_v6, %v1339_v4  ;;  %v1342_v12 = vadd.f32 %v1323_v5, %v1296_v7  ;;  %v1616_v4 = vld [vmem:[#allocation13 + $0x188] sm:$0xff]  ;;  %v1613_v5 = vld [vmem:[#allocation13 + $0x170] sm:$0xff]  ;;  %v7020_v6 = vsub.s32 1, %v1523_v53 }
 0x314   :  { %v5292_v7 = vpack.c.bf16 %v1616_v4, %v1614_v3 }
 0x315   :  { %v1343_v13 = vadd.f32 %v1341_v11, %v1307_v10  ;;  %v1615_v10 = vld [vmem:[#allocation13 + $0x180] sm:$0xff] }
 0x317   :  { %v1344_v14 = vsel %vm1156_vm5, %v1342_v12, %v1343_v13  ;;  %v5294_v12 = vpack.c.bf16 %v1615_v10, %v1613_v5  ;;  %v1582_v5 = vld [vmem:[#allocation13 + $0x80] sm:$0xff]  ;;  %v1587_v10 = vld [vmem:[#allocation13 + $0xa8] sm:$0xff] }
 0x318   :  { %4856 = vmatmul.mubr.msk.f32.vlgmr.msra.gmra.mrb[0].mxu1 %vm1286_vm12, %v1344_v14  ;;  %vm1560_vm12 = vcmask 782400  }
 0x319   :  { %4860 = vmatprep.mubr.msk.f32.mxu1 %vm6367_vm8, %v6366_v2  ;;  %4859 = vmatpush3.msra.mxu1 %v1447_v15  ;;  %v1567_v15 = vld [vmem:[#allocation13 + $0x8] sm:$0xff] }
 0x31a   :  { %5273 = vmatprep.subr.bf16.mxu1 %v5272_v40  ;;  %v1573_v40 = vld [vmem:[#allocation13 + $0x38] sm:$0xff] }
 0x31b   :  { %v5300_v35 = vpack.c.bf16 %v1573_v40, %v1571_v38  ;;  %v1819_v38 = vld [vmem:[#allocation13 + $0x1f0] sm:$0xff]  ;;  %v1822_v40 = vld [vmem:[#allocation13 + $0x208] sm:$0xff] }
 0x3eb   :  { %v1425_v29 = vpop.f32.mrb[0].mxu1 }
 0x3ec   :  { %v1429_v16 = vmul.f32 0.004132231, %v1425_v29  ;;  %v4857_v19 = vpop.f32.mrb[1].mxu1  ;;  %v1569_v29 = vld [vmem:[#allocation13 + $0x18] sm:$0xff] }
 0x3ee   :  { %v1430_v21 = vmul.f32 %v1429_v16, %v1429_v16  ;;  %v1438_v27 = vsub.f32 0.0, %v1429_v16 }
 0x3f0   :  { %v1432_v23 = vrot.slane %v1430_v21, 7 }
 0x3f2   :  { %v1434_v24 = vsub.f32 %v1429_v16, %v1432_v23  ;;  %v1618_v16 = vld [vmem:[#allocation13 + $0x198] sm:$0xff] }
 0x3f4   :  { %v1435_v30 = vmax.f32 %v1434_v24, 0.0  ;;  %v5296_v24 = vpack.c.bf16 %v1569_v29, %v1567_v15  ;;  %v1588_v15 = vld [vmem:[#allocation13 + $0xb0] sm:$0xff] }
 0x3f6   :  { %v1436_v31 = vadd.f32 1e-05, %v1435_v30 }
 0x3f8   :  { %5870 = vrsqrt.f32 %v1436_v31 }
 0x402   :  { %v5871_v26 = vpop.eup %5870 }
 0x403   :  { %v1440_v22 = vrot.slane %v5871_v26, 1 }
 0x405   :  { %v1442_v28 = vmul.f32 %v1440_v22, %v1438_v27 }
 0x407   :  { %v1444_v32 = vrot.slane %v1442_v28, 7 }
 0x409   :  { %v1446_v34 = vsel %vm1156_vm5, %v1440_v22, %v1444_v32  ;;  %v1617_v22 = vld [vmem:[#allocation13 + $0x190] sm:$0xff] }
 0x40a   :  { %4861 = vmatmul.mubr.msk.f32.vlgmr.msra.gmra.mrb[2].mxu1 %vm1448_vm15, %v1446_v34 }
 0x40b   :  { %1700 = vmatprep.mubr.f32.mxu1 %v6366_v2  ;;  %5275 = vmatpush1.bf16.msra.mxu1 %v5274_v44 }
 0x40c   :  { %5277 = vmatprep.subr.bf16.mxu1 %v5276_v47  ;;  %v5298_v47 = vpack.c.bf16 %v1568_v33, %v1566_v37  ;;  %v1817_v33 = vld [vmem:[#allocation13 + $0x1e0] sm:$0xff] }
 0x40f   :  { %5279 = vmatpush1.bf16.msra.mxu1 %v5278_v50 }
 0x410   :  { %5281 = vmatprep.subr.bf16.mxu1 %v5280_v51  ;;  %v1575_v51 = vld [vmem:[#allocation13 + $0x48] sm:$0xff] }
 0x411   :  { %v5304_v55 = vpack.c.bf16 %v1577_v45, %v1575_v51  ;;  %v1825_v45 = vld [vmem:[#allocation13 + $0x220] sm:$0xff] }
 0x413   :  { %5283 = vmatpush1.bf16.msra.mxu1 %v5282_v54  ;;  %v5302_v54 = vpack.c.bf16 %v1572_v8, %v1570_v48  ;;  %v1823_v48 = vld [vmem:[#allocation13 + $0x210] sm:$0xff]  ;;  %v1826_v8 = vld [vmem:[#allocation13 + $0x228] sm:$0xff] }
 0x414   :  { %5285 = vmatprep.subr.bf16.mxu1 %v5284_v46 }
 0x417   :  { %5287 = vmatpush1.bf16.msra.mxu1 %v5286_v61  ;;  %v5306_v61 = vpack.c.bf16 %v1576_v57, %v1574_v49  ;;  %v1832_v49 = vld [vmem:[#allocation13 + $0x258] sm:$0xff] }
 0x418   :  { %5289 = vmatprep.subr.bf16.mxu1 %v5288_v1  ;;  %v1580_v1 = vld [vmem:[#allocation13 + $0x70] sm:$0xff] }
 0x419   :  { %v5310_v3 = vpack.c.bf16 %v1580_v1, %v1578_v0  ;;  %v2084_v0 = vld [vmem:[#allocation16 + $0x8] sm:$0xff] }
 0x41b   :  { %5291 = vmatpush1.bf16.msra.mxu1 %v5290_v17  ;;  %v1585_v17 = vld [vmem:[#allocation13 + $0x98] sm:$0xff] }
 0x41c   :  { %5293 = vmatprep.subr.bf16.mxu1 %v5292_v7  ;;  %v5312_v4 = vpack.c.bf16 %v1585_v17, %v1583_v56  ;;  %v1584_v7 = vld [vmem:[#allocation13 + $0x90] sm:$0xff] }
 0x41f   :  { %5295 = vmatpush1.bf16.msra.mxu1 %v5294_v12  ;;  %v5314_v12 = vpack.c.bf16 %v1584_v7, %v1582_v5 }
 0x420   :  { %1660 = vmatprep.subr.mxu1 %v1618_v16  ;;  %v1591_v16 = vld [vmem:[#allocation13 + $0xc8] sm:$0xff] }
 0x423   :  { %1661 = vmatpush1.msra.mxu1 %v1617_v22 }
 0x424   :  { %5297 = vmatprep.subr.bf16.mxu1 %v5296_v24  ;;  %v1811_v24 = vld [vmem:[#allocation13 + $0x1b0] sm:$0xff] }
 0x4dd   :  { %v1518_v11 = vpop.f32.mrb[2].mxu1 }
 0x4de   :  { %v1525_v13 = vrot.slane %v1518_v11, %v7018_v62  ;;  %v4862_v14 = vpop.f32.mrb[3].mxu1  ;;  %v1533_v19 = vrot.slane %v1518_v11, %v7020_v6  ;;  %v1589_v11 = vld [vmem:[#allocation13 + $0xb8] sm:$0xff] }
 0x4df   :  { %v1586_v14 = vld [vmem:[#allocation13 + $0xa0] sm:$0xff] }
 0x4e0   :  { %v1528_v21 = vmul.f32 %v1525_v13, %v6994_v39  ;;  %v1526_v23 = vmul.f32 %v1525_v13, %v6981_v25  ;;  %v1529_v26 = vmul.f32 %v1525_v13, %v6988_v36  ;;  %v1527_v27 = vmul.f32 %v1525_v13, %v6975_v20 }
 0x4e1   :  { %v5316_v13 = vpack.c.bf16 %v1589_v11, %v1587_v10  ;;  %v5318_v29 = vpack.c.bf16 %v1588_v15, %v1586_v14  ;;  %v2087_v11 = vld [vmem:[#allocation16 + $0x20] sm:$0xff]  ;;  %v2089_v14 = vld [vmem:[#allocation16 + $0x30] sm:$0xff]  ;;  %v2090_v15 = vld [vmem:[#allocation16 + $0x38] sm:$0xff] }
 0x4e2   :  { %v1536_v30 = vadd.f32 %v1533_v19, %v1528_v21  ;;  %v1534_v31 = vadd.f32 %v1533_v19, %v1526_v23  ;;  %v1537_v28 = vadd.f32 %v1533_v19, %v1529_v26  ;;  %v1535_v32 = vadd.f32 %v1533_v19, %v1527_v27  ;;  %v1810_v19 = vld [vmem:[#allocation13 + $0x1a8] sm:$0xff]  ;;  %v1812_v21 = vld [vmem:[#allocation13 + $0x1b8] sm:$0xff]  ;;  %v1809_v23 = vld [vmem:[#allocation13 + $0x1a0] sm:$0xff] }
 0x4e3   :  { %v1590_v26 = vld [vmem:[#allocation13 + $0xc0] sm:$0xff]  ;;  %v5320_v27 = vpack.c.bf16 %v1812_v21, %v1810_v19  ;;  %v5322_v22 = vpack.c.bf16 %v1811_v24, %v1809_v23  ;;  %v2094_v21 = vld [vmem:[#allocation16 + $0x58] sm:$0xff]  ;;  %v2095_v24 = vld [vmem:[#allocation16 + $0x60] sm:$0xff] }
 0x4e4   :  { %1552 = vrot.lane.b32.xlu1 %v1536_v30, %s6348_s30  ;;  %1540 = vrot.lane.b32.xlu0 %v1534_v31, %s6348_s30  ;;  %v1814_v30 = vld [vmem:[#allocation13 + $0x1c8] sm:$0xff]  ;;  %v1816_v31 = vld [vmem:[#allocation13 + $0x1d8] sm:$0xff] }
 0x4e5   :  { %v2093_v19 = vld [vmem:[#allocation16 + $0x50] sm:$0xff] }
 0x4e6   :  { %v5360_v23 = vpack.c.bf16 %v2094_v21, %v2093_v19 }
 0x4e8   :  { %1554 = vrot.lane.b32.xlu1 %v1537_v28, %s6348_s30  ;;  %1542 = vrot.lane.b32.xlu0 %v1535_v32, %s6348_s30  ;;  %v5324_v28 = vpack.c.bf16 %v1816_v31, %v1814_v30  ;;  %v1813_v32 = vld [vmem:[#allocation13 + $0x1c0] sm:$0xff] }
 0x4e9   :  { %v2096_v30 = vld [vmem:[#allocation16 + $0x68] sm:$0xff] }
 0x4ea   :  { %v5363_v31 = vpack.c.bf16 %v2096_v30, %v2095_v24 }
 0x556   :  { %v1553_v25 = vpop.permute.xlu1 %1552  ;;  %v1541_v36 = vpop.permute.xlu0 %1540 }
 0x557   :  { %1559 = vst.msk [vmem:[#allocation2 + $0xc] sm:$0xfc] %vm1558_vm10, %v1553_v25  ;;  %v1815_v25 = vld [vmem:[#allocation13 + $0x1d0] sm:$0xff] }
 0x558   :  { %1547 = vst.msk [vmem:[#allocation2 + $0x1] sm:$0xff] %vm1546_vm11, %v1541_v36  ;;  %v1818_v36 = vld [vmem:[#allocation13 + $0x1e8] sm:$0xff]  ;;  %vm1983_vm11 = vcmask 387072  }
 0x55a   :  { %v1555_v20 = vpop.permute.xlu1 %1554  ;;  %v1543_v39 = vpop.permute.xlu0 %1542 }
 0x55b   :  { %1561 = vst.msk [vmem:[#allocation2 + $0x14] sm:$0x1f] %vm1560_vm12, %v1555_v20  ;;  %v1820_v20 = vld [vmem:[#allocation13 + $0x1f8] sm:$0xff] }
 0x55c   :  { %1549 = vst.msk [vmem:[#allocation2 + $0x9] sm:$0x7] %vm1548_vm13, %v1543_v39  ;;  %v5326_v39 = vpack.c.bf16 %v1815_v25, %v1813_v32  ;;  %v5328_v37 = vpack.c.bf16 %v1820_v20, %v1818_v36  ;;  %v2100_v32 = vld [vmem:[#allocation16 + $0x88] sm:$0xff]  ;;  %v2101_v36 = vld [vmem:[#allocation16 + $0x90] sm:$0xff]  ;;  %v2102_v20 = vld [vmem:[#allocation16 + $0x98] sm:$0xff] }
 0x55f   :  { %v7032_v34 = vld [vmem:[#allocation2] sm:$0xff] }
 0x560   :  { %v1623_v42 = vrot.slane %v7032_v34, 1  ;;  %v1835_v56 = vrot.slane %v7032_v34, 2 }
 0x562   :  { %v7036_v43 = vld [vmem:[#allocation2 + $0x10] sm:$0xff]  ;;  %v7043_v52 = vld [vmem:[#allocation2 + $0x18] sm:$0x3] }
 0x563   :  { %v7034_v41 = vld [vmem:[#allocation2 + $0x8] sm:$0xff]  ;;  %v1626_v50 = vrot.slane %v7036_v43, 1  ;;  %v1628_v46 = vrot.slane %v7043_v52, 1  ;;  %v1838_v7 = vrot.slane %v7036_v43, 2  ;;  %v1840_v10 = vrot.slane %v7043_v52, 2 }
 0x564   :  { %v1624_v44 = vrot.slane %v7034_v41, 1  ;;  %v1836_v1 = vrot.slane %v7034_v41, 2  ;;  %v5354_v52 = vpack.c.bf16 %v2090_v15, %v2089_v14 }
 0x565   :  { %v1629_v18 = vsel %vm369_vm0, %v1626_v50, %v1628_v46  ;;  %v1829_v46 = vld [vmem:[#allocation13 + $0x240] sm:$0xff] }
 0x566   :  { %v1625_v9 = vsel %vm369_vm0, %v1623_v42, %v1624_v44  ;;  %v1627_v53 = vsel %vm369_vm0, %v1624_v44, %v1626_v50  ;;  %v1824_v42 = vld [vmem:[#allocation13 + $0x218] sm:$0xff]  ;;  %v5330_v44 = vpack.c.bf16 %v1819_v38, %v1817_v33  ;;  %v5342_v60 = vpack.c.bf16 %v1831_v58, %v1829_v46 }
 0x567   :  { %4310 = vmatmul.mubr.msk.f32.vlgmr.msra.gmra.mrb[4].mxu1 %vm330_vm1, %v1625_v9  ;;  %v1828_v9 = vld [vmem:[#allocation13 + $0x238] sm:$0xff]  ;;  %v1837_v5 = vsel %vm574_vm6, %v1835_v56, %v1836_v1 }
 0x568   :  { %5299 = vmatpush1.bf16.msra.mxu1 %v5298_v47  ;;  %1706 = vmatprep.mubr.f32.mxu1 %v6366_v2  ;;  %v5332_v47 = vpack.c.bf16 %v1824_v42, %v1822_v40  ;;  %v5336_v51 = vpack.c.bf16 %v1828_v9, %v1826_v8  ;;  %v2104_v33 = vld [vmem:[#allocation16 + $0xa8] sm:$0xff]  ;;  %v1937_v40 = vld [vmem:[#allocation14] sm:$0x3] }
 0x569   :  { %5301 = vmatprep.subr.bf16.mxu1 %v5300_v35  ;;  %v1821_v35 = vld [vmem:[#allocation13 + $0x200] sm:$0xff]  ;;  %v1942_v42 = vrot.slane %v1937_v40, %v7018_v62 }
 0x56a   :  { %v5334_v50 = vpack.c.bf16 %v1823_v48, %v1821_v35 }
 0x56b   :  { %4311 = vmatmul.mubr.msk.f32.gmra.mrb[6].mxu1 %vm330_vm1, %v1627_v53 }
 0x56c   :  { %5303 = vmatpush1.bf16.msra.mxu1 %v5302_v54  ;;  %1712 = vmatprep.mubr.f32.mxu1 %v6366_v2  ;;  %v1827_v54 = vld [vmem:[#allocation13 + $0x230] sm:$0xff] }
 0x56d   :  { %5305 = vmatprep.subr.bf16.mxu1 %v5304_v55  ;;  %v1830_v55 = vld [vmem:[#allocation13 + $0x248] sm:$0xff]  ;;  %v5338_v57 = vpack.c.bf16 %v1827_v54, %v1825_v45 }
 0x56e   :  { %v5340_v53 = vpack.c.bf16 %v1832_v49, %v1830_v55 }
 0x56f   :  { %4312 = vmatmul.mubr.msk.f32.gmra.mrb[8].mxu1 %vm330_vm1, %v1629_v18  ;;  %v1833_v18 = vld [vmem:[#allocation13 + $0x260] sm:$0xff] }
 0x570   :  { %5307 = vmatpush1.bf16.msra.mxu1 %v5306_v61  ;;  %1789 = vmatprep.mubr.f32.mxu1 %v6366_v2  ;;  %v1834_v61 = vld [vmem:[#allocation13 + $0x268] sm:$0xff] }
 0x571   :  { %5309 = vmatprep.subr.bf16.mxu1 %v5308_v59  ;;  %v2083_v59 = vld [vmem:[#allocation16] sm:$0xff] }
 0x572   :  { %v5345_v17 = vpack.c.bf16 %v2084_v0, %v2083_v59 }
 0x574   :  { %5311 = vmatpush1.bf16.msra.mxu1 %v5310_v3  ;;  %v2085_v3 = vld [vmem:[#allocation16 + $0x10] sm:$0xff] }
 0x575   :  { %5313 = vmatprep.subr.bf16.mxu1 %v5312_v4  ;;  %v2086_v4 = vld [vmem:[#allocation16 + $0x18] sm:$0xff] }
 0x578   :  { %5315 = vmatpush1.bf16.msra.mxu1 %v5314_v12  ;;  %v2088_v12 = vld [vmem:[#allocation16 + $0x28] sm:$0xff] }
 0x579   :  { %5317 = vmatprep.subr.bf16.mxu1 %v5316_v13  ;;  %v5351_v13 = vpack.c.bf16 %v2088_v12, %v2087_v11 }
 0x57c   :  { %5319 = vmatpush1.bf16.msra.mxu1 %v5318_v29  ;;  %v2092_v29 = vld [vmem:[#allocation16 + $0x48] sm:$0xff] }
 0x57d   :  { %1749 = vmatprep.subr.mxu1 %v1591_v16 }
 0x580   :  { %1750 = vmatpush1.msra.mxu1 %v1590_v26  ;;  %v2097_v26 = vld [vmem:[#allocation16 + $0x70] sm:$0xff] }
 0x581   :  { %4313 = vmatmul.mubr.msk.f32.vlgmr.msra.gmra.mrb[4].mxu1 %vm330_vm1, %v7032_v34  ;;  %5321 = vmatprep.subr.bf16.mxu1 %v5320_v27  ;;  %v1839_v34 = vsel %vm574_vm6, %v1836_v1, %v1838_v7  ;;  %v2098_v27 = vld [vmem:[#allocation16 + $0x78] sm:$0xff] }
 0x582   :  { %5323 = vmatpush1.bf16.msra.mxu1 %v5322_v22  ;;  %1795 = vmatprep.mubr.f32.mxu1 %v6366_v2  ;;  %v5366_v22 = vpack.c.bf16 %v2098_v27, %v2097_v26 }
 0x583   :  { %5325 = vmatprep.subr.bf16.mxu1 %v5324_v28  ;;  %v2099_v28 = vld [vmem:[#allocation16 + $0x80] sm:$0xff] }
 0x584   :  { %v5369_v25 = vpack.c.bf16 %v2100_v32, %v2099_v28 }
 0x585   :  { %4314 = vmatmul.mubr.msk.f32.gmra.mrb[6].mxu1 %vm330_vm1, %v7034_v41  ;;  %v5348_v41 = vpack.c.bf16 %v2086_v4, %v2085_v3 }
 0x586   :  { %5327 = vmatpush1.bf16.msra.mxu1 %v5326_v39  ;;  %1801 = vmatprep.mubr.f32.mxu1 %v6366_v2  ;;  %v5372_v39 = vpack.c.bf16 %v2102_v20, %v2101_v36 }
 0x587   :  { %5329 = vmatprep.subr.bf16.mxu1 %v5328_v37  ;;  %v2103_v37 = vld [vmem:[#allocation16 + $0xa0] sm:$0xff] }
 0x588   :  { %v5375_v38 = vpack.c.bf16 %v2104_v33, %v2103_v37 }
 0x589   :  { %4315 = vmatmul.mubr.msk.f32.gmra.mrb[8].mxu1 %vm330_vm1, %v7036_v43  ;;  %v1841_v43 = vsel %vm574_vm6, %v1838_v7, %v1840_v10 }
 0x58a   :  { %5331 = vmatpush1.bf16.msra.mxu1 %v5330_v44  ;;  %1912 = vmatprep.mubr.f32.mxu1 %v6366_v2  ;;  %v1946_v44 = vrot.slane %v1937_v40, %v7020_v6 }
 0x58b   :  { %5333 = vmatprep.subr.bf16.mxu1 %v5332_v47 }
 0x58e   :  { %5335 = vmatpush1.bf16.msra.mxu1 %v5334_v50 }
 0x58f   :  { %5337 = vmatprep.subr.bf16.mxu1 %v5336_v51 }
 0x592   :  { %5339 = vmatpush1.bf16.msra.mxu1 %v5338_v57 }
 0x593   :  { %5341 = vmatprep.subr.bf16.mxu1 %v5340_v53 }
 0x596   :  { %5343 = vmatpush1.bf16.msra.mxu1 %v5342_v60 }
 0x597   :  { %1872 = vmatprep.subr.mxu1 %v1834_v61 }
 0x59a   :  { %1873 = vmatpush1.msra.mxu1 %v1833_v18 }
 0x59b   :  { %4316 = vmatmul.mubr.msk.f32.vlgmr.msra.gmra.mrb[4].mxu1 %vm330_vm1, %v1837_v5  ;;  %5344 = vmatprep.subr.bf16.mxu1 %v6365_v63 }
 0x59c   :  { %1918 = vmatprep.mubr.f32.mxu1 %v6366_v2  ;;  %5346 = vmatpush1.bf16.msra.mxu1 %v5345_v17 }
 0x59d   :  { %5347 = vmatprep.subr.bf16.mxu1 %v6365_v63 }
 0x59f   :  { %4317 = vmatmul.mubr.msk.f32.gmra.mrb[6].mxu1 %vm330_vm1, %v1839_v34 }
 0x5a0   :  { %1924 = vmatprep.mubr.f32.mxu1 %v6366_v2  ;;  %5349 = vmatpush1.bf16.msra.mxu1 %v5348_v41  ;;  %v2091_v2 = vld [vmem:[#allocation16 + $0x40] sm:$0xff] }
 0x5a1   :  { %5350 = vmatprep.subr.bf16.mxu1 %v6365_v63  ;;  %v5357_v16 = vpack.c.bf16 %v2092_v29, %v2091_v2 }
 0x5a3   :  { %4318 = vmatmul.mubr.msk.f32.gmra.mrb[8].mxu1 %vm330_vm1, %v1841_v43  ;;  %vm1981_vm1 = vcmask 392192  }
 0x5a4   :  { %5352 = vmatpush1.bf16.msra.mxu1 %v5351_v13 }
 0x5a5   :  { %5353 = vmatprep.subr.bf16.mxu1 %v6365_v63 }
 0x5a8   :  { %5355 = vmatpush1.bf16.msra.mxu1 %v5354_v52 }
 0x5a9   :  { %5356 = vmatprep.subr.bf16.mxu1 %v6365_v63 }
 0x5ac   :  { %5358 = vmatpush1.bf16.msra.mxu1 %v5357_v16 }
 0x5ad   :  { %5359 = vmatprep.subr.bf16.mxu1 %v6365_v63 }
 0x5b0   :  { %5361 = vmatpush1.bf16.msra.mxu1 %v5360_v23 }
 0x5b1   :  { %5362 = vmatprep.subr.bf16.mxu1 %v6365_v63 }
 0x5b4   :  { %5364 = vmatpush1.bf16.msra.mxu1 %v5363_v31 }
 0x5b5   :  { %5365 = vmatprep.subr.bf16.mxu1 %v6365_v63 }
 0x5b8   :  { %5367 = vmatpush1.bf16.msra.mxu1 %v5366_v22 }
 0x5b9   :  { %5368 = vmatprep.subr.bf16.mxu1 %v6365_v63 }
 0x5bc   :  { %5370 = vmatpush1.bf16.msra.mxu1 %v5369_v25 }
 0x5bd   :  { %5371 = vmatprep.subr.bf16.mxu1 %v6365_v63 }
 0x5c0   :  { %5373 = vmatpush1.bf16.msra.mxu1 %v5372_v39 }
 0x5c1   :  { %5374 = vmatprep.subr.bf16.mxu1 %v6365_v63 }
 0x5c4   :  { %5376 = vmatpush1.bf16.msra.mxu1 %v5375_v38 }
 0x5c5   :  { %5380 = vmatprep.subr.bf16.mxu1 %v6365_v63 }
 0x66e   :  { %v1914_v47 = vpop.f32.mrb[4].mxu1 }
 0x66f   :  { %v1949_v35 = vadd.f32 %v1942_v42, %v1914_v47  ;;  %v1916_v48 = vpop.f32.mrb[5].mxu1 }
 0x670   :  { %v1950_v8 = vadd.f32 %v1946_v44, %v1916_v48 }
 0x671   :  { %vm1955_vm14 = vcmp.gt.f32.partialorder %v1949_v35, 0.0  ;;  %v1961_v9 = vmul.f32 0.01, %v1949_v35 }
 0x672   :  { %vm1956_vm15 = vcmp.gt.f32.partialorder %v1950_v8, 0.0  ;;  %v1962_v50 = vmul.f32 0.01, %v1950_v8  ;;  %v1920_v51 = vpop.f32.mrb[6].mxu1 }
 0x673   :  { %v1967_v45 = vsel %vm1955_vm14, %v1949_v35, %v1961_v9  ;;  %v1951_v54 = vadd.f32 %v1942_v42, %v1920_v51  ;;  %v1922_v55 = vpop.f32.mrb[7].mxu1  ;;  %vm336_vm14 = vcmask 916480  }
 0x674   :  { %v2274_v49 = vrot.slane %v1967_v45, 1  ;;  %v1968_v57 = vsel %vm1956_vm15, %v1950_v8, %v1962_v50  ;;  %v1952_v53 = vadd.f32 %v1946_v44, %v1922_v55  ;;  %v1992_v1 = vmul.f32 %v1967_v45, %v1967_v45 }
 0x675   :  { %v1993_v46 = vmul.f32 %v1968_v57, %v1968_v57  ;;  %v2275_v58 = vrot.slane %v1968_v57, 1  ;;  %vm1957_vm9 = vcmp.gt.f32.partialorder %v1951_v54, 0.0  ;;  %v1963_v61 = vmul.f32 0.01, %v1951_v54 }
 0x676   :  { %v7088_v60 = vmax.f32 %v1967_v45, %v2274_v49  ;;  %vm1958_vm10 = vcmp.gt.f32.partialorder %v1952_v53, 0.0  ;;  %v1964_v59 = vmul.f32 0.01, %v1952_v53  ;;  %v1926_v0 = vpop.f32.mrb[8].mxu1  ;;  %v1982_v18 = vsel %vm1981_vm1, %v1968_v57, 0.0 }
 0x677   :  { %v7091_v56 = vmax.f32 %v1968_v57, %v2275_v58  ;;  %v1928_v17 = vpop.f32.mrb[9].mxu1  ;;  %v2004_v3 = vsel %vm1981_vm1, %v1993_v46, 0.0  ;;  %v7094_v4 = vsel %vm1957_vm9, %v1951_v54, %v1963_v61  ;;  %v1953_v7 = vadd.f32 %v1942_v42, %v1926_v0 }
 0x678   :  { %v7096_v5 = vsel %vm1958_vm10, %v1952_v53, %v1964_v59  ;;  %v2296_v41 = vrot.slane %v7088_v60, 1  ;;  %v2300_v34 = vrot.slane %v7088_v60, 2  ;;  %v1973_v10 = vsel %vm922_vm3, %v7094_v4, 0.0 }
 0x679   :  { %v1994_v43 = vmul.f32 %v7094_v4, %v7094_v4  ;;  %v2297_v11 = vrot.slane %v7091_v56, 1  ;;  %v2301_v12 = vrot.slane %v7091_v56, 2  ;;  %v1974_v13 = vadd.f32 %v1973_v10, %v1967_v45 }
 0x67a   :  { %v1984_v14 = vsel %vm1983_vm11, %v7096_v5, 0.0  ;;  %v2017_v52 = vrot.slane %v7094_v4, 5  ;;  %v1995_v29 = vmul.f32 %v7096_v5, %v7096_v5  ;;  %v2280_v21 = vrot.slane %v7094_v4, 1 }
 0x67b   :  { %v1996_v15 = vsel %vm922_vm3, %v1994_v43, 0.0  ;;  %v1985_v2 = vadd.f32 %v1984_v14, %v1982_v18  ;;  %v1975_v16 = vrot.slane %v1974_v13, 4  ;;  %v2281_v23 = vrot.slane %v7096_v5, 1 }
 0x67c   :  { %v1997_v19 = vadd.f32 %v1996_v15, %v1992_v1  ;;  %v2050_v24 = vrot.slane %v1994_v43, 5  ;;  %v2005_v30 = vsel %vm1983_vm11, %v1995_v29, 0.0  ;;  %vm1959_vm12 = vcmp.gt.f32.partialorder %v1953_v7, 0.0 }
 0x67d   :  { %v1965_v31 = vmul.f32 0.01, %v1953_v7  ;;  %v2020_v26 = vrot.slane %v7096_v5, 5  ;;  %v1954_v27 = vadd.f32 %v1946_v44, %v1928_v17  ;;  %v1986_v22 = vrot.slane %v1985_v2, 4 }
 0x67e   :  { %v2006_v28 = vadd.f32 %v2005_v30, %v2004_v3  ;;  %v2053_v32 = vrot.slane %v1995_v29, 5  ;;  %v1976_v36 = vadd.f32 %v1975_v16, %v1974_v13  ;;  %v1998_v20 = vrot.slane %v1997_v19, 4 }
 0x67f   :  { %v7116_v25 = vsel %vm1959_vm12, %v1953_v7, %v1965_v31  ;;  %vm1960_vm13 = vcmp.gt.f32.partialorder %v1954_v27, 0.0  ;;  %v7122_v33 = vmax.f32 %v7096_v5, %v2281_v23  ;;  %v1966_v38 = vmul.f32 0.01, %v1954_v27 }
 0x680   :  { %v2018_v39 = vrot.slane %v7116_v25, 5  ;;  %v2044_v37 = vmul.f32 %v7116_v25, %v7116_v25  ;;  %v1987_v40 = vadd.f32 %v1986_v22, %v1985_v2  ;;  %v2007_v42 = vrot.slane %v2006_v28, 4 }
 0x681   :  { %v2305_v44 = vrot.slane %v7091_v56, 3  ;;  %v2286_v8 = vrot.slane %v7116_v25, 1  ;;  %v1972_v50 = vsel %vm1960_vm13, %v1954_v27, %v1966_v38  ;;  %v1977_v61 = vrot.slane %v1976_v36, 2 }
 0x682   :  { %v2019_v47 = vsel %vm922_vm3, %v2017_v52, %v2018_v39  ;;  %v2027_v35 = vsel %vm922_vm3, %v2018_v39, 0.0  ;;  %v2051_v48 = vrot.slane %v2044_v37, 5  ;;  %v1988_v51 = vrot.slane %v1987_v40, 2 }
 0x683   :  { %v2028_v9 = vadd.f32 %v2027_v35, %v2019_v47  ;;  %v2008_v45 = vadd.f32 %v2007_v42, %v2006_v28  ;;  %v2021_v49 = vrot.slane %v1972_v50, 5  ;;  %v2045_v57 = vmul.f32 %v1972_v50, %v1972_v50 }
 0x684   :  { %v2052_v54 = vsel %vm922_vm3, %v2050_v24, %v2051_v48  ;;  %v2060_v55 = vsel %vm922_vm3, %v2051_v48, 0.0  ;;  %v2287_v58 = vrot.slane %v1972_v50, 1  ;;  %v1989_v10 = vadd.f32 %v1988_v51, %v1987_v40 }
 0x685   :  { %v2029_v53 = vrot.slane %v2028_v9, 4  ;;  %v2061_v46 = vadd.f32 %v2060_v55, %v2052_v54  ;;  %v2022_v59 = vsel %vm922_vm3, %v2020_v26, %v2021_v49  ;;  %v2036_v0 = vsel %vm1983_vm11, %v2021_v49, 0.0 }
 0x686   :  { %v2054_v1 = vrot.slane %v2045_v57, 5  ;;  %v2009_v18 = vrot.slane %v2008_v45, 2  ;;  %v2035_v7 = vsel %vm1981_vm1, %v2022_v59, 0.0  ;;  %v7136_v43 = vmax.f32 %v7116_v25, %v2286_v8 }
 0x687   :  { %v2030_v17 = vadd.f32 %v2029_v53, %v2028_v9  ;;  %v2062_v3 = vrot.slane %v2061_v46, 4  ;;  %v2037_v13 = vadd.f32 %v2036_v0, %v2035_v7  ;;  %v7141_v30 = vmax.f32 %v1972_v50, %v2287_v58 }
 0x688   :  { %v2055_v14 = vsel %vm922_vm3, %v2053_v32, %v2054_v1  ;;  %v2069_v15 = vsel %vm1983_vm11, %v2054_v1, 0.0  ;;  %v2010_v16 = vadd.f32 %v2009_v18, %v2008_v45  ;;  %v1978_v31 = vadd.f32 %v1977_v61, %v1976_v36 }
 0x689   :  { %v2031_v52 = vrot.slane %v2030_v17, 2  ;;  %v2063_v2 = vadd.f32 %v2062_v3, %v2061_v46  ;;  %v2068_v29 = vsel %vm1981_vm1, %v2055_v14, 0.0  ;;  %v2038_v23 = vrot.slane %v2037_v13, 4 }
 0x68a   :  { %v2070_v24 = vadd.f32 %v2069_v15, %v2068_v29  ;;  %v1990_v26 = vrot.slane %v1989_v10, 1  ;;  %v1999_v27 = vadd.f32 %v1998_v20, %v1997_v19  ;;  %v1979_v38 = vrot.slane %v1978_v31, 1  ;;  %v2351_v29 = vld [vmem:[#allocation19 + $0x8] sm:$0xff] }
 0x68b   :  { %v2032_v22 = vadd.f32 %v2031_v52, %v2030_v17  ;;  %v2064_v28 = vrot.slane %v2063_v2, 2  ;;  %v2039_v37 = vadd.f32 %v2038_v23, %v2037_v13  ;;  %v2291_v32 = vmax.f32 %v7096_v5, %v2287_v58 }
 0x68c   :  { %v2071_v39 = vrot.slane %v2070_v24, 4  ;;  %v2011_v40 = vrot.slane %v2010_v16, 1  ;;  %v2000_v42 = vrot.slane %v1999_v27, 2  ;;  %v1980_v51 = vadd.f32 %v1979_v38, %v1978_v31  ;;  %v2354_v38 = vld [vmem:[#allocation19 + $0x20] sm:$0xff] }
 0x68d   :  { %v2033_v47 = vrot.slane %v2032_v22, 1  ;;  %v2065_v35 = vadd.f32 %v2064_v28, %v2063_v2  ;;  %v2040_v48 = vrot.slane %v2039_v37, 2  ;;  %v2311_v50 = vrot.slane %v7122_v33, 4  ;;  %v2350_v2 = vld [vmem:[#allocation19] sm:$0xff]  ;;  %v2352_v28 = vld [vmem:[#allocation19 + $0x10] sm:$0xff] }
 0x68e   :  { %v2072_v9 = vadd.f32 %v2071_v39, %v2070_v24  ;;  %v2001_v45 = vadd.f32 %v2000_v42, %v1999_v27  ;;  %v2317_v19 = vrot.slane %v2291_v32, 1  ;;  %v2323_v49 = vrot.slane %v7141_v30, 2  ;;  %v2353_v39 = vld [vmem:[#allocation19 + $0x18] sm:$0xff]  ;;  %v2355_v32 = vld [vmem:[#allocation19 + $0x28] sm:$0xff]  ;;  %v2356_v42 = vld [vmem:[#allocation19 + $0x30] sm:$0xff] }
 0x68f   :  { %v2034_v36 = vadd.f32 %v2033_v47, %v2032_v22  ;;  %v2066_v54 = vrot.slane %v2065_v35, 1  ;;  %v2041_v20 = vadd.f32 %v2040_v48, %v2039_v37  ;;  %v2335_v5 = vsel %vm1156_vm5, %v7091_v56, %v2297_v11  ;;  %v2357_v47 = vld [vmem:[#allocation19 + $0x38] sm:$0xff]  ;;  %v2358_v48 = vld [vmem:[#allocation19 + $0x40] sm:$0xff] }
 0x690   :  { %v2073_v55 = vrot.slane %v2072_v9, 2  ;;  %v2002_v57 = vrot.slane %v2001_v45, 1  ;;  %v2337_v58 = vsel %vm1039_vm4, %v2335_v5, %v2301_v12  ;;  %v2284_v1 = vmax.f32 %v7094_v4, %v2280_v21 }
 0x691   :  { %v2067_v53 = vadd.f32 %v2066_v54, %v2065_v35  ;;  %v2077_v46 = vadd.f32 %v2034_v36, %v1980_v51  ;;  %v2042_v61 = vrot.slane %v2041_v20, 1  ;;  %v2339_v0 = vsel %vm922_vm3, %v2337_v58, %v2305_v44  ;;  %v2362_v54 = vld [vmem:[#allocation19 + $0x60] sm:$0xff]  ;;  %v2368_v58 = vld [vmem:[#allocation19 + $0x90] sm:$0xff] }
 0x692   :  { %v2074_v59 = vadd.f32 %v2073_v55, %v2072_v9  ;;  %v1991_v18 = vadd.f32 %v1990_v26, %v1989_v10  ;;  %v2003_v17 = vadd.f32 %v2002_v57, %v2001_v45  ;;  %v2341_v11 = vsel %vm805_vm2, %v2339_v0, %v2311_v50  ;;  %v2359_v9 = vld [vmem:[#allocation19 + $0x48] sm:$0xff]  ;;  %v2360_v50 = vld [vmem:[#allocation19 + $0x50] sm:$0xff]  ;;  %v2361_v45 = vld [vmem:[#allocation19 + $0x58] sm:$0xff] }
 0x693   :  { %v2290_v3 = vmax.f32 %v7094_v4, %v2286_v8  ;;  %v2012_v7 = vadd.f32 %v2011_v40, %v2010_v16  ;;  %v2043_v12 = vadd.f32 %v2042_v61, %v2041_v20  ;;  %v2343_v56 = vsel %vm689_vm7, %v2341_v11, %v7122_v33  ;;  %v2364_v55 = vld [vmem:[#allocation19 + $0x70] sm:$0xff]  ;;  %v2366_v57 = vld [vmem:[#allocation19 + $0x80] sm:$0xff]  ;;  %v2369_v61 = vld [vmem:[#allocation19 + $0x98] sm:$0xff] }
 0x694   :  { %v2075_v13 = vrot.slane %v2074_v59, 1  ;;  %v2079_v14 = vadd.f32 %v2067_v53, %v2003_v17  ;;  %v2345_v44 = vsel %vm574_vm6, %v2343_v56, %v2317_v19  ;;  %v2304_v15 = vrot.slane %v7088_v60, 3  ;;  %v2363_v19 = vld [vmem:[#allocation19 + $0x68] sm:$0xff]  ;;  %v2370_v0 = vld [vmem:[#allocation19 + $0xa0] sm:$0xff] }
 0x695   :  { %v2310_v21 = vrot.slane %v2284_v1, 4  ;;  %v2078_v52 = vadd.f32 %v2043_v12, %v1991_v18  ;;  %v7168_v25 = vsel %vm369_vm0, %v2345_v44, %v2323_v49  ;;  %v2334_v4 = vsel %vm1156_vm5, %v7088_v60, %v2296_v41  ;;  %v2365_v49 = vld [vmem:[#allocation19 + $0x78] sm:$0xff]  ;;  %v2367_v53 = vld [vmem:[#allocation19 + $0x88] sm:$0xff] }
 0x696   :  { %v2076_v10 = vadd.f32 %v2075_v13, %v2074_v59  ;;  %v2081_v33 = vsel %vm1156_vm5, %v2077_v46, %v2079_v14  ;;  %v2316_v8 = vrot.slane %v2290_v3, 1  ;;  %v2336_v16 = vsel %vm1039_vm4, %v2334_v4, %v2300_v34  ;;  %v7214_v56 = vld [vmem:[#allocation4] sm:$0xff]  ;;  %v2197_v14 = vld [vmem:[#allocation17 + $0x8] sm:$0xff] }
 0x697   :  { %v2322_v24 = vrot.slane %v7136_v43, 2  ;;  %v2338_v31 = vsel %vm922_vm3, %v2336_v16, %v2304_v15  ;;  %v5381_v26 = vpack.c.bf16 %v2351_v29, %v2350_v2  ;;  %v5384_v37 = vpack.c.bf16 %v2353_v39, %v2352_v28  ;;  %v2375_v28 = vld [vmem:[%s7819_s10 + $0x18] sm:$0xff]  ;;  %337 = vst.msk [vmem:[#allocation3] sm:$0xff] %vm336_vm14, %v7214_v56 }
 0x698   :  { %v2080_v23 = vadd.f32 %v2076_v10, %v2012_v7  ;;  %v2340_v27 = vsel %vm805_vm2, %v2338_v31, %v2310_v21  ;;  %v5387_v40 = vpack.c.bf16 %v2355_v32, %v2354_v38  ;;  %v5390_v35 = vpack.c.bf16 %v2357_v47, %v2356_v42  ;;  %v2378_v32 = vld [vmem:[%s7819_s10 + $0x30] sm:$0xff]  ;;  %v2380_v42 = vld [vmem:[%s7819_s10 + $0x40] sm:$0xff]  ;;  %v2381_v47 = vld [vmem:[%s7819_s10 + $0x48] sm:$0xff] }
 0x699   :  { %v2342_v41 = vsel %vm689_vm7, %v2340_v27, %v2284_v1  ;;  %v5393_v51 = vpack.c.bf16 %v2359_v9, %v2358_v48  ;;  %v5396_v36 = vpack.c.bf16 %v2361_v45, %v2360_v50  ;;  %v5399_v20 = vpack.c.bf16 %v2363_v19, %v2362_v54  ;;  %v2371_v1 = vld [vmem:[#allocation19 + $0xa8] sm:$0xff]  ;;  %v2384_v19 = vld [vmem:[%s7819_s10 + $0x60] sm:$0xff] }
 0x69a   :  { %v2082_v22 = vsel %vm1156_vm5, %v2078_v52, %v2080_v23  ;;  %v2344_v60 = vsel %vm574_vm6, %v2342_v41, %v2316_v8  ;;  %v5402_v5 = vpack.c.bf16 %v2365_v49, %v2364_v55  ;;  %v5405_v46 = vpack.c.bf16 %v2367_v53, %v2366_v57  ;;  %v2372_v23 = vld [vmem:[%s7819_s10] sm:$0xff]  ;;  %v2383_v50 = vld [vmem:[%s7819_s10 + $0x58] sm:$0xff]  ;;  %v2386_v49 = vld [vmem:[%s7819_s10 + $0x70] sm:$0xff] }
 0x69b   :  { %4319 = vmatprep.mubr.msk.f32.mxu1 %vm1981_vm1, %v2082_v22  ;;  %v7186_v34 = vsel %vm369_vm0, %v2344_v60, %v2322_v24  ;;  %v5408_v59 = vpack.c.bf16 %v2369_v61, %v2368_v58  ;;  %v5411_v18 = vpack.c.bf16 %v2371_v1, %v2370_v0  ;;  %v2327_v17 = vrot.slane %v7141_v30, 3  ;;  %v2373_v24 = vld [vmem:[%s7819_s10 + $0x8] sm:$0xff]  ;;  %v2374_v22 = vld [vmem:[%s7819_s10 + $0x10] sm:$0xff]  ;;  %v2376_v60 = vld [vmem:[%s7819_s10 + $0x20] sm:$0xff] }
 0x69c   :  { %2173 = vmatmul.mubr.f32.vlgmr.msra.gmra.mrb[10].mxu1 %v2081_v33  ;;  %v2331_v11 = vrot.slane %v7141_v30, 4  ;;  %v2326_v3 = vrot.slane %v7136_v43, 3  ;;  %v2330_v7 = vrot.slane %v7136_v43, 4  ;;  %v2196_v30 = vld [vmem:[#allocation17] sm:$0xff]  ;;  %vm2198_vm2 = vcmask 130048   ;;  %v2390_v61 = vld [vmem:[%s7819_s10 + $0x90] sm:$0xff] }
 0x69d   :  { %5382 = vmatpush1.bf16.msra.mxu1 %v5381_v26  ;;  %4321 = vmatprep.mubr.msk.f32.mxu1 %vm1981_vm1, %v7168_v25  ;;  %v5378_v43 = vpack.c.bf16 %v2197_v14, %v2196_v30  ;;  %v5414_v27 = vpack.c.bf16 %v2373_v24, %v2372_v23  ;;  %v5417_v41 = vpack.c.bf16 %v2375_v28, %v2374_v22  ;;  %v2388_v53 = vld [vmem:[%s7819_s10 + $0x80] sm:$0xff]  ;;  %vm338_vm15 = vcmask 914432   ;;  %v4332_v30 = vld [vmem:[%s7820_s11 + $0x118] sm:$0xff]  ;;  %v4342_v28 = vld [vmem:[%s7820_s11 + $0x168] sm:$0xff] }
 0x69e   :  { %5383 = vmatprep.subr.bf16.mxu1 %v6365_v63  ;;  %v7206_v12 = vsel %vm1156_vm5, %v2327_v17, %v2331_v11  ;;  %v7211_v13 = vsel %vm1156_vm5, %v2326_v3, %v2330_v7  ;;  %v5426_v48 = vpack.c.bf16 %v2381_v47, %v2380_v42  ;;  %v2392_v1 = vld [vmem:[%s7819_s10 + $0xa0] sm:$0xff]  ;;  %v4326_v11 = vld [vmem:[%s7820_s11 + $0xe8] sm:$0xff]  ;;  %v4328_v3 = vld [vmem:[%s7820_s11 + $0xf8] sm:$0xff]  ;;  %339 = vst.msk [vmem:[#allocation3 + $0x8] sm:$0x3f] %vm338_vm15, %v7214_v56  ;;  %vm2574_vm9 = vcmask 785541  }
 0x69f   :  { %5379 = vmatpush3.bf16.msra.mxu0 %v5378_v43  ;;  %v4325_v7 = vld [vmem:[%s7820_s11 + $0xe0] sm:$0xff]  ;;  %v4347_v47 = vld [vmem:[%s7820_s11 + $0x190] sm:$0xff]  ;;  %vm2576_vm10 = vcmask 779392   ;;  %vm2956_vm11 = vcmask 258048  }
 0x6a0   :  { %5413 = vmatprep.subr.bf16.mxu0 %v6365_v63  ;;  %v4337_v24 = vld [vmem:[%s7820_s11 + $0x140] sm:$0xff] }
 0x6a1   :  { %5385 = vmatpush1.bf16.msra.mxu1 %v5384_v37  ;;  %v2377_v37 = vld [vmem:[%s7819_s10 + $0x28] sm:$0xff] }
 0x6a2   :  { %5386 = vmatprep.subr.bf16.mxu1 %v6365_v63  ;;  %v5420_v38 = vpack.c.bf16 %v2377_v37, %v2376_v60  ;;  %v4343_v37 = vld [vmem:[%s7820_s11 + $0x170] sm:$0xff] }
 0x6a5   :  { %5388 = vmatpush1.bf16.msra.mxu1 %v5387_v40 }
 0x6a6   :  { %5389 = vmatprep.subr.bf16.mxu1 %v6365_v63 }
 0x6a9   :  { %5391 = vmatpush1.bf16.msra.mxu1 %v5390_v35 }
 0x6aa   :  { %5392 = vmatprep.subr.bf16.mxu1 %v6365_v63 }
 0x6ad   :  { %5394 = vmatpush1.bf16.msra.mxu1 %v5393_v51  ;;  %v2382_v51 = vld [vmem:[%s7819_s10 + $0x50] sm:$0xff] }
 0x6ae   :  { %5395 = vmatprep.subr.bf16.mxu1 %v6365_v63 }
 0x6b1   :  { %5397 = vmatpush1.bf16.msra.mxu1 %v5396_v36  ;;  %v5429_v36 = vpack.c.bf16 %v2383_v50, %v2382_v51 }
 0x6b2   :  { %5398 = vmatprep.subr.bf16.mxu1 %v6365_v63 }
 0x6b5   :  { %5400 = vmatpush1.bf16.msra.mxu1 %v5399_v20  ;;  %v2385_v20 = vld [vmem:[%s7819_s10 + $0x68] sm:$0xff] }
 0x6b6   :  { %5401 = vmatprep.subr.bf16.mxu1 %v6365_v63  ;;  %v5432_v55 = vpack.c.bf16 %v2385_v20, %v2384_v19  ;;  %v4351_v19 = vld [vmem:[%s7820_s11 + $0x1b0] sm:$0xff]  ;;  %v2581_v20 = vld [vmem:[%s7820_s11 + $0x8] sm:$0xff] }
 0x6b9   :  { %5403 = vmatpush1.bf16.msra.mxu1 %v5402_v5  ;;  %v2387_v5 = vld [vmem:[%s7819_s10 + $0x78] sm:$0xff] }
 0x6ba   :  { %5404 = vmatprep.subr.bf16.mxu1 %v6365_v63  ;;  %v5435_v57 = vpack.c.bf16 %v2387_v5, %v2386_v49 }
 0x6bd   :  { %5406 = vmatpush1.bf16.msra.mxu1 %v5405_v46  ;;  %v2389_v46 = vld [vmem:[%s7819_s10 + $0x88] sm:$0xff] }
 0x6be   :  { %5407 = vmatprep.subr.bf16.mxu1 %v6365_v63  ;;  %v5438_v58 = vpack.c.bf16 %v2389_v46, %v2388_v53 }
 0x6c1   :  { %5409 = vmatpush1.bf16.msra.mxu1 %v5408_v59  ;;  %v2391_v59 = vld [vmem:[%s7819_s10 + $0x98] sm:$0xff] }
 0x6c2   :  { %5410 = vmatprep.subr.bf16.mxu1 %v6365_v63  ;;  %v5441_v0 = vpack.c.bf16 %v2391_v59, %v2390_v61 }
 0x6c5   :  { %5412 = vmatpush1.bf16.msra.mxu1 %v5411_v18  ;;  %v2393_v18 = vld [vmem:[%s7819_s10 + $0xa8] sm:$0xff] }
 0x6c6   :  { %v5444_v17 = vpack.c.bf16 %v2393_v18, %v2392_v1 }
 0x6c8   :  { %2465 = vmatmul.mubr.f32.vlgmr.msra.gmra.mrb[12].mxu1 %v7186_v34 }
 0x6c9   :  { %4322 = vmatprep.mubr.msk.f32.mxu1 %vm1981_vm1, %v7206_v12 }
 0x6cc   :  { %2470 = vmatmul.mubr.f32.gmra.mrb[14].mxu1 %v7211_v13 }
 0x6cd   :  { %2710 = vmatprep.mubr.f32.mxu1 %v7214_v56 }
 0x76f   :  { %v2174_v44 = vpop.f32.mrb[10].mxu1 }
 0x770   :  { %v2178_v15 = vmul.f32 0.004132231, %v2174_v44  ;;  %v2176_v21 = vpop.f32.mrb[11].mxu1  ;;  %v4329_v44 = vld [vmem:[%s7820_s11 + $0x100] sm:$0xff] }
 0x771   :  { %v4334_v21 = vld [vmem:[%s7820_s11 + $0x128] sm:$0xff] }
 0x772   :  { %v2179_v10 = vmul.f32 %v2178_v15, %v2178_v15  ;;  %v2187_v8 = vsub.f32 0.0, %v2178_v15 }
 0x774   :  { %v2181_v52 = vrot.slane %v2179_v10, 7  ;;  %v4336_v10 = vld [vmem:[%s7820_s11 + $0x138] sm:$0xff] }
 0x776   :  { %v2183_v2 = vsub.f32 %v2178_v15, %v2181_v52  ;;  %v4331_v15 = vld [vmem:[%s7820_s11 + $0x110] sm:$0xff] }
 0x777   :  { %v5452_v52 = vpack.c.bf16 %v4331_v15, %v4329_v44  ;;  %v2582_v44 = vld [vmem:[%s7820_s11 + $0x10] sm:$0xff]  ;;  %v2585_v15 = vld [vmem:[%s7820_s11 + $0x28] sm:$0xff] }
 0x778   :  { %v2184_v29 = vmax.f32 %v2183_v2, 0.0  ;;  %v5454_v2 = vpack.c.bf16 %v4336_v10, %v4334_v21  ;;  %v2587_v21 = vld [vmem:[%s7820_s11 + $0x38] sm:$0xff] }
 0x77a   :  { %v2185_v4 = vadd.f32 1e-05, %v2184_v29  ;;  %v4333_v29 = vld [vmem:[%s7820_s11 + $0x120] sm:$0xff] }
 0x77c   :  { %5872 = vrsqrt.f32 %v2185_v4  ;;  %v4335_v4 = vld [vmem:[%s7820_s11 + $0x130] sm:$0xff] }
 0x786   :  { %v5873_v33 = vpop.eup %5872 }
 0x787   :  { %v2189_v16 = vrot.slane %v5873_v33, 1  ;;  %v4338_v33 = vld [vmem:[%s7820_s11 + $0x148] sm:$0xff] }
 0x789   :  { %v2191_v31 = vmul.f32 %v2189_v16, %v2187_v8  ;;  %v4340_v8 = vld [vmem:[%s7820_s11 + $0x158] sm:$0xff] }
 0x78a   :  { %v5458_v23 = vpack.c.bf16 %v4340_v8, %v4338_v33  ;;  %v2584_v33 = vld [vmem:[%s7820_s11 + $0x20] sm:$0xff]  ;;  %v2586_v8 = vld [vmem:[%s7820_s11 + $0x30] sm:$0xff] }
 0x78b   :  { %v2193_v26 = vrot.slane %v2191_v31, 7  ;;  %v4339_v31 = vld [vmem:[%s7820_s11 + $0x150] sm:$0xff] }
 0x78d   :  { %v2195_v39 = vsel %vm1156_vm5, %v2189_v16, %v2193_v26  ;;  %v5456_v16 = vpack.c.bf16 %v4335_v4, %v4333_v29  ;;  %v5460_v26 = vpack.c.bf16 %v4339_v31, %v4337_v24  ;;  %v5478_v4 = vpack.c.bf16 %v2587_v21, %v2585_v15  ;;  %v2591_v24 = vld [vmem:[%s7820_s11 + $0x58] sm:$0xff] }
 0x78e   :  { %4868 = vmatmul.mubr.msk.f32.vlgmr.msra.gmra.mrb[4].mxu0 %vm2198_vm2, %v2195_v39  ;;  %v4344_v39 = vld [vmem:[%s7820_s11 + $0x178] sm:$0xff]  ;;  %v5480_v31 = vpack.c.bf16 %v2586_v8, %v2584_v33  ;;  %vm3060_vm2 = vcmask 261120  }
 0x78f   :  { %5415 = vmatpush1.bf16.msra.mxu0 %v5414_v27  ;;  %4323 = vmatprep.mubr.msk.f32.mxu0 %vm1981_vm1, %v7168_v25  ;;  %v2379_v25 = vld [vmem:[%s7819_s10 + $0x38] sm:$0xff]  ;;  %v5462_v60 = vpack.c.bf16 %v4344_v39, %v4342_v28  ;;  %v2593_v28 = vld [vmem:[%s7820_s11 + $0x68] sm:$0xff] }
 0x790   :  { %5416 = vmatprep.subr.bf16.mxu0 %v6365_v63  ;;  %v5423_v40 = vpack.c.bf16 %v2379_v25, %v2378_v32  ;;  %v4346_v32 = vld [vmem:[%s7820_s11 + $0x188] sm:$0xff]  ;;  %v4348_v25 = vld [vmem:[%s7820_s11 + $0x198] sm:$0xff] }
 0x791   :  { %v5466_v42 = vpack.c.bf16 %v4348_v25, %v4346_v32  ;;  %v2595_v39 = vld [vmem:[%s7820_s11 + $0x78] sm:$0xff]  ;;  %v2597_v32 = vld [vmem:[%s7820_s11 + $0x88] sm:$0xff] }
 0x792   :  { %v2599_v25 = vld [vmem:[%s7820_s11 + $0x98] sm:$0xff] }
 0x793   :  { %5418 = vmatpush1.bf16.msra.mxu0 %v5417_v41  ;;  %v4341_v41 = vld [vmem:[%s7820_s11 + $0x160] sm:$0xff]  ;;  %v4372_v15 = vld [vmem:[%s7820_s11 + $0x238] sm:$0xff] }
 0x794   :  { %5419 = vmatprep.subr.bf16.mxu0 %v6365_v63  ;;  %v4376_v33 = vld [vmem:[%s7820_s11 + $0x258] sm:$0xff] }
 0x797   :  { %5421 = vmatpush1.bf16.msra.mxu0 %v5420_v38  ;;  %v5464_v38 = vpack.c.bf16 %v4343_v37, %v4341_v41  ;;  %v2592_v37 = vld [vmem:[%s7820_s11 + $0x60] sm:$0xff] }
 0x798   :  { %5422 = vmatprep.subr.bf16.mxu0 %v6365_v63 }
 0x79b   :  { %v7254_v35 = vpop.f32.mrb[12].mxu1  ;;  %5424 = vmatpush1.bf16.msra.mxu0 %v5423_v40  ;;  %v4345_v40 = vld [vmem:[%s7820_s11 + $0x180] sm:$0xff] }
 0x79c   :  { %v2468_v9 = vpop.f32.mrb[13].mxu1  ;;  %5425 = vmatprep.subr.bf16.mxu0 %v6365_v63  ;;  %v5468_v50 = vpack.c.bf16 %v4347_v47, %v4345_v40  ;;  %v2596_v47 = vld [vmem:[%s7820_s11 + $0x80] sm:$0xff] }
 0x79d   :  { %v4352_v9 = vld [vmem:[%s7820_s11 + $0x1b8] sm:$0xff] }
 0x79f   :  { %v7263_v45 = vpop.f32.mrb[14].mxu1  ;;  %5427 = vmatpush1.bf16.msra.mxu0 %v5426_v48  ;;  %v4350_v48 = vld [vmem:[%s7820_s11 + $0x1a8] sm:$0xff] }
 0x7a0   :  { %v2473_v54 = vpop.f32.mrb[15].mxu1  ;;  %5428 = vmatprep.subr.bf16.mxu0 %v6365_v63 }
 0x7a1   :  { %v4349_v54 = vld [vmem:[%s7820_s11 + $0x1a0] sm:$0xff] }
 0x7a2   :  { %v5472_v53 = vpack.c.bf16 %v4351_v19, %v4349_v54  ;;  %v2600_v54 = vld [vmem:[%s7820_s11 + $0xa0] sm:$0xff]  ;;  %v2602_v19 = vld [vmem:[%s7820_s11 + $0xb0] sm:$0xff] }
 0x7a3   :  { %5430 = vmatpush1.bf16.msra.mxu0 %v5429_v36  ;;  %v5470_v36 = vpack.c.bf16 %v4352_v9, %v4350_v48  ;;  %v2598_v48 = vld [vmem:[%s7820_s11 + $0x90] sm:$0xff]  ;;  %v2601_v9 = vld [vmem:[%s7820_s11 + $0xa8] sm:$0xff] }
 0x7a4   :  { %5431 = vmatprep.subr.bf16.mxu0 %v6365_v63 }
 0x7a7   :  { %5433 = vmatpush1.bf16.msra.mxu0 %v5432_v55 }
 0x7a8   :  { %5434 = vmatprep.subr.bf16.mxu0 %v6365_v63 }
 0x7ab   :  { %5436 = vmatpush1.bf16.msra.mxu0 %v5435_v57  ;;  %v2583_v57 = vld [vmem:[%s7820_s11 + $0x18] sm:$0xff] }
 0x7ac   :  { %5437 = vmatprep.subr.bf16.mxu0 %v6365_v63  ;;  %v5474_v61 = vpack.c.bf16 %v2583_v57, %v2581_v20  ;;  %v2605_v20 = vld [vmem:[%s7820_s11 + $0xc8] sm:$0xff]  ;;  %v2604_v57 = vld [vmem:[%s7820_s11 + $0xc0] sm:$0xff] }
 0x7af   :  { %5439 = vmatpush1.bf16.msra.mxu0 %v5438_v58 }
 0x7b0   :  { %5440 = vmatprep.subr.bf16.mxu0 %v6365_v63 }
 0x7b3   :  { %5442 = vmatpush1.bf16.msra.mxu0 %v5441_v0 }
 0x7b4   :  { %5443 = vmatprep.subr.bf16.mxu0 %v6365_v63 }
 0x7b7   :  { %5445 = vmatpush1.bf16.msra.mxu0 %v5444_v17 }
 0x7b8   :  { %5530 = vmatprep.subr.bf16.mxu0 %v6365_v63 }
 0x7ba   :  { %2540 = vmatmul.mubr.f32.vlgmr.msra.gmra.mrb[6].mxu0 %v7186_v34  ;;  %v5446_v34 = vpack.c.bf16 %v4328_v3, %v4326_v11  ;;  %v3040_v11 = vld [vmem:[#allocation22] sm:$0xff]  ;;  %v3041_v3 = vld [vmem:[#allocation22 + $0x8] sm:$0xff] }
 0x7bb   :  { %4324 = vmatprep.mubr.msk.f32.mxu0 %vm1981_vm1, %v7206_v12  ;;  %v4327_v12 = vld [vmem:[%s7820_s11 + $0xf0] sm:$0xff]  ;;  %vm2568_vm1 = vcmask 782464  }
 0x7bc   :  { %v5448_v14 = vpack.c.bf16 %v4327_v12, %v4325_v7  ;;  %5447 = vmatprep.subr.bf16.mxu1 %v5446_v34  ;;  %v5531_v7 = vpack.c.bf16 %v3041_v3, %v3040_v11  ;;  %v3042_v34 = vld [vmem:[#allocation22 + $0x10] sm:$0xff]  ;;  %v3043_v12 = vld [vmem:[#allocation22 + $0x18] sm:$0xff]  ;;  %v4361_v3 = vld [vmem:[%s7820_s11 + $0x1e0] sm:$0xff] }
 0x7be   :  { %2545 = vmatmul.mubr.f32.gmra.mrb[8].mxu0 %v7211_v13  ;;  %v4330_v13 = vld [vmem:[%s7820_s11 + $0x108] sm:$0xff]  ;;  %5449 = vmatpush1.bf16.msra.mxu1 %v5448_v14 }
 0x7bf   :  { %v5450_v43 = vpack.c.bf16 %v4332_v30, %v4330_v13  ;;  %5532 = vmatpush1.bf16.msra.mxu0 %v5531_v7  ;;  %v5534_v13 = vpack.c.bf16 %v3043_v12, %v3042_v34  ;;  %v4363_v7 = vld [vmem:[%s7820_s11 + $0x1f0] sm:$0xff]  ;;  %v4366_v34 = vld [vmem:[%s7820_s11 + $0x208] sm:$0xff]  ;;  %v4368_v12 = vld [vmem:[%s7820_s11 + $0x218] sm:$0xff] }
 0x7c0   :  { %5533 = vmatprep.subr.bf16.mxu0 %v6365_v63 }
 0x7c1   :  { %5451 = vmatprep.subr.bf16.mxu1 %v5450_v43  ;;  %v2580_v43 = vld [vmem:[%s7820_s11] sm:$0xff] }
 0x7c2   :  { %5453 = vmatpush1.bf16.msra.mxu1 %v5452_v52  ;;  %v5476_v29 = vpack.c.bf16 %v2582_v44, %v2580_v43  ;;  %v4367_v43 = vld [vmem:[%s7820_s11 + $0x210] sm:$0xff]  ;;  %v4370_v44 = vld [vmem:[%s7820_s11 + $0x228] sm:$0xff] }
 0x7c3   :  { %5455 = vmatprep.subr.bf16.mxu1 %v5454_v2  ;;  %5535 = vmatpush1.bf16.msra.mxu0 %v5534_v13  ;;  %v5508_v13 = vpack.c.bf16 %v4363_v7, %v4361_v3  ;;  %v3047_v7 = vld [vmem:[#allocation22 + $0x38] sm:$0xff] }
 0x7c4   :  { %5536 = vmatprep.subr.bf16.mxu0 %v6365_v63 }
 0x7c6   :  { %5457 = vmatpush1.bf16.msra.mxu1 %v5456_v16 }
 0x7c7   :  { %5459 = vmatprep.subr.bf16.mxu1 %v5458_v23  ;;  %v2589_v23 = vld [vmem:[%s7820_s11 + $0x48] sm:$0xff] }
 0x7ca   :  { %5461 = vmatpush1.bf16.msra.mxu1 %v5460_v26  ;;  %v5482_v26 = vpack.c.bf16 %v2591_v24, %v2589_v23  ;;  %v4373_v23 = vld [vmem:[%s7820_s11 + $0x240] sm:$0xff]  ;;  %v4375_v24 = vld [vmem:[%s7820_s11 + $0x250] sm:$0xff] }
 0x7cb   :  { %5463 = vmatprep.subr.bf16.mxu1 %v5462_v60  ;;  %v5486_v60 = vpack.c.bf16 %v2595_v39, %v2593_v28  ;;  %v4377_v28 = vld [vmem:[%s7820_s11 + $0x260] sm:$0xff]  ;;  %v4379_v39 = vld [vmem:[%s7820_s11 + $0x270] sm:$0xff] }
 0x7ce   :  { %5465 = vmatpush1.bf16.msra.mxu1 %v5464_v38  ;;  %v2594_v38 = vld [vmem:[%s7820_s11 + $0x70] sm:$0xff] }
 0x7cf   :  { %5467 = vmatprep.subr.bf16.mxu1 %v5466_v42  ;;  %v5488_v40 = vpack.c.bf16 %v2594_v38, %v2592_v37  ;;  %v5490_v42 = vpack.c.bf16 %v2599_v25, %v2597_v32  ;;  %v5524_v37 = vpack.c.bf16 %v4379_v39, %v4377_v28  ;;  %v4381_v32 = vld [vmem:[%s7820_s11 + $0x280] sm:$0xff]  ;;  %v4383_v25 = vld [vmem:[%s7820_s11 + $0x290] sm:$0xff] }
 0x7d0   :  { %v3056_v28 = vld [vmem:[#allocation22 + $0x80] sm:$0xff]  ;;  %v3057_v39 = vld [vmem:[#allocation22 + $0x88] sm:$0xff] }
 0x7d2   :  { %5469 = vmatpush1.bf16.msra.mxu1 %v5468_v50  ;;  %v5492_v50 = vpack.c.bf16 %v2598_v48, %v2596_v47  ;;  %v3288_v47 = vld [vmem:[#allocation26 + $0x8] sm:$0xff] }
 0x7d3   :  { %5471 = vmatprep.subr.bf16.mxu1 %v5470_v36 }
 0x7d6   :  { %5473 = vmatpush1.bf16.msra.mxu1 %v5472_v53  ;;  %v2606_v53 = vld [vmem:[%s7820_s11 + $0xd0] sm:$0xff] }
 0x7d7   :  { %5475 = vmatprep.subr.bf16.mxu1 %v5474_v61  ;;  %v5500_v61 = vpack.c.bf16 %v2606_v53, %v2604_v57  ;;  %v3295_v57 = vld [vmem:[#allocation26 + $0x40] sm:$0xff]  ;;  %v3296_v53 = vld [vmem:[#allocation26 + $0x48] sm:$0xff] }
 0x861   :  { %v2268_v27 = vpop.f32.mrb[4].mxu0 }
 0x862   :  { %v4869_v22 = vpop.f32.mrb[5].mxu0  ;;  %v2555_v55 = vrot.slane %v2268_v27, %v7018_v62  ;;  %v2561_v46 = vrot.slane %v2268_v27, %v7020_v6  ;;  %v2588_v27 = vld [vmem:[%s7820_s11 + $0x40] sm:$0xff] }
 0x863   :  { %v2590_v22 = vld [vmem:[%s7820_s11 + $0x50] sm:$0xff] }
 0x864   :  { %v5484_v41 = vpack.c.bf16 %v2590_v22, %v2588_v27  ;;  %v5520_v27 = vpack.c.bf16 %v4375_v24, %v4373_v23  ;;  %v3053_v23 = vld [vmem:[#allocation22 + $0x68] sm:$0xff] }
 0x88d   :  { %v2541_v51 = vpop.f32.mrb[6].mxu0 }
 0x88e   :  { %v2550_v49 = vmax.f32 %v7254_v35, %v2541_v51  ;;  %v2543_v5 = vpop.f32.mrb[7].mxu0  ;;  %v2603_v51 = vld [vmem:[%s7820_s11 + $0xb8] sm:$0xff] }
 0x88f   :  { %v5494_v36 = vpack.c.bf16 %v2603_v51, %v2601_v9 }
 0x890   :  { %v2556_v58 = vmul.f32 %v2555_v55, %v2550_v49  ;;  %v5496_v49 = vpack.c.bf16 %v2602_v19, %v2600_v54 }
 0x891   :  { %v2546_v59 = vpop.f32.mrb[8].mxu0 }
 0x892   :  { %v2551_v0 = vmax.f32 %v7263_v45, %v2546_v59  ;;  %v2548_v1 = vpop.f32.mrb[9].mxu0  ;;  %v2562_v18 = vadd.f32 %v2561_v46, %v2556_v58  ;;  %v4360_v58 = vld [vmem:[%s7820_s11 + $0x1d8] sm:$0xff] }
 0x893   :  { %v4359_v1 = vld [vmem:[%s7820_s11 + $0x1d0] sm:$0xff] }
 0x894   :  { %v2557_v35 = vmul.f32 %v2555_v55, %v2551_v0  ;;  %2565 = vrot.lane.b32.xlu0 %v2562_v18, %s6357_s19  ;;  %v2607_v55 = vld [vmem:[%s7820_s11 + $0xd8] sm:$0xff]  ;;  %v4357_v0 = vld [vmem:[%s7820_s11 + $0x1c0] sm:$0xff]  ;;  %v4362_v18 = vld [vmem:[%s7820_s11 + $0x1e8] sm:$0xff] }
 0x895   :  { %v5498_v5 = vpack.c.bf16 %v2607_v55, %v2605_v20  ;;  %v3291_v20 = vld [vmem:[#allocation26 + $0x20] sm:$0xff]  ;;  %v3293_v55 = vld [vmem:[#allocation26 + $0x30] sm:$0xff] }
 0x896   :  { %v2563_v17 = vadd.f32 %v2561_v46, %v2557_v35  ;;  %v4358_v46 = vld [vmem:[%s7820_s11 + $0x1c8] sm:$0xff]  ;;  %v4364_v35 = vld [vmem:[%s7820_s11 + $0x1f8] sm:$0xff] }
 0x897   :  { %v5502_v59 = vpack.c.bf16 %v4360_v58, %v4358_v46  ;;  %v5506_v11 = vpack.c.bf16 %v4364_v35, %v4362_v18  ;;  %v5609_v46 = vpack.c.bf16 %v3296_v53, %v3295_v57  ;;  %v3297_v58 = vld [vmem:[#allocation26 + $0x50] sm:$0xff]  ;;  %v3299_v35 = vld [vmem:[#allocation26 + $0x60] sm:$0xff] }
 0x898   :  { %2571 = vrot.lane.b32.xlu1 %v2563_v17, %s6357_s19  ;;  %v5504_v17 = vpack.c.bf16 %v4359_v1, %v4357_v0  ;;  %v3045_v1 = vld [vmem:[#allocation22 + $0x28] sm:$0xff] }
 0x906   :  { %v2566_v45 = vpop.permute.xlu0 %2565 }
 0x907   :  { %2569 = vst.msk [vmem:[#allocation3 + $0x1] sm:$0x1f] %vm2568_vm1, %v2566_v45 }
 0x908   :  { %2575 = vst.msk [vmem:[#allocation3 + $0x3] sm:$0xe0] %vm2574_vm9, %v2566_v45  ;;  %v5510_v45 = vpack.c.bf16 %v4368_v12, %v4366_v34  ;;  %v3301_v34 = vld [vmem:[#allocation26 + $0x70] sm:$0xff]  ;;  %v3302_v12 = vld [vmem:[#allocation26 + $0x78] sm:$0xff] }
 0x90a   :  { %v2572_v30 = vpop.permute.xlu1 %2571 }
 0x90b   :  { %2577 = vst.msk [vmem:[#allocation3 + $0xb] sm:$0x3] %vm2576_vm10, %v2572_v30  ;;  %v4365_v30 = vld [vmem:[%s7820_s11 + $0x200] sm:$0xff] }
 0x90c   :  { %v5512_v21 = vpack.c.bf16 %v4367_v43, %v4365_v30  ;;  %v3049_v30 = vld [vmem:[#allocation22 + $0x48] sm:$0xff]  ;;  %v5618_v43 = vpack.c.bf16 %v3302_v12, %v3301_v34 }
 0x90e   :  { %v7407_v14 = vld [vmem:[#allocation3] sm:$0xff] }
 0x90f   :  { %v2639_v52 = vrot.slane %v7407_v14, 1  ;;  %v2833_v9 = vrot.slane %v7407_v14, 2 }
 0x912   :  { %v7421_v10 = vld [vmem:[#allocation3 + $0x8] sm:$0x3f] }
 0x913   :  { %v2640_v2 = vrot.slane %v7421_v10, 1  ;;  %v2834_v48 = vrot.slane %v7421_v10, 2 }
 0x915   :  { %v2641_v16 = vsel %vm369_vm0, %v2639_v52, %v2640_v2  ;;  %v5514_v52 = vpack.c.bf16 %v4372_v15, %v4370_v44  ;;  %v2835_v54 = vsel %vm574_vm6, %v2833_v9, %v2834_v48  ;;  %v3303_v15 = vld [vmem:[#allocation26 + $0x80] sm:$0xff] }
 0x916   :  { %4353 = vmatmul.mubr.msk.f32.vlgmr.msra.gmra.mrb[16].mxu1 %vm336_vm14, %v2641_v16 }
 0x917   :  { %5477 = vmatpush1.bf16.msra.mxu1 %v5476_v29  ;;  %2716 = vmatprep.mubr.f32.mxu1 %v7214_v56  ;;  %v4371_v29 = vld [vmem:[%s7820_s11 + $0x230] sm:$0xff] }
 0x918   :  { %5479 = vmatprep.subr.bf16.mxu1 %v5478_v4  ;;  %v4374_v4 = vld [vmem:[%s7820_s11 + $0x248] sm:$0xff] }
 0x919   :  { %v5518_v16 = vpack.c.bf16 %v4376_v33, %v4374_v4  ;;  %v3305_v33 = vld [vmem:[#allocation26 + $0x90] sm:$0xff] }
 0x91a   :  { %4354 = vmatmul.mubr.msk.f32.gmra.mrb[18].mxu1 %vm336_vm14, %v2640_v2  ;;  %v4369_v2 = vld [vmem:[%s7820_s11 + $0x220] sm:$0xff] }
 0x91b   :  { %5481 = vmatpush1.bf16.msra.mxu1 %v5480_v31  ;;  %2791 = vmatprep.mubr.f32.mxu1 %v7214_v56  ;;  %v5516_v8 = vpack.c.bf16 %v4371_v29, %v4369_v2  ;;  %v4378_v31 = vld [vmem:[%s7820_s11 + $0x268] sm:$0xff]  ;;  %v3051_v2 = vld [vmem:[#allocation22 + $0x58] sm:$0xff] }
 0x91c   :  { %5483 = vmatprep.subr.bf16.mxu1 %v5482_v26  ;;  %v4380_v26 = vld [vmem:[%s7820_s11 + $0x278] sm:$0xff] }
 0x91d   :  { %v5522_v22 = vpack.c.bf16 %v4380_v26, %v4378_v31  ;;  %v3054_v26 = vld [vmem:[#allocation22 + $0x70] sm:$0xff] }
 0x91f   :  { %5485 = vmatpush1.bf16.msra.mxu1 %v5484_v41  ;;  %v4382_v41 = vld [vmem:[%s7820_s11 + $0x288] sm:$0xff] }
 0x920   :  { %5487 = vmatprep.subr.bf16.mxu1 %v5486_v60  ;;  %v4384_v60 = vld [vmem:[%s7820_s11 + $0x298] sm:$0xff]  ;;  %s6368_s11 = smov 32  }
 0x921   :  { %v5526_v38 = vpack.c.bf16 %v4384_v60, %v4382_v41  ;;  %v5555_v41 = vpack.c.bf16 %v3057_v39, %v3056_v28  ;;  %v3058_v60 = vld [vmem:[#allocation22 + $0x90] sm:$0xff] }
 0x923   :  { %5489 = vmatpush1.bf16.msra.mxu1 %v5488_v40  ;;  %v5528_v40 = vpack.c.bf16 %v4383_v25, %v4381_v32  ;;  %v2921_v32 = vld [vmem:[#allocation20] sm:$0x3] }
 0x924   :  { %5491 = vmatprep.subr.bf16.mxu1 %v5490_v42  ;;  %v3287_v42 = vld [vmem:[#allocation26] sm:$0xff]  ;;  %v2926_v25 = vrot.slane %v2921_v32, %v7018_v62 }
 0x925   :  { %v5597_v51 = vpack.c.bf16 %v3288_v47, %v3287_v42 }
 0x927   :  { %5493 = vmatpush1.bf16.msra.mxu1 %v5492_v50  ;;  %v3289_v50 = vld [vmem:[#allocation26 + $0x10] sm:$0xff] }
 0x928   :  { %5495 = vmatprep.subr.bf16.mxu1 %v5494_v36  ;;  %v3290_v36 = vld [vmem:[#allocation26 + $0x18] sm:$0xff] }
 0x929   :  { %v5600_v19 = vpack.c.bf16 %v3290_v36, %v3289_v50 }
 0x92b   :  { %5497 = vmatpush1.bf16.msra.mxu1 %v5496_v49  ;;  %v3294_v49 = vld [vmem:[#allocation26 + $0x38] sm:$0xff] }
 0x92c   :  { %5499 = vmatprep.subr.bf16.mxu1 %v5498_v5  ;;  %v5606_v5 = vpack.c.bf16 %v3294_v49, %v3293_v55 }
 0x92f   :  { %5501 = vmatpush1.bf16.msra.mxu1 %v5500_v61  ;;  %v3298_v61 = vld [vmem:[#allocation26 + $0x58] sm:$0xff] }
 0x930   :  { %5503 = vmatprep.subr.bf16.mxu1 %v5502_v59  ;;  %v3044_v59 = vld [vmem:[#allocation22 + $0x20] sm:$0xff]  ;;  %v5612_v0 = vpack.c.bf16 %v3298_v61, %v3297_v58 }
 0x931   :  { %v5537_v18 = vpack.c.bf16 %v3045_v1, %v3044_v59 }
 0x932   :  { %4355 = vmatmul.mubr.msk.f32.vlgmr.msra.gmra.mrb[16].mxu1 %vm336_vm14, %v7407_v14 }
 0x933   :  { %5505 = vmatpush1.bf16.msra.mxu1 %v5504_v17  ;;  %2797 = vmatprep.mubr.f32.mxu1 %v7214_v56  ;;  %v3300_v17 = vld [vmem:[#allocation26 + $0x68] sm:$0xff] }
 0x934   :  { %5507 = vmatprep.subr.bf16.mxu1 %v5506_v11  ;;  %5538 = vmatpush1.bf16.msra.mxu0 %v5537_v18  ;;  %v3046_v11 = vld [vmem:[#allocation22 + $0x30] sm:$0xff]  ;;  %v5615_v3 = vpack.c.bf16 %v3300_v17, %v3299_v35 }
 0x935   :  { %5539 = vmatprep.subr.bf16.mxu0 %v6365_v63 }
 0x936   :  { %4356 = vmatmul.mubr.msk.f32.gmra.mrb[18].mxu1 %vm336_vm14, %v7421_v10  ;;  %v3292_v10 = vld [vmem:[#allocation26 + $0x28] sm:$0xff] }
 0x937   :  { %5509 = vmatpush1.bf16.msra.mxu1 %v5508_v13  ;;  %2904 = vmatprep.mubr.f32.mxu1 %v7214_v56  ;;  %v5603_v14 = vpack.c.bf16 %v3292_v10, %v3291_v20  ;;  %v5540_v13 = vpack.c.bf16 %v3047_v7, %v3046_v11 }
 0x938   :  { %5511 = vmatprep.subr.bf16.mxu1 %v5510_v45  ;;  %v3048_v45 = vld [vmem:[#allocation22 + $0x40] sm:$0xff] }
 0x939   :  { %5541 = vmatpush1.bf16.msra.mxu0 %v5540_v13  ;;  %v5543_v44 = vpack.c.bf16 %v3049_v30, %v3048_v45 }
 0x93a   :  { %5542 = vmatprep.subr.bf16.mxu0 %v6365_v63 }
 0x93b   :  { %5513 = vmatpush1.bf16.msra.mxu1 %v5512_v21  ;;  %v3304_v21 = vld [vmem:[#allocation26 + $0x88] sm:$0xff] }
 0x93c   :  { %5515 = vmatprep.subr.bf16.mxu1 %v5514_v52  ;;  %v3050_v52 = vld [vmem:[#allocation22 + $0x50] sm:$0xff]  ;;  %v5621_v29 = vpack.c.bf16 %v3304_v21, %v3303_v15 }
 0x93d   :  { %5544 = vmatpush1.bf16.msra.mxu0 %v5543_v44  ;;  %v5546_v4 = vpack.c.bf16 %v3051_v2, %v3050_v52 }
 0x93e   :  { %5545 = vmatprep.subr.bf16.mxu0 %v6365_v63 }
 0x93f   :  { %5517 = vmatpush1.bf16.msra.mxu1 %v5516_v8  ;;  %v3306_v8 = vld [vmem:[#allocation26 + $0x98] sm:$0xff] }
 0x940   :  { %5519 = vmatprep.subr.bf16.mxu1 %v5518_v16  ;;  %v3052_v16 = vld [vmem:[#allocation22 + $0x60] sm:$0xff]  ;;  %v5624_v24 = vpack.c.bf16 %v3306_v8, %v3305_v33 }
 0x941   :  { %5547 = vmatpush1.bf16.msra.mxu0 %v5546_v4  ;;  %v5549_v31 = vpack.c.bf16 %v3053_v23, %v3052_v16 }
 0x942   :  { %5548 = vmatprep.subr.bf16.mxu0 %v6365_v63 }
 0x943   :  { %5521 = vmatpush1.bf16.msra.mxu1 %v5520_v27  ;;  %v3055_v27 = vld [vmem:[#allocation22 + $0x78] sm:$0xff] }
 0x944   :  { %5523 = vmatprep.subr.bf16.mxu1 %v5522_v22  ;;  %v5552_v22 = vpack.c.bf16 %v3055_v27, %v3054_v26 }
 0x945   :  { %5550 = vmatpush1.bf16.msra.mxu0 %v5549_v31 }
 0x946   :  { %5551 = vmatprep.subr.bf16.mxu0 %v6365_v63 }
 0x947   :  { %5525 = vmatpush1.bf16.msra.mxu1 %v5524_v37  ;;  %v3059_v37 = vld [vmem:[#allocation22 + $0x98] sm:$0xff] }
 0x948   :  { %5527 = vmatprep.subr.bf16.mxu1 %v5526_v38  ;;  %v5558_v38 = vpack.c.bf16 %v3059_v37, %v3058_v60 }
 0x949   :  { %5553 = vmatpush1.bf16.msra.mxu0 %v5552_v22 }
 0x94a   :  { %5554 = vmatprep.subr.bf16.mxu0 %v6365_v63 }
 0x94b   :  { %5529 = vmatpush1.bf16.msra.mxu1 %v5528_v40  ;;  %v2930_v40 = vrot.slane %v2921_v32, %v7020_v6 }
 0x94c   :  { %5596 = vmatprep.subr.bf16.mxu1 %v6365_v63 }
 0x94d   :  { %5556 = vmatpush1.bf16.msra.mxu0 %v5555_v41 }
 0x94e   :  { %4385 = vmatmul.mubr.msk.f32.vlgmr.msra.gmra.mrb[16].mxu1 %vm336_vm14, %v2835_v54  ;;  %5557 = vmatprep.subr.bf16.mxu0 %v6365_v63 }
 0x94f   :  { %2910 = vmatprep.mubr.f32.mxu1 %v7214_v56  ;;  %5598 = vmatpush1.bf16.msra.mxu1 %v5597_v51 }
 0x950   :  { %5599 = vmatprep.subr.bf16.mxu1 %v6365_v63 }
 0x951   :  { %5559 = vmatpush1.bf16.msra.mxu0 %v5558_v38 }
 0x952   :  { %4386 = vmatmul.mubr.msk.f32.gmra.mrb[18].mxu1 %vm336_vm14, %v2834_v48  ;;  %5560 = vmatprep.subr.bf16.mxu0 %v6365_v63 }
 0x953   :  { %5601 = vmatpush1.bf16.msra.mxu1 %v5600_v19 }
 0x954   :  { %5602 = vmatprep.subr.bf16.mxu1 %v6365_v63 }
 0x957   :  { %5604 = vmatpush1.bf16.msra.mxu1 %v5603_v14 }
 0x958   :  { %5605 = vmatprep.subr.bf16.mxu1 %v6365_v63 }
 0x95b   :  { %5607 = vmatpush1.bf16.msra.mxu1 %v5606_v5 }
 0x95c   :  { %5608 = vmatprep.subr.bf16.mxu1 %v6365_v63 }
 0x95f   :  { %5610 = vmatpush1.bf16.msra.mxu1 %v5609_v46 }
 0x960   :  { %5611 = vmatprep.subr.bf16.mxu1 %v6365_v63 }
 0x963   :  { %5613 = vmatpush1.bf16.msra.mxu1 %v5612_v0 }
 0x964   :  { %5614 = vmatprep.subr.bf16.mxu1 %v6365_v63 }
 0x967   :  { %5616 = vmatpush1.bf16.msra.mxu1 %v5615_v3 }
 0x968   :  { %5617 = vmatprep.subr.bf16.mxu1 %v6365_v63 }
 0x96b   :  { %5619 = vmatpush1.bf16.msra.mxu1 %v5618_v43 }
 0x96c   :  { %5620 = vmatprep.subr.bf16.mxu1 %v6365_v63 }
 0x96f   :  { %5622 = vmatpush1.bf16.msra.mxu1 %v5621_v29 }
 0x970   :  { %5623 = vmatprep.subr.bf16.mxu1 %v6365_v63 }
 0x973   :  { %5625 = vmatpush1.bf16.msra.mxu1 %v5624_v24 }
 0x974   :  { %5674 = vmatprep.subr.bf16.mxu1 %v6365_v63 }
 0xa21   :  { %v2906_v42 = vpop.f32.mrb[16].mxu1 }
 0xa22   :  { %v2933_v47 = vadd.f32 %v2926_v25, %v2906_v42  ;;  %v2908_v48 = vpop.f32.mrb[17].mxu1 }
 0xa23   :  { %v2934_v9 = vadd.f32 %v2930_v40, %v2908_v48 }
 0xa24   :  { %vm2937_vm0 = vcmp.gt.f32.partialorder %v2933_v47, 0.0  ;;  %v2941_v51 = vmul.f32 0.01, %v2933_v47 }
 0xa25   :  { %vm2938_vm6 = vcmp.gt.f32.partialorder %v2934_v9, 0.0  ;;  %v2942_v50 = vmul.f32 0.01, %v2934_v9  ;;  %v2912_v36 = vpop.f32.mrb[18].mxu1 }
 0xa26   :  { %v2945_v54 = vsel %vm2937_vm0, %v2933_v47, %v2941_v51  ;;  %v2935_v19 = vadd.f32 %v2926_v25, %v2912_v36  ;;  %v2914_v20 = vpop.f32.mrb[19].mxu1 }
 0xa27   :  { %v2949_v10 = vsel %vm689_vm7, %v2945_v54, 0.0  ;;  %v2964_v14 = vmul.f32 %v2945_v54, %v2945_v54  ;;  %v2984_v55 = vrot.slane %v2945_v54, 7  ;;  %v3229_v49 = vrot.slane %v2945_v54, 1 }
 0xa28   :  { %v2950_v5 = vrot.slane %v2949_v10, 4  ;;  %v2946_v57 = vsel %vm2938_vm6, %v2934_v9, %v2942_v50  ;;  %vm2939_vm12 = vcmp.gt.f32.partialorder %v2935_v19, 0.0  ;;  %v2943_v53 = vmul.f32 0.01, %v2935_v19 }
 0xa29   :  { %v7615_v46 = vsel %vm689_vm7, %v2964_v14, 0.0  ;;  %v3012_v58 = vrot.slane %v2964_v14, 7  ;;  %v3233_v61 = vmax.f32 %v2945_v54, %v3229_v49  ;;  %v2957_v59 = vsel %vm2956_vm11, %v2946_v57, 0.0 }
 0xa2a   :  { %v2951_v0 = vadd.f32 %v2950_v5, %v2949_v10  ;;  %v2967_v1 = vrot.slane %v7615_v46, 4  ;;  %v2958_v18 = vrot.slane %v2957_v59, 4  ;;  %v2965_v35 = vmul.f32 %v2946_v57, %v2946_v57 }
 0xa2b   :  { %v2987_v17 = vrot.slane %v2946_v57, 7  ;;  %v3230_v11 = vrot.slane %v2946_v57, 1  ;;  %v2947_v3 = vsel %vm2939_vm12, %v2935_v19, %v2943_v53  ;;  %v2936_v7 = vadd.f32 %v2930_v40, %v2914_v20 }
 0xa2c   :  { %v3015_v34 = vrot.slane %v2965_v35, 7  ;;  %v2985_v12 = vrot.slane %v2947_v3, 7  ;;  %v3006_v13 = vmul.f32 %v2947_v3, %v2947_v3  ;;  %v3235_v45 = vrot.slane %v2947_v3, 1 }
 0xa2d   :  { %vm2940_vm13 = vcmp.gt.f32.partialorder %v2936_v7, 0.0  ;;  %v2944_v30 = vmul.f32 0.01, %v2936_v7  ;;  %v3234_v43 = vmax.f32 %v2946_v57, %v3230_v11  ;;  %v3245_v44 = vrot.slane %v3233_v61, 1 }
 0xa2e   :  { %v2986_v15 = vsel %vm1156_vm5, %v2984_v55, %v2985_v12  ;;  %v3013_v21 = vrot.slane %v3006_v13, 7  ;;  %v3239_v52 = vmax.f32 %v2945_v54, %v3235_v45  ;;  %v3241_v2 = vmax.f32 %v2947_v3, %v3235_v45 }
 0xa2f   :  { %v2992_v29 = vsel %vm689_vm7, %v2986_v15, 0.0  ;;  %v2948_v4 = vsel %vm2940_vm13, %v2936_v7, %v2944_v30  ;;  %v3246_v33 = vrot.slane %v3234_v43, 1  ;;  %v3261_v8 = vsel %vm1156_vm5, %v3233_v61, %v3245_v44 }
 0xa30   :  { %v2993_v16 = vrot.slane %v2992_v29, 4  ;;  %v3014_v23 = vsel %vm1156_vm5, %v3012_v58, %v3013_v21  ;;  %v3251_v24 = vrot.slane %v3239_v52, 5  ;;  %v3257_v31 = vrot.slane %v3241_v2, 6 }
 0xa31   :  { %v3020_v26 = vsel %vm689_vm7, %v3014_v23, 0.0  ;;  %v2988_v27 = vrot.slane %v2948_v4, 7  ;;  %v3007_v22 = vmul.f32 %v2948_v4, %v2948_v4  ;;  %v3236_v28 = vrot.slane %v2948_v4, 1 }
 0xa32   :  { %v2994_v39 = vadd.f32 %v2993_v16, %v2992_v29  ;;  %v3021_v41 = vrot.slane %v3020_v26, 4  ;;  %v3262_v60 = vsel %vm1156_vm5, %v3234_v43, %v3246_v33  ;;  %v3263_v37 = vsel %vm1039_vm4, %v3261_v8, %v3251_v24 }
 0xa33   :  { %v2989_v38 = vsel %vm1156_vm5, %v2987_v17, %v2988_v27  ;;  %v3016_v32 = vrot.slane %v3007_v22, 7  ;;  %v3240_v25 = vmax.f32 %v2946_v57, %v3236_v28  ;;  %v3242_v40 = vmax.f32 %v2948_v4, %v3236_v28 }
 0xa34   :  { %v3022_v42 = vadd.f32 %v3021_v41, %v3020_v26  ;;  %v2999_v47 = vsel %vm2956_vm11, %v2989_v38, 0.0  ;;  %v7629_v48 = vsel %vm922_vm3, %v3263_v37, %v3257_v31  ;;  %v2959_v9 = vadd.f32 %v2958_v18, %v2957_v59  ;;  %v7647_v37 = vld [vmem:[#allocation4] sm:$0xff]  ;;  %v3152_v38 = vld [vmem:[#allocation23] sm:$0xff] }
 0xa35   :  { %v3000_v51 = vrot.slane %v2999_v47, 4  ;;  %v3017_v50 = vsel %vm1156_vm5, %v3015_v34, %v3016_v32  ;;  %v3252_v36 = vrot.slane %v3240_v25, 5  ;;  %v3258_v54 = vrot.slane %v3242_v40, 6  ;;  %v3153_v32 = vld [vmem:[#allocation23 + $0x8] sm:$0xff]  ;;  %v3154_v25 = vld [vmem:[#allocation23 + $0x10] sm:$0xff] }
 0xa36   :  { %v2960_v19 = vrot.slane %v2959_v9, 2  ;;  %v2973_v20 = vsel %vm2956_vm11, %v2965_v35, 0.0  ;;  %v3027_v10 = vsel %vm2956_vm11, %v3017_v50, 0.0  ;;  %v2952_v14 = vrot.slane %v2951_v0, 2 }
 0xa37   :  { %v3264_v55 = vsel %vm1039_vm4, %v3262_v60, %v3252_v36  ;;  %v2974_v49 = vrot.slane %v2973_v20, 4  ;;  %v3001_v5 = vadd.f32 %v3000_v51, %v2999_v47  ;;  %v3028_v57 = vrot.slane %v3027_v10, 4 }
 0xa38   :  { %v7636_v53 = vsel %vm922_vm3, %v3264_v55, %v3258_v54  ;;  %v2961_v58 = vadd.f32 %v2960_v19, %v2959_v9  ;;  %v2953_v61 = vadd.f32 %v2952_v14, %v2951_v0  ;;  %v2968_v59 = vadd.f32 %v2967_v1, %v7615_v46 }
 0xa39   :  { %4390 = vmatprep.mubr.msk.f32.mxu1 %vm3060_vm2, %v7636_v53  ;;  %v2975_v18 = vadd.f32 %v2974_v49, %v2973_v20  ;;  %v3002_v35 = vrot.slane %v3001_v5, 2  ;;  %v3029_v17 = vadd.f32 %v3028_v57, %v3027_v10  ;;  %v2995_v11 = vrot.slane %v2994_v39, 2 }
 0xa3a   :  { %3445 = vmatmul.mubr.f32.vlgmr.msra.gmra.mrb[20].mxu1 %v7629_v48  ;;  %v2962_v3 = vrot.slane %v2961_v58, 1  ;;  %v2954_v7 = vrot.slane %v2953_v61, 1  ;;  %v2969_v34 = vrot.slane %v2968_v59, 2  ;;  %v3023_v12 = vrot.slane %v3022_v42, 2 }
 0xa3b   :  { %v2976_v13 = vrot.slane %v2975_v18, 2  ;;  %v3003_v45 = vadd.f32 %v3002_v35, %v3001_v5  ;;  %v3030_v30 = vrot.slane %v3029_v17, 2  ;;  %v2996_v43 = vadd.f32 %v2995_v11, %v2994_v39  ;;  %4983 = vmatprep.mubr.msk.f32.mxu1 %vm6367_vm8, %v7214_v56  ;;  %v3270_v11 = vld [vmem:[#allocation25 + $0x18] sm:$0xff] }
 0xa3c   :  { %v2970_v46 = vadd.f32 %v2969_v34, %v2968_v59  ;;  %v3024_v0 = vadd.f32 %v3023_v12, %v3022_v42  ;;  %v2963_v52 = vadd.f32 %v2962_v3, %v2961_v58  ;;  %v2955_v2 = vadd.f32 %v2954_v7, %v2953_v61  ;;  %v3155_v42 = vld [vmem:[#allocation23 + $0x18] sm:$0xff]  ;;  %v3267_v58 = vld [vmem:[#allocation25] sm:$0xff]  ;;  %v3268_v61 = vld [vmem:[#allocation25 + $0x8] sm:$0xff] }
 0xa3d   :  { %v2977_v1 = vadd.f32 %v2976_v13, %v2975_v18  ;;  %v3004_v44 = vrot.slane %v3003_v45, 1  ;;  %v3031_v15 = vadd.f32 %v3030_v30, %v3029_v17  ;;  %v2997_v21 = vrot.slane %v2996_v43, 1  ;;  %v3269_v17 = vld [vmem:[#allocation25 + $0x10] sm:$0xff]  ;;  %v3271_v34 = vld [vmem:[#allocation25 + $0x20] sm:$0xff]  ;;  %v3272_v12 = vld [vmem:[#allocation25 + $0x28] sm:$0xff] }
 0xa3e   :  { %v2971_v29 = vrot.slane %v2970_v46, 1  ;;  %v3025_v4 = vrot.slane %v3024_v0, 1  ;;  %v5561_v40 = vpack.c.bf16 %v3153_v32, %v3152_v38  ;;  %v5564_v47 = vpack.c.bf16 %v3155_v42, %v3154_v25  ;;  %v3274_v30 = vld [vmem:[#allocation25 + $0x38] sm:$0xff]  ;;  %v3649_v32 = vld [vmem:[#allocation28 + $0x110] sm:$0xff] }
 0xa3f   :  { %v2978_v33 = vrot.slane %v2977_v1, 1  ;;  %v3005_v8 = vadd.f32 %v3004_v44, %v3003_v45  ;;  %v3032_v16 = vrot.slane %v3031_v15, 1  ;;  %v2998_v23 = vadd.f32 %v2997_v21, %v2996_v43  ;;  %v3273_v45 = vld [vmem:[#allocation25 + $0x30] sm:$0xff]  ;;  %v3278_v44 = vld [vmem:[#allocation25 + $0x58] sm:$0xff]  ;;  %v3279_v21 = vld [vmem:[#allocation25 + $0x60] sm:$0xff] }
 0xa40   :  { %v2972_v24 = vadd.f32 %v2971_v29, %v2970_v46  ;;  %v3026_v31 = vadd.f32 %v3025_v4, %v3024_v0  ;;  %v5567_v35 = vpack.c.bf16 %v3268_v61, %v3267_v58  ;;  %v5570_v7 = vpack.c.bf16 %v3270_v11, %v3269_v17  ;;  %v3275_v46 = vld [vmem:[#allocation25 + $0x40] sm:$0xff]  ;;  %v3276_v0 = vld [vmem:[#allocation25 + $0x48] sm:$0xff]  ;;  %v3281_v29 = vld [vmem:[#allocation25 + $0x70] sm:$0xff] }
 0xa41   :  { %v2979_v26 = vadd.f32 %v2978_v33, %v2977_v1  ;;  %v3033_v27 = vadd.f32 %v3032_v16, %v3031_v15  ;;  %v3035_v22 = vadd.f32 %v3005_v8, %v2963_v52  ;;  %v3034_v56 = vadd.f32 %v2998_v23, %v2955_v2  ;;  %v3280_v52 = vld [vmem:[#allocation25 + $0x68] sm:$0xff]  ;;  %v3282_v4 = vld [vmem:[#allocation25 + $0x78] sm:$0xff]  ;;  %v3283_v8 = vld [vmem:[#allocation25 + $0x80] sm:$0xff] }
 0xa42   :  { %v3036_v28 = vadd.f32 %v3026_v31, %v2972_v24  ;;  %v5573_v13 = vpack.c.bf16 %v3272_v12, %v3271_v34  ;;  %v5576_v43 = vpack.c.bf16 %v3274_v30, %v3273_v45  ;;  %v5579_v1 = vpack.c.bf16 %v3276_v0, %v3275_v46  ;;  %v3284_v16 = vld [vmem:[#allocation25 + $0x88] sm:$0xff]  ;;  %v3285_v24 = vld [vmem:[#allocation25 + $0x90] sm:$0xff]  ;;  %v3286_v31 = vld [vmem:[#allocation25 + $0x98] sm:$0xff] }
 0xa43   :  { %v3037_v39 = vadd.f32 %v3033_v27, %v2979_v26  ;;  %v5585_v2 = vpack.c.bf16 %v3280_v52, %v3279_v21  ;;  %v5588_v33 = vpack.c.bf16 %v3282_v4, %v3281_v29  ;;  %v5591_v23 = vpack.c.bf16 %v3284_v16, %v3283_v8  ;;  %v3487_v27 = vld [vmem:[#allocation28 + $0x80] sm:$0xff]  ;;  %v3650_v25 = vld [vmem:[#allocation28 + $0x118] sm:$0xff]  ;;  %v3656_v61 = vld [vmem:[#allocation28 + $0x148] sm:$0xff] }
 0xa44   :  { %v3038_v41 = vsel %vm1156_vm5, %v3034_v56, %v3036_v28  ;;  %v5594_v26 = vpack.c.bf16 %v3286_v31, %v3285_v24  ;;  %v3647_v56 = vld [vmem:[#allocation28 + $0x100] sm:$0xff]  ;;  %v5678_v42 = vpack.c.bf16 %v3650_v25, %v3649_v32  ;;  %v3498_v17 = vld [vmem:[#allocation28 + $0xd8] sm:$0xff]  ;;  %v3657_v11 = vld [vmem:[#allocation28 + $0x150] sm:$0xff]  ;;  %vm3465_vm3 = vcmask 779520  }
 0xa45   :  { %v3039_v60 = vsel %vm1156_vm5, %v3035_v22, %v3037_v39  ;;  %v3488_v22 = vld [vmem:[#allocation28 + $0x88] sm:$0xff]  ;;  %v3655_v58 = vld [vmem:[#allocation28 + $0x140] sm:$0xff]  ;;  %v3662_v21 = vld [vmem:[#allocation28 + $0x178] sm:$0xff]  ;;  %vm3467_vm7 = vcmask 781570  }
 0xa46   :  { %4387 = vmatprep.mubr.msk.f32.mxu0 %vm3060_vm2, %v3039_v60  ;;  %v5627_v28 = vpack.c.bf16 %v3488_v22, %v3487_v27  ;;  %v3648_v39 = vld [vmem:[#allocation28 + $0x108] sm:$0xff]  ;;  %v3490_v60 = vld [vmem:[#allocation28 + $0x98] sm:$0xff]  ;;  %v3499_v45 = vld [vmem:[#allocation28 + $0xe0] sm:$0xff] }
 0xa47   :  { %3129 = vmatmul.mubr.f32.vlgmr.msra.gmra.mrb[10].mxu0 %v3038_v41  ;;  %v3489_v41 = vld [vmem:[#allocation28 + $0x90] sm:$0xff]  ;;  %v5675_v38 = vpack.c.bf16 %v3648_v39, %v3647_v56  ;;  %v3500_v30 = vld [vmem:[#allocation28 + $0xe8] sm:$0xff] }
 0xa48   :  { %4878 = vmatprep.mubr.msk.f32.mxu0 %vm6367_vm8, %v7647_v37  ;;  %5562 = vmatpush3.bf16.msra.mxu0 %v5561_v40  ;;  %v5630_v40 = vpack.c.bf16 %v3490_v60, %v3489_v41  ;;  %v5645_v46 = vpack.c.bf16 %v3500_v30, %v3499_v45  ;;  %v3660_v0 = vld [vmem:[#allocation28 + $0x168] sm:$0xff]  ;;  %v3472_v39 = vld [vmem:[#allocation28 + $0x10] sm:$0xff]  ;;  %v3473_v41 = vld [vmem:[#allocation28 + $0x18] sm:$0xff] }
 0xa49   :  { %5563 = vmatprep.subr.bf16.mxu0 %v6365_v63  ;;  %5676 = vmatpush3.bf16.msra.mxu1 %v5675_v38  ;;  %v5654_v60 = vpack.c.bf16 %v3473_v41, %v3472_v39  ;;  %v3474_v38 = vld [vmem:[#allocation28 + $0x20] sm:$0xff]  ;;  %v3475_v32 = vld [vmem:[#allocation28 + $0x28] sm:$0xff] }
 0xa4a   :  { %5677 = vmatprep.subr.bf16.mxu1 %v6365_v63  ;;  %v5657_v25 = vpack.c.bf16 %v3475_v32, %v3474_v38  ;;  %v3794_v45 = vld [vmem:[#allocation29 + $0x48] sm:$0xff] }
 0xa4c   :  { %5565 = vmatpush3.bf16.msra.mxu0 %v5564_v47  ;;  %v3492_v47 = vld [vmem:[#allocation28 + $0xa8] sm:$0xff] }
 0xa4d   :  { %5566 = vmatprep.subr.bf16.mxu0 %v6365_v63  ;;  %5679 = vmatpush3.bf16.msra.mxu1 %v5678_v42  ;;  %v3477_v42 = vld [vmem:[#allocation28 + $0x38] sm:$0xff] }
 0xa4e   :  { %5680 = vmatprep.subr.bf16.mxu1 %v6365_v63 }
 0xb0d   :  { %v7653_v9 = vpop.f32.mrb[20].mxu1 }
 0xb0e   :  { %v3448_v51 = vpop.f32.mrb[21].mxu1 }
 0xb0f   :  { %v3651_v51 = vld [vmem:[#allocation28 + $0x120] sm:$0xff] }
 0xb1a   :  { %v3130_v50 = vpop.f32.mrb[10].mxu0 }
 0xb1b   :  { %v3134_v36 = vmul.f32 0.02, %v3130_v50  ;;  %v3132_v54 = vpop.f32.mrb[11].mxu0  ;;  %v3652_v50 = vld [vmem:[#allocation28 + $0x128] sm:$0xff] }
 0xb1c   :  { %v5681_v54 = vpack.c.bf16 %v3652_v50, %v3651_v51  ;;  %v3479_v51 = vld [vmem:[#allocation28 + $0x48] sm:$0xff] }
 0xb1d   :  { %v3135_v19 = vmul.f32 %v3134_v36, %v3134_v36  ;;  %v3143_v5 = vsub.f32 0.0, %v3134_v36 }
 0xb1e   :  { %5682 = vmatpush3.bf16.msra.mxu1 %v5681_v54  ;;  %v3481_v54 = vld [vmem:[#allocation28 + $0x58] sm:$0xff] }
 0xb1f   :  { %v3137_v20 = vrot.slane %v3135_v19, 7  ;;  %v3493_v19 = vld [vmem:[#allocation28 + $0xb0] sm:$0xff]  ;;  %5683 = vmatprep.subr.bf16.mxu1 %v6365_v63 }
 0xb21   :  { %v3139_v10 = vsub.f32 %v3134_v36, %v3137_v20  ;;  %v3494_v20 = vld [vmem:[#allocation28 + $0xb8] sm:$0xff] }
 0xb23   :  { %v3140_v14 = vmax.f32 %v3139_v10, 0.0  ;;  %v3653_v10 = vld [vmem:[#allocation28 + $0x130] sm:$0xff] }
 0xb25   :  { %v3141_v55 = vadd.f32 1e-05, %v3140_v14  ;;  %v3654_v14 = vld [vmem:[#allocation28 + $0x138] sm:$0xff] }
 0xb27   :  { %5874 = vrsqrt.f32 %v3141_v55  ;;  %v5636_v55 = vpack.c.bf16 %v3494_v20, %v3493_v19  ;;  %v3482_v20 = vld [vmem:[#allocation28 + $0x60] sm:$0xff] }
 0xb31   :  { %v5875_v49 = vpop.eup %5874 }
 0xb32   :  { %v3145_v57 = vrot.slane %v5875_v49, 1  ;;  %v5684_v49 = vpack.c.bf16 %v3654_v14, %v3653_v10  ;;  %v3483_v10 = vld [vmem:[#allocation28 + $0x68] sm:$0xff] }
 0xb33   :  { %v5669_v14 = vpack.c.bf16 %v3483_v10, %v3482_v20 }
 0xb34   :  { %v3147_v59 = vmul.f32 %v3145_v57, %v3143_v5  ;;  %v3495_v5 = vld [vmem:[#allocation28 + $0xc0] sm:$0xff]  ;;  %5685 = vmatpush3.bf16.msra.mxu1 %v5684_v49  ;;  %v3485_v49 = vld [vmem:[#allocation28 + $0x78] sm:$0xff] }
 0xb35   :  { %5686 = vmatprep.subr.bf16.mxu1 %v6365_v63 }
 0xb36   :  { %v3149_v18 = vrot.slane %v3147_v59, 7 }
 0xb38   :  { %v3151_v3 = vsel %vm1156_vm5, %v3145_v57, %v3149_v18  ;;  %v3496_v57 = vld [vmem:[#allocation28 + $0xc8] sm:$0xff]  ;;  %v5687_v18 = vpack.c.bf16 %v3656_v61, %v3655_v58 }
 0xb39   :  { %4879 = vmatmul.mubr.msk.f32.vlgmr.msra.gmra.mrb[12].mxu0 %vm3060_vm2, %v3151_v3  ;;  %v5639_v59 = vpack.c.bf16 %v3496_v57, %v3495_v5  ;;  %v3658_v3 = vld [vmem:[#allocation28 + $0x158] sm:$0xff]  ;;  %v3785_v57 = vld [vmem:[#allocation29] sm:$0xff]  ;;  %v3786_v58 = vld [vmem:[#allocation29 + $0x8] sm:$0xff] }
 0xb3a   :  { %5568 = vmatpush1.bf16.msra.mxu0 %v5567_v35  ;;  %4389 = vmatprep.mubr.msk.f32.mxu0 %vm3060_vm2, %v7636_v53  ;;  %v3277_v53 = vld [vmem:[#allocation25 + $0x50] sm:$0xff]  ;;  %v5690_v34 = vpack.c.bf16 %v3658_v3, %v3657_v11  ;;  %v5699_v61 = vpack.c.bf16 %v3786_v58, %v3785_v57  ;;  %v3790_v11 = vld [vmem:[#allocation29 + $0x28] sm:$0xff] }
 0xb3b   :  { %5569 = vmatprep.subr.bf16.mxu0 %v6365_v63  ;;  %v5582_v15 = vpack.c.bf16 %v3278_v44, %v3277_v53  ;;  %v3497_v35 = vld [vmem:[#allocation28 + $0xd0] sm:$0xff]  ;;  %5688 = vmatpush3.bf16.msra.mxu1 %v5687_v18  ;;  %v3502_v53 = vld [vmem:[#allocation28 + $0xf8] sm:$0xff] }
 0xb3c   :  { %5689 = vmatprep.subr.bf16.mxu1 %v6365_v63  ;;  %v3788_v18 = vld [vmem:[#allocation29 + $0x18] sm:$0xff] }
 0xb3e   :  { %5571 = vmatpush1.bf16.msra.mxu0 %v5570_v7  ;;  %v5642_v7 = vpack.c.bf16 %v3498_v17, %v3497_v35  ;;  %v3789_v35 = vld [vmem:[#allocation29 + $0x20] sm:$0xff] }
 0xb3f   :  { %5572 = vmatprep.subr.bf16.mxu0 %v6365_v63  ;;  %5691 = vmatpush3.bf16.msra.mxu1 %v5690_v34  ;;  %v5705_v3 = vpack.c.bf16 %v3790_v11, %v3789_v35  ;;  %v3792_v34 = vld [vmem:[#allocation29 + $0x38] sm:$0xff]  ;;  %v3995_v35 = vld [vmem:[#allocation34 + $0x8] sm:$0xff] }
 0xb40   :  { %5692 = vmatprep.subr.bf16.mxu1 %v6365_v63 }
 0xb42   :  { %5574 = vmatpush1.bf16.msra.mxu0 %v5573_v13 }
 0xb43   :  { %5575 = vmatprep.subr.bf16.mxu0 %v6365_v63 }
 0xb46   :  { %5577 = vmatpush1.bf16.msra.mxu0 %v5576_v43  ;;  %v3659_v43 = vld [vmem:[#allocation28 + $0x160] sm:$0xff] }
 0xb47   :  { %5578 = vmatprep.subr.bf16.mxu0 %v6365_v63  ;;  %v5693_v44 = vpack.c.bf16 %v3660_v0, %v3659_v43  ;;  %v3795_v43 = vld [vmem:[#allocation29 + $0x50] sm:$0xff] }
 0xb49   :  { %5694 = vmatpush3.bf16.msra.mxu1 %v5693_v44 }
 0xb4a   :  { %5580 = vmatpush1.bf16.msra.mxu0 %v5579_v1  ;;  %v3501_v1 = vld [vmem:[#allocation28 + $0xf0] sm:$0xff]  ;;  %5695 = vmatprep.subr.bf16.mxu1 %v6365_v63 }
 0xb4b   :  { %5581 = vmatprep.subr.bf16.mxu0 %v6365_v63  ;;  %v5648_v52 = vpack.c.bf16 %v3502_v53, %v3501_v1  ;;  %v3797_v1 = vld [vmem:[#allocation29 + $0x60] sm:$0xff]  ;;  %v3798_v53 = vld [vmem:[#allocation29 + $0x68] sm:$0xff] }
 0xb4c   :  { %v5717_v44 = vpack.c.bf16 %v3798_v53, %v3797_v1  ;;  %v4000_v53 = vld [vmem:[#allocation34 + $0x30] sm:$0xff] }
 0xb4e   :  { %5583 = vmatpush1.bf16.msra.mxu0 %v5582_v15  ;;  %v3661_v15 = vld [vmem:[#allocation28 + $0x170] sm:$0xff] }
 0xb4f   :  { %5584 = vmatprep.subr.bf16.mxu0 %v6365_v63 }
 0xb52   :  { %5586 = vmatpush1.bf16.msra.mxu0 %v5585_v2  ;;  %v5696_v2 = vpack.c.bf16 %v3662_v21, %v3661_v15  ;;  %v3799_v15 = vld [vmem:[#allocation29 + $0x70] sm:$0xff]  ;;  %v3800_v21 = vld [vmem:[#allocation29 + $0x78] sm:$0xff] }
 0xb53   :  { %5587 = vmatprep.subr.bf16.mxu0 %v6365_v63 }
 0xb54   :  { %5697 = vmatpush3.bf16.msra.mxu1 %v5696_v2 }
 0xb55   :  { %5722 = vmatprep.subr.bf16.mxu1 %v6365_v63 }
 0xb56   :  { %5589 = vmatpush1.bf16.msra.mxu0 %v5588_v33 }
 0xb57   :  { %5590 = vmatprep.subr.bf16.mxu0 %v6365_v63 }
 0xb5a   :  { %5592 = vmatpush1.bf16.msra.mxu0 %v5591_v23 }
 0xb5b   :  { %5593 = vmatprep.subr.bf16.mxu0 %v6365_v63 }
 0xb5e   :  { %5595 = vmatpush1.bf16.msra.mxu0 %v5594_v26  ;;  %v3470_v26 = vld [vmem:[#allocation28] sm:$0xff] }
 0xb5f   :  { %5626 = vmatprep.subr.bf16.mxu0 %v6365_v63 }
 0xb61   :  { %3375 = vmatmul.mubr.f32.vlgmr.msra.gmra.mrb[14].mxu0 %v7629_v48  ;;  %v3491_v48 = vld [vmem:[#allocation28 + $0xa0] sm:$0xff] }
 0xb62   :  { %4913 = vmatprep.mubr.msk.f32.mxu0 %vm6367_vm8, %v7647_v37  ;;  %5628 = vmatpush3.bf16.msra.mxu0 %v5627_v28  ;;  %v5633_v36 = vpack.c.bf16 %v3492_v47, %v3491_v48  ;;  %v3478_v47 = vld [vmem:[#allocation28 + $0x40] sm:$0xff] }
 0xb63   :  { %5629 = vmatprep.subr.bf16.mxu0 %v6365_v63  ;;  %v5663_v50 = vpack.c.bf16 %v3479_v51, %v3478_v47 }
 0xb66   :  { %5631 = vmatpush3.bf16.msra.mxu0 %v5630_v40  ;;  %v3476_v40 = vld [vmem:[#allocation28 + $0x30] sm:$0xff] }
 0xb67   :  { %5632 = vmatprep.subr.bf16.mxu0 %v6365_v63  ;;  %v5660_v48 = vpack.c.bf16 %v3477_v42, %v3476_v40 }
 0xb6a   :  { %5634 = vmatpush3.bf16.msra.mxu0 %v5633_v36  ;;  %v3480_v36 = vld [vmem:[#allocation28 + $0x50] sm:$0xff] }
 0xb6b   :  { %5635 = vmatprep.subr.bf16.mxu0 %v6365_v63  ;;  %v5666_v19 = vpack.c.bf16 %v3481_v54, %v3480_v36 }
 0xb6e   :  { %5637 = vmatpush3.bf16.msra.mxu0 %v5636_v55  ;;  %v3484_v55 = vld [vmem:[#allocation28 + $0x70] sm:$0xff] }
 0xb6f   :  { %5638 = vmatprep.subr.bf16.mxu0 %v6365_v63  ;;  %v5672_v5 = vpack.c.bf16 %v3485_v49, %v3484_v55 }
 0xb72   :  { %5640 = vmatpush3.bf16.msra.mxu0 %v5639_v59  ;;  %v3787_v59 = vld [vmem:[#allocation29 + $0x10] sm:$0xff] }
 0xb73   :  { %5641 = vmatprep.subr.bf16.mxu0 %v6365_v63  ;;  %v5702_v17 = vpack.c.bf16 %v3788_v18, %v3787_v59  ;;  %v3994_v18 = vld [vmem:[#allocation34] sm:$0xff] }
 0xb76   :  { %5643 = vmatpush3.bf16.msra.mxu0 %v5642_v7  ;;  %v3791_v7 = vld [vmem:[#allocation29 + $0x30] sm:$0xff] }
 0xb77   :  { %5644 = vmatprep.subr.bf16.mxu0 %v6365_v63 }
 0xb7a   :  { %5646 = vmatpush3.bf16.msra.mxu0 %v5645_v46  ;;  %v3796_v46 = vld [vmem:[#allocation29 + $0x58] sm:$0xff] }
 0xb7b   :  { %5647 = vmatprep.subr.bf16.mxu0 %v6365_v63  ;;  %v5714_v0 = vpack.c.bf16 %v3796_v46, %v3795_v43  ;;  %v3998_v46 = vld [vmem:[#allocation34 + $0x20] sm:$0xff] }
 0xb7e   :  { %5649 = vmatpush3.bf16.msra.mxu0 %v5648_v52  ;;  %v5720_v52 = vpack.c.bf16 %v3800_v21, %v3799_v15  ;;  %v4002_v21 = vld [vmem:[#allocation34 + $0x40] sm:$0xff] }
 0xb7f   :  { %5650 = vmatprep.subr.bf16.mxu0 %v6365_v63 }
 0xc0c   :  { %v3225_v12 = vpop.f32.mrb[12].mxu0 }
 0xc0d   :  { %v4880_v13 = vpop.f32.mrb[13].mxu0  ;;  %v3454_v4 = vrot.slane %v3225_v12, %v7018_v62  ;;  %v3459_v16 = vrot.slane %v3225_v12, %v7020_v6  ;;  %v5708_v12 = vpack.c.bf16 %v3792_v34, %v3791_v7 }
 0xc0e   :  { %v3793_v13 = vld [vmem:[#allocation29 + $0x40] sm:$0xff] }
 0xc0f   :  { %v5711_v30 = vpack.c.bf16 %v3794_v45, %v3793_v13  ;;  %v3996_v13 = vld [vmem:[#allocation34 + $0x10] sm:$0xff]  ;;  %v3997_v45 = vld [vmem:[#allocation34 + $0x18] sm:$0xff] }
 0xc10   :  { %v5762_v43 = vpack.c.bf16 %v3997_v45, %v3996_v13  ;;  %v3982_v13 = vld [vmem:[#allocation32 + $0x20] sm:$0xff]  ;;  %v3983_v45 = vld [vmem:[#allocation32 + $0x28] sm:$0xff] }
 0xc34   :  { %v3376_v29 = vpop.f32.mrb[14].mxu0 }
 0xc35   :  { %v3450_v33 = vmax.f32 %v3376_v29, %v7653_v9  ;;  %v3378_v8 = vpop.f32.mrb[15].mxu0  ;;  %v3471_v9 = vld [vmem:[#allocation28 + $0x8] sm:$0xff] }
 0xc36   :  { %v5651_v22 = vpack.c.bf16 %v3471_v9, %v3470_v26 }
 0xc37   :  { %v3455_v23 = vmul.f32 %v3454_v4, %v3450_v33 }
 0xc39   :  { %v3460_v24 = vadd.f32 %v3459_v16, %v3455_v23 }
 0xc3b   :  { %3462 = vrot.lane.b32.xlu0 %v3460_v24, %s6368_s11  ;;  %v4391_v24 = vld [vmem:[%s7827_s18] ss:$0 sm:$0xff] }
 0xcad   :  { %v3463_v31 = vpop.permute.xlu0 %3462 }
 0xcae   :  { %3466 = vst.msk [vmem:[#allocation4 + $0x1] sm:$0x3] %vm3465_vm3, %v3463_v31 }
 0xcaf   :  { %3468 = vst.msk [vmem:[#allocation4 + $0x3] sm:$0xc] %vm3467_vm7, %v3463_v31 }
 0xcb6   :  { %v3469_v27 = vld [vmem:[#allocation4] sm:$0xff] }
 0xcb7   :  { %v3504_v56 = vrot.slane %v3469_v27, 1  ;;  %v3663_v28 = vrot.slane %v3469_v27, 2 }
 0xcb9   :  { %4914 = vmatmul.mubr.f32.vlgmr.msra.gmra.mrb[16].mxu0 %v3504_v56  ;;  %4984 = vmatmul.mubr.f32.vlgmr.msra.gmra.mrb[22].mxu1 %v3663_v28 }
 0xcba   :  { %5652 = vmatpush3.bf16.msra.mxu0 %v5651_v22  ;;  %4948 = vmatprep.mubr.msk.f32.mxu0 %vm6367_vm8, %v7647_v37 }
 0xcbb   :  { %5653 = vmatprep.subr.bf16.mxu0 %v6365_v63  ;;  %5037 = vmatprep.mubr.msk.f32.mxu1 %vm6367_vm8, %v7647_v37 }
 0xcbe   :  { %5655 = vmatpush3.bf16.msra.mxu0 %v5654_v60 }
 0xcbf   :  { %5656 = vmatprep.subr.bf16.mxu0 %v6365_v63 }
 0xcc2   :  { %5658 = vmatpush3.bf16.msra.mxu0 %v5657_v25 }
 0xcc3   :  { %5659 = vmatprep.subr.bf16.mxu0 %v6365_v63 }
 0xcc6   :  { %5661 = vmatpush3.bf16.msra.mxu0 %v5660_v48 }
 0xcc7   :  { %5662 = vmatprep.subr.bf16.mxu0 %v6365_v63 }
 0xcca   :  { %5664 = vmatpush3.bf16.msra.mxu0 %v5663_v50 }
 0xccb   :  { %5665 = vmatprep.subr.bf16.mxu0 %v6365_v63 }
 0xcce   :  { %5667 = vmatpush3.bf16.msra.mxu0 %v5666_v19 }
 0xccf   :  { %5668 = vmatprep.subr.bf16.mxu0 %v6365_v63 }
 0xcd2   :  { %5670 = vmatpush3.bf16.msra.mxu0 %v5669_v14 }
 0xcd3   :  { %5671 = vmatprep.subr.bf16.mxu0 %v6365_v63 }
 0xcd6   :  { %5673 = vmatpush3.bf16.msra.mxu0 %v5672_v5 }
 0xcd7   :  { %5698 = vmatprep.subr.bf16.mxu0 %v6365_v63 }
 0xcd9   :  { %4949 = vmatmul.mubr.f32.vlgmr.msra.gmra.mrb[18].mxu0 %v3469_v27 }
 0xcda   :  { %5018 = vmatprep.mubr.msk.f32.mxu0 %vm6367_vm8, %v7647_v37  ;;  %5700 = vmatpush3.bf16.msra.mxu0 %v5699_v61 }
 0xcdb   :  { %5701 = vmatprep.subr.bf16.mxu0 %v6365_v63 }
 0xcde   :  { %5703 = vmatpush3.bf16.msra.mxu0 %v5702_v17 }
 0xcdf   :  { %5704 = vmatprep.subr.bf16.mxu0 %v6365_v63 }
 0xce2   :  { %5706 = vmatpush3.bf16.msra.mxu0 %v5705_v3 }
 0xce3   :  { %5707 = vmatprep.subr.bf16.mxu0 %v6365_v63 }
 0xce6   :  { %5709 = vmatpush3.bf16.msra.mxu0 %v5708_v12  ;;  %v5759_v12 = vpack.c.bf16 %v3995_v35, %v3994_v18 }
 0xce7   :  { %5710 = vmatprep.subr.bf16.mxu0 %v6365_v63 }
 0xcea   :  { %5712 = vmatpush3.bf16.msra.mxu0 %v5711_v30 }
 0xceb   :  { %5713 = vmatprep.subr.bf16.mxu0 %v6365_v63 }
 0xcee   :  { %5715 = vmatpush3.bf16.msra.mxu0 %v5714_v0  ;;  %v3999_v0 = vld [vmem:[#allocation34 + $0x28] sm:$0xff] }
 0xcef   :  { %5716 = vmatprep.subr.bf16.mxu0 %v6365_v63  ;;  %v5765_v1 = vpack.c.bf16 %v3999_v0, %v3998_v46  ;;  %v3985_v46 = vld [vmem:[#allocation32 + $0x38] sm:$0xff] }
 0xcf2   :  { %5718 = vmatpush3.bf16.msra.mxu0 %v5717_v44  ;;  %v4001_v44 = vld [vmem:[#allocation34 + $0x38] sm:$0xff] }
 0xcf3   :  { %5719 = vmatprep.subr.bf16.mxu0 %v6365_v63  ;;  %v5768_v15 = vpack.c.bf16 %v4001_v44, %v4000_v53  ;;  %v3987_v53 = vld [vmem:[#allocation32 + $0x48] sm:$0xff] }
 0xcf6   :  { %5721 = vmatpush3.bf16.msra.mxu0 %v5720_v52  ;;  %v4003_v52 = vld [vmem:[#allocation34 + $0x48] sm:$0xff] }
 0xcf7   :  { %5758 = vmatprep.subr.bf16.mxu0 %v6365_v63 }
 0xd8c   :  { %v3572_v2 = vpop.f32.mrb[16].mxu0  ;;  %v3731_v29 = vpop.f32.mrb[22].mxu1 }
 0xd8d   :  { %v4915_v4 = vpop.f32.mrb[17].mxu0  ;;  %v4985_v33 = vpop.f32.mrb[23].mxu1 }
 0xd8e   :  { %v4005_v4 = vld [vmem:[#allocation34 + $0x58] sm:$0xff] }
 0xdac   :  { %v3642_v8 = vpop.f32.mrb[18].mxu0 }
 0xdad   :  { %v3643_v16 = vadd.f32 %v3642_v8, %v3572_v2  ;;  %v4950_v23 = vpop.f32.mrb[19].mxu0  ;;  %v5771_v2 = vpack.c.bf16 %v4003_v52, %v4002_v21  ;;  %v4006_v8 = vld [vmem:[#allocation34 + $0x60] sm:$0xff]  ;;  %v3989_v21 = vld [vmem:[#allocation32 + $0x58] sm:$0xff] }
 0xdaf   :  { %v3735_v31 = vadd.f32 %v3731_v29, %v3643_v16  ;;  %v4004_v29 = vld [vmem:[#allocation34 + $0x50] sm:$0xff]  ;;  %v4007_v16 = vld [vmem:[#allocation34 + $0x68] sm:$0xff] }
 0xdb0   :  { %v5774_v33 = vpack.c.bf16 %v4005_v4, %v4004_v29  ;;  %v3991_v29 = vld [vmem:[#allocation32 + $0x68] sm:$0xff] }
 0xdb1   :  { %v3743_v26 = vadd.f32 %v4391_v24, %v3735_v31  ;;  %v5777_v24 = vpack.c.bf16 %v4007_v16, %v4006_v8  ;;  %v4008_v31 = vld [vmem:[#allocation34 + $0x70] sm:$0xff]  ;;  %v3993_v8 = vld [vmem:[#allocation32 + $0x78] sm:$0xff] }
 0xdb3   :  { %vm3744_vm14 = vcmp.gt.f32.partialorder %v3743_v26, 0.0  ;;  %v3745_v9 = vmul.f32 0.01, %v3743_v26 }
 0xdb5   :  { %v7716_v27 = vsel %vm3744_vm14, %v3743_v26, %v3745_v9  ;;  %v4009_v26 = vld [vmem:[#allocation34 + $0x78] sm:$0xff] }
 0xdb6   :  { %v3754_v22 = vmul.f32 %v7716_v27, %v7716_v27  ;;  %v3763_v56 = vrot.slane %v7716_v27, 4  ;;  %v3747_v28 = vsel %vm1039_vm4, %v7716_v27, 0.0  ;;  %v3971_v23 = vrot.slane %v7716_v27, 1 }
 0xdb7   :  { %v3748_v39 = vrot.slane %v3747_v28, 4 }
 0xdb8   :  { %v3755_v41 = vsel %vm1039_vm4, %v3754_v22, 0.0  ;;  %v3765_v60 = vsel %vm1039_vm4, %v3763_v56, 0.0  ;;  %v3773_v38 = vrot.slane %v3754_v22, 4  ;;  %v3973_v9 = vmax.f32 %v7716_v27, %v3971_v23  ;;  %v3893_v27 = vld [vmem:[#allocation31 + $0x20] sm:$0xff] }
 0xdb9   :  { %v3749_v32 = vadd.f32 %v3748_v39, %v3747_v28  ;;  %v3756_v25 = vrot.slane %v3755_v41, 4  ;;  %v3766_v40 = vrot.slane %v3765_v60, 4  ;;  %v5780_v22 = vpack.c.bf16 %v4009_v26, %v4008_v31  ;;  %v3889_v39 = vld [vmem:[#allocation31] sm:$0xff]  ;;  %v4163_v31 = vld [vmem:[%s7832_s23 + $0x10] sm:$0xff] }
 0xdba   :  { %v3775_v42 = vsel %vm1039_vm4, %v3773_v38, 0.0  ;;  %v3975_v56 = vrot.slane %v3973_v9, 3  ;;  %v3891_v38 = vld [vmem:[#allocation31 + $0x10] sm:$0xff]  ;;  %vm3897_vm4 = vcmask 523264   ;;  %v4161_v23 = vld [vmem:[%s7832_s23] sm:$0xff] }
 0xdbb   :  { %v3750_v48 = vrot.slane %v3749_v32, 2  ;;  %v3757_v47 = vadd.f32 %v3756_v25, %v3755_v41  ;;  %v3767_v51 = vadd.f32 %v3766_v40, %v3765_v60  ;;  %v3776_v50 = vrot.slane %v3775_v42, 4  ;;  %v3890_v41 = vld [vmem:[#allocation31 + $0x8] sm:$0xff] }
 0xdbc   :  { %v7739_v28 = vsel %vm1156_vm5, %v3973_v9, %v3975_v56  ;;  %v5723_v60 = vpack.c.bf16 %v3890_v41, %v3889_v39  ;;  %v3894_v40 = vld [vmem:[#allocation31 + $0x28] sm:$0xff]  ;;  %v4164_v9 = vld [vmem:[%s7832_s23 + $0x18] sm:$0xff] }
 0xdbd   :  { %v3751_v36 = vadd.f32 %v3750_v48, %v3749_v32  ;;  %v3758_v54 = vrot.slane %v3757_v47, 2  ;;  %v3768_v19 = vrot.slane %v3767_v51, 2  ;;  %v3777_v20 = vadd.f32 %v3776_v50, %v3775_v42  ;;  %v3892_v32 = vld [vmem:[#allocation31 + $0x18] sm:$0xff]  ;;  %v3895_v48 = vld [vmem:[#allocation31 + $0x30] sm:$0xff] }
 0xdbe   :  { %5724 = vmatpush3.bf16.msra.mxu1 %v5723_v60  ;;  %v5726_v25 = vpack.c.bf16 %v3892_v32, %v3891_v38  ;;  %v5729_v42 = vpack.c.bf16 %v3894_v40, %v3893_v27  ;;  %v4166_v56 = vld [vmem:[%s7832_s23 + $0x28] sm:$0xff]  ;;  %v4168_v41 = vld [vmem:[%s7832_s23 + $0x38] sm:$0xff] }
 0xdbf   :  { %v3759_v10 = vadd.f32 %v3758_v54, %v3757_v47  ;;  %v3769_v14 = vadd.f32 %v3768_v19, %v3767_v51  ;;  %v3778_v55 = vrot.slane %v3777_v20, 2  ;;  %v3752_v49 = vrot.slane %v3751_v36, 1  ;;  %5725 = vmatprep.subr.bf16.mxu1 %v6365_v63  ;;  %v3896_v47 = vld [vmem:[#allocation31 + $0x38] sm:$0xff] }
 0xdc0   :  { %v5732_v51 = vpack.c.bf16 %v3896_v47, %v3895_v48 }
 0xdc1   :  { %v3760_v5 = vrot.slane %v3759_v10, 1  ;;  %v3770_v57 = vrot.slane %v3769_v14, 1  ;;  %v3779_v58 = vadd.f32 %v3778_v55, %v3777_v20  ;;  %v3753_v17 = vadd.f32 %v3752_v49, %v3751_v36 }
 0xdc2   :  { %5727 = vmatpush3.bf16.msra.mxu1 %v5726_v25 }
 0xdc3   :  { %v3771_v61 = vadd.f32 %v3770_v57, %v3769_v14  ;;  %v3780_v59 = vrot.slane %v3779_v58, 1  ;;  %v3761_v11 = vadd.f32 %v3760_v5, %v3759_v10  ;;  %5728 = vmatprep.subr.bf16.mxu1 %v6365_v63 }
 0xdc5   :  { %v3781_v3 = vadd.f32 %v3780_v59, %v3779_v58  ;;  %v3782_v7 = vadd.f32 %v3771_v61, %v3753_v17  ;;  %v3978_v58 = vld [vmem:[#allocation32] sm:$0xff]  ;;  %v3979_v61 = vld [vmem:[#allocation32 + $0x8] sm:$0xff]  ;;  %v3980_v17 = vld [vmem:[#allocation32 + $0x10] sm:$0xff] }
 0xdc6   :  { %5730 = vmatpush3.bf16.msra.mxu1 %v5729_v42  ;;  %v5735_v35 = vpack.c.bf16 %v3979_v61, %v3978_v58 }
 0xdc7   :  { %v3783_v34 = vadd.f32 %v3781_v3, %v3761_v11  ;;  %5731 = vmatprep.subr.bf16.mxu1 %v6365_v63  ;;  %v3981_v11 = vld [vmem:[#allocation32 + $0x18] sm:$0xff] }
 0xdc9   :  { %v3784_v30 = vsel %vm1156_vm5, %v3782_v7, %v3783_v34  ;;  %v5738_v34 = vpack.c.bf16 %v3981_v11, %v3980_v17 }
 0xdca   :  { %5019 = vmatmul.mubr.f32.vlgmr.msra.gmra.mrb[20].mxu0 %v3784_v30  ;;  %5733 = vmatpush3.bf16.msra.mxu1 %v5732_v51  ;;  %v5741_v30 = vpack.c.bf16 %v3983_v45, %v3982_v13 }
 0xdcb   :  { %5760 = vmatpush3.bf16.msra.mxu0 %v5759_v12  ;;  %5107 = vmatprep.mubr.msk.f32.mxu0 %vm6367_vm8, %v7647_v37 }
 0xdcc   :  { %5761 = vmatprep.subr.bf16.mxu0 %v6365_v63  ;;  %5734 = vmatprep.subr.bf16.mxu1 %v6365_v63 }
 0xdcf   :  { %5763 = vmatpush3.bf16.msra.mxu0 %v5762_v43  ;;  %v3984_v43 = vld [vmem:[#allocation32 + $0x30] sm:$0xff] }
 0xdd0   :  { %5764 = vmatprep.subr.bf16.mxu0 %v6365_v63  ;;  %v5744_v0 = vpack.c.bf16 %v3985_v46, %v3984_v43 }
 0xdd3   :  { %5766 = vmatpush3.bf16.msra.mxu0 %v5765_v1  ;;  %v3986_v1 = vld [vmem:[#allocation32 + $0x40] sm:$0xff] }
 0xdd4   :  { %5767 = vmatprep.subr.bf16.mxu0 %v6365_v63  ;;  %v5747_v44 = vpack.c.bf16 %v3987_v53, %v3986_v1 }
 0xdd7   :  { %5769 = vmatpush3.bf16.msra.mxu0 %v5768_v15  ;;  %v3988_v15 = vld [vmem:[#allocation32 + $0x50] sm:$0xff] }
 0xdd8   :  { %5770 = vmatprep.subr.bf16.mxu0 %v6365_v63  ;;  %v5750_v52 = vpack.c.bf16 %v3989_v21, %v3988_v15 }
 0xddb   :  { %5772 = vmatpush3.bf16.msra.mxu0 %v5771_v2  ;;  %v3990_v2 = vld [vmem:[#allocation32 + $0x60] sm:$0xff] }
 0xddc   :  { %5773 = vmatprep.subr.bf16.mxu0 %v6365_v63  ;;  %v5753_v4 = vpack.c.bf16 %v3991_v29, %v3990_v2 }
 0xddf   :  { %5775 = vmatpush3.bf16.msra.mxu0 %v5774_v33  ;;  %v3992_v33 = vld [vmem:[#allocation32 + $0x70] sm:$0xff] }
 0xde0   :  { %5776 = vmatprep.subr.bf16.mxu0 %v6365_v63  ;;  %v5756_v16 = vpack.c.bf16 %v3993_v8, %v3992_v33 }
 0xde3   :  { %5778 = vmatpush3.bf16.msra.mxu0 %v5777_v24  ;;  %v4162_v24 = vld [vmem:[%s7832_s23 + $0x8] sm:$0xff] }
 0xde4   :  { %5779 = vmatprep.subr.bf16.mxu0 %v6365_v63  ;;  %v5783_v26 = vpack.c.bf16 %v4162_v24, %v4161_v23 }
 0xde7   :  { %5781 = vmatpush3.bf16.msra.mxu0 %v5780_v22  ;;  %v5786_v22 = vpack.c.bf16 %v4164_v9, %v4163_v31 }
 0xdea   :  { %5108 = vmatmul.mubr.f32.vlgmr.msra.gmra.mrb[22].mxu0 %v7739_v28 }
 0xe9d   :  { %v3867_v50 = vpop.f32.mrb[20].mxu0 }
 0xe9e   :  { %v3871_v36 = vmul.f32 0.125, %v3867_v50  ;;  %v5020_v54 = vpop.f32.mrb[21].mxu0  ;;  %v4393_v50 = vld [vmem:[%s7833_s24] ss:$0 sm:$0xff] }
 0xea0   :  { %v3872_v19 = vmul.f32 %v3871_v36, %v3871_v36  ;;  %v3880_v5 = vsub.f32 0.0, %v3871_v36 }
 0xea2   :  { %v3874_v20 = vrot.slane %v3872_v19, 7 }
 0xea4   :  { %v3876_v10 = vsub.f32 %v3871_v36, %v3874_v20 }
 0xea6   :  { %v3877_v14 = vmax.f32 %v3876_v10, 0.0 }
 0xea8   :  { %v3878_v55 = vadd.f32 1e-05, %v3877_v14 }
 0xeaa   :  { %5876 = vrsqrt.f32 %v3878_v55 }
 0xeb4   :  { %v5877_v49 = vpop.eup %5876 }
 0xeb5   :  { %v3882_v57 = vrot.slane %v5877_v49, 1 }
 0xeb7   :  { %v3884_v59 = vmul.f32 %v3882_v57, %v3880_v5 }
 0xeb9   :  { %v3886_v18 = vrot.slane %v3884_v59, 7 }
 0xebb   :  { %v3888_v3 = vsel %vm1156_vm5, %v3882_v57, %v3886_v18  ;;  %vm4249_vm5 = vcmask 9216  }
 0xebc   :  { %5038 = vmatmul.mubr.msk.f32.vlgmr.msra.gmra.mrb[24].mxu1 %vm3897_vm4, %v3888_v3 }
 0xebd   :  { %5736 = vmatpush3.bf16.msra.mxu1 %v5735_v35  ;;  %v7748_v7 = vpop.f32.mrb[22].mxu0  ;;  %5072 = vmatprep.mubr.msk.f32.mxu1 %vm6367_vm8, %v7647_v37 }
 0xebe   :  { %v5109_v12 = vpop.f32.mrb[23].mxu0  ;;  %5737 = vmatprep.subr.bf16.mxu1 %v6365_v63 }
 0xec1   :  { %5739 = vmatpush3.bf16.msra.mxu1 %v5738_v34 }
 0xec2   :  { %5740 = vmatprep.subr.bf16.mxu1 %v6365_v63 }
 0xec5   :  { %5742 = vmatpush3.bf16.msra.mxu1 %v5741_v30 }
 0xec6   :  { %5743 = vmatprep.subr.bf16.mxu1 %v6365_v63 }
 0xec9   :  { %5745 = vmatpush3.bf16.msra.mxu1 %v5744_v0 }
 0xeca   :  { %5746 = vmatprep.subr.bf16.mxu1 %v6365_v63 }
 0xecd   :  { %5748 = vmatpush3.bf16.msra.mxu1 %v5747_v44 }
 0xece   :  { %5749 = vmatprep.subr.bf16.mxu1 %v6365_v63 }
 0xed1   :  { %5751 = vmatpush3.bf16.msra.mxu1 %v5750_v52 }
 0xed2   :  { %5752 = vmatprep.subr.bf16.mxu1 %v6365_v63 }
 0xed5   :  { %5754 = vmatpush3.bf16.msra.mxu1 %v5753_v4 }
 0xed6   :  { %5755 = vmatprep.subr.bf16.mxu1 %v6365_v63 }
 0xed9   :  { %5757 = vmatpush3.bf16.msra.mxu1 %v5756_v16 }
 0xeda   :  { %5782 = vmatprep.subr.bf16.mxu1 %v6365_v63 }
 0xedc   :  { %5073 = vmatmul.mubr.f32.vlgmr.msra.gmra.mrb[26].mxu1 %v7739_v28  ;;  %v4167_v28 = vld [vmem:[%s7832_s23 + $0x30] sm:$0xff] }
 0xedd   :  { %5126 = vmatprep.mubr.msk.f32.mxu1 %vm6367_vm8, %v7647_v37  ;;  %5784 = vmatpush3.bf16.msra.mxu1 %v5783_v26  ;;  %v4165_v37 = vld [vmem:[%s7832_s23 + $0x20] sm:$0xff]  ;;  %v5792_v60 = vpack.c.bf16 %v4168_v41, %v4167_v28 }
 0xede   :  { %5785 = vmatprep.subr.bf16.mxu1 %v6365_v63  ;;  %v5789_v39 = vpack.c.bf16 %v4166_v56, %v4165_v37 }
 0xee1   :  { %5787 = vmatpush3.bf16.msra.mxu1 %v5786_v22 }
 0xee2   :  { %5788 = vmatprep.subr.bf16.mxu1 %v6365_v63 }
 0xee5   :  { %5790 = vmatpush3.bf16.msra.mxu1 %v5789_v39 }
 0xee6   :  { %5791 = vmatprep.subr.bf16.mxu1 %v6365_v63 }
 0xee9   :  { %5793 = vmatpush3.bf16.msra.mxu1 %v5792_v60 }
 0xf8f   :  { %v3967_v38 = vpop.f32.mrb[24].mxu1 }
 0xf90   :  { %v5039_v32 = vpop.f32.mrb[25].mxu1  ;;  %v4154_v25 = vrot.slane %v3967_v38, %v7018_v62  ;;  %v4159_v48 = vrot.slane %v3967_v38, %v7020_v6 }
 0xfaf   :  { %v4076_v27 = vpop.f32.mrb[26].mxu1 }
 0xfb0   :  { %v4150_v40 = vmax.f32 %v4076_v27, %v7748_v7  ;;  %v5074_v42 = vpop.f32.mrb[27].mxu1 }
 0xfb2   :  { %v4155_v47 = vmul.f32 %v4154_v25, %v4150_v40 }
 0xfb4   :  { %v4160_v51 = vadd.f32 %v4159_v48, %v4155_v47 }
 0xfb6   :  { %5127 = vmatmul.mubr.msk.f32.vlgmr.msra.gmra.mrb[28].mxu1 %vm3897_vm4, %v4160_v51 }
0x1089   :  { %v4245_v63 = vpop.f32.mrb[28].mxu1 }
0x108a   :  { %v4246_v36 = vadd.f32 %v4393_v50, %v4245_v63  ;;  %v5128_v54 = vpop.f32.mrb[29].mxu1 }
0x108c   :  { %4250 = vst.msk [vmem:[#allocation35] sm:$0x3] %vm4249_vm5, %v4246_v36 }
0x108d   :  { %6309 = shalt.err (!%p6306_p2)
}
0x108e   :  { %s7867_s8 = sld [smem:[#allocation57_spill]] }
0x1094   :  { %s6310_s25 = scalar_lea.hbm %s7867_s8, 32 }
0x1095   :  { %p6311_p3 = scmp.ne.s32.totalorder %s7867_s8, %s6310_s25  ;;  %p6314_p4 = scmp.lt.u32.totalorder %s6310_s25, %s7867_s8 }
0x1097   :  { %p6316_p5 = pnand %p6314_p4, %p6311_p3 }
0x1099   :  { %6319 = shalt.err (!%p6316_p5)
}
0x109a   :  { %4260 = dma.vmem_to_hbm [thread:$0]  %s4258_s2, 32, %s7867_s8, [#allocation7]  }
0x109b   :  { %6340 = dma.done.wait [#allocation7], 32  }
0x109c   :  { %6341 = vsyncadd [#allocation7], 4294967264 }
0x109d   :  { %4264 = vsyncpa [#allocation6], 1 }
0x109e   :  { %4265 = vsyncpa [#allocation9], 1 }
0x109f   :  { %4266 = vsyncpa [#allocation12], 1 }
0x10a0   :  { %4267 = vsyncpa [#allocation15], 1 }
0x10a1   :  { %4268 = vsyncpa [#allocation18], 1 }
0x10a2   :  { %4269 = vsyncpa [#allocation21], 1 }
0x10a3   :  { %4270 = vsyncpa [#allocation24], 1 }
0x10a4   :  { %4271 = vsyncpa [#allocation27], 1 }
0x10a5   :  { %4272 = vsyncpa [#allocation30], 1 }
0x10a6   :  { %4273 = vsyncpa [#allocation33], 1 }
0x10a7   :  { %4274 = vsyncpa [#allocation7], 1 }

</bundles_post_ra>
